<compile_context>
chip_gen: v5e
topology: v5e:2x2
jax: 0.10.0
libtpu: 0.0.40
codegen_flags: <defaults>
</compile_context>

<pallas_src>
import numpy as np
import jax
import jax.numpy as jnp
from jax.experimental import pallas as pl
from jax.experimental.pallas import tpu as pltpu

HIDDEN = 128          # nn.LSTM(hidden_size=128)
NUM_CLASSES = 5       # synthetic len(class_map)
VMEM_LIMIT = 32 * 1024 * 1024


# ----------------------------- Pallas kernels -----------------------------

def conv_relu_pool_kernel(x_ref, m_ref, b_ref, o_ref):
    """Fused 3x3 conv (pad=1) + bias + ReLU + 2x2 max-pool for G images.

    x_ref: (4, G*H2, WC) bf16   shifted row slab s holds padded rows s, s+2, ... of every
                                image (lane-flattened (w, c), spatially padded NHWC)
    m_ref: (3, WC, W*Cout) bf16 banded conv matrices; cols ordered (w%2, w//2, c_out)
    b_ref: (1, W*Cout)     f32
    o_ref: (G*H2, (W/2)*Cout)   pooled output, NHWC lane-flattened (lane-dense)
    """
    gh2, half = o_ref.shape
    bias = b_ref[...]                               # hoisted: read/broadcast once
    pooled = None
    for j in range(2):                              # output-row parity (height-pool pair)
        acc = jnp.dot(x_ref[j], m_ref[0], preferred_element_type=jnp.float32)
        for kh in range(1, 3):                      # remaining vertical conv taps
            acc = acc + jnp.dot(x_ref[j + kh], m_ref[kh],
                                preferred_element_type=jnp.float32)
        y = jnp.maximum(acc + bias, 0.0)                      # conv + bias + ReLU (f32)
        yw = jnp.maximum(y[:, :half], y[:, half:])            # max-pool over width
        pooled = yw if pooled is None else jnp.maximum(pooled, yw)   # ... over height
    o_ref[...] = pooled.astype(o_ref.dtype)


def lstm_fc_kernel(feat_ref, wih_ref, bg_ref, whh_ref, wfc_ref, bfc_ref, out_ref, gx_ref):
    """Fused LSTM input projection + recurrence (PyTorch gate order i,f,g,o) + fc head.

    feat_ref: (T*BP, F)   bf16  time-major CNN features (batch padded to BP)
    wih_ref : (F, 4H)     bf16
    bg_ref  : (1, 4H)     f32   b_ih + b_hh
    whh_ref : (H, 4H)     f32   (f32 so no bf16 rounding compounds over time)
    wfc_ref : (H, NCP)    f32   fc weight, columns padded to a lane-dense multiple of 128
    bfc_ref : (1, NCP)    f32
    out_ref : (BP, NCP)   f32
    gx_ref  : (T, BP, 4H) f32   VMEM scratch for precomputed gate pre-activations
    """
    T, BP, _ = gx_ref.shape
    gx = jnp.dot(feat_ref[...], wih_ref[...],
                 preferred_element_type=jnp.float32) + bg_ref[...]
    gx_ref[...] = gx.reshape(gx_ref.shape)          # (T*BP,4H)->(T,BP,4H): sublane-aligned

    def step(t, carry):
        h, c = carry
        gates = gx_ref[t] + jnp.dot(h, whh_ref[...],
                                    preferred_element_type=jnp.float32)
        i = jax.nn.sigmoid(gates[:, 0 * HIDDEN:1 * HIDDEN])
        f = jax.nn.sigmoid(gates[:, 1 * HIDDEN:2 * HIDDEN])
        g = jnp.tanh(gates[:, 2 * HIDDEN:3 * HIDDEN])
        o = jax.nn.sigmoid(gates[:, 3 * HIDDEN:4 * HIDDEN])
        c = f * c + i * g
        h = o * jnp.tanh(c)
        return h, c

    h0 = jnp.zeros((BP, HIDDEN), jnp.float32)
    h, _ = jax.lax.fori_loop(0, T, step, (h0, h0), unroll=min(T, 8))
    # TODO(synk): pack several real sequences into the BP=8 rows when the model batch >= 8.
    out_ref[...] = jnp.dot(h, wfc_ref[...],
                           preferred_element_type=jnp.float32) + bfc_ref[...]


# ----------------------------- wrappers -----------------------------

def _pick_group(n):
    """Largest divisor of n (capped at 8) that keeps >= 2 grid steps (v7x has 2 TCs)."""
    best = 1
    for g in range(1, min(n, 8) + 1):
        if n % g == 0 and (n // g) >= 2:
            best = g
    return best


def conv3x3_relu_pool(x_nhwc, m, b_big):
    """x_nhwc: (N, H, W, Cin). Returns (N, H/2, W/2, Cout) bf16 (NHWC)."""
    N, H, W, Cin = x_nhwc.shape
    cin_p = m.shape[1] // (W + 2)                   # (possibly zero-padded) input channels
    Cout = m.shape[2] // W
    H2, W2 = H // 2, W // 2
    WC = (W + 2) * cin_p

    xpad = jnp.pad(x_nhwc.astype(jnp.bfloat16),
                   ((0, 0), (1, 1), (1, 1), (0, cin_p - Cin)))
    xpad = xpad.reshape(N, H + 2, WC)               # lane-flatten (w, c)
    # Shifted row slabs: slab s = padded rows s, s+2, ..., s+2*(H2-1) of every image, so the
    # kernel's GEMM operand for (parity j, tap kh) is simply slab[j+kh] -- already merged
    # across the G images in a block (contiguous rows, no in-kernel reshape).
    xs = jnp.stack([xpad[:, s:s + 2 * H2:2, :] for s in range(4)], axis=0)
    xs = xs.reshape(4, N * H2, WC)

    G = _pick_group(N)
    out = pl.pallas_call(
        conv_relu_pool_kernel,
        out_shape=jax.ShapeDtypeStruct((N * H2, W2 * Cout), jnp.bfloat16),
        grid_spec=pltpu.PrefetchScalarGridSpec(
            num_scalar_prefetch=0,
            grid=(N // G,),                          # >= 2 steps -> both v7x TCs work
            in_specs=[
                pl.BlockSpec((4, G * H2, WC), lambda n: (0, n, 0)),
                pl.BlockSpec(m.shape, lambda n: (0, 0, 0)),
                pl.BlockSpec(b_big.shape, lambda n: (0, 0)),
            ],
            out_specs=pl.BlockSpec((G * H2, W2 * Cout), lambda n: (n, 0)),
        ),
        compiler_params=pltpu.CompilerParams(
            dimension_semantics=("parallel",),
            vmem_limit_bytes=VMEM_LIMIT,
        ),
    )(xs, m, b_big)
    return out.reshape(N, H2, W2, Cout)


def lstm_head(feat, w_ih_T, b_gates, w_hh_T, w_fc_T, b_fc, batch_pad):
    """feat: (T*BP, F) bf16 time-major -> (BP, NCP) f32 logits (padded columns)."""
    TB = feat.shape[0]
    T = TB // batch_pad
    ncp = w_fc_T.shape[1]
    vspec = pl.BlockSpec(memory_space=pltpu.MemorySpace.VMEM)
    return pl.pallas_call(
        lstm_fc_kernel,
        out_shape=jax.ShapeDtypeStruct((batch_pad, ncp), jnp.float32),
        in_specs=[vspec] * 6,
        out_specs=vspec,
        scratch_shapes=[pltpu.VMEM((T, batch_pad, 4 * HIDDEN), jnp.float32)],
        compiler_params=pltpu.CompilerParams(vmem_limit_bytes=VMEM_LIMIT),
    )(feat, w_ih_T, b_gates, w_hh_T, w_fc_T, b_fc)


@jax.jit
def cnn_lstm_forward(params, x):
    """x: (B, T, 3, H, W) float32 — same layout as the PyTorch module."""
    B, T, C, H, W = x.shape
    # Time-major NHWC frame stream: rows of feat/gx are already (t, b) ordered, so no
    # (B,T,4H)->(T,B,4H) transpose is needed before the LSTM.
    frames = x.transpose(1, 0, 3, 4, 2).reshape(T * B, H, W, C)

    y = conv3x3_relu_pool(frames, params["m1"], params["bbig1"])   # (TB, H/2, W/2, 16)
    y = conv3x3_relu_pool(y, params["m2"], params["bbig2"])        # (TB, H/4, W/4, 32)
    feat = y.reshape(T * B, -1)                                    # NHWC-flattened, bf16

    BP = ((B + 7) // 8) * 8                                        # pad batch to 8 sublanes
    if BP != B:
        feat = jnp.pad(feat.reshape(T, B, -1),
                       ((0, 0), (0, BP - B), (0, 0))).reshape(T * BP, -1)

    out = lstm_head(feat, params["w_ih_T"], params["b_gates"],
                    params["w_hh_T"], params["w_fc_T"], params["b_fc"], BP)
    return out[:B, :NUM_CLASSES]


# ----------------------------- parameter preparation -----------------------------

def _build_conv_mats(w_torch, W, cin_pad=None):
    """Banded GEMM matrices for a 3x3 / pad-1 conv acting on rows of a (W+2)*Cin
    lane-flattened, spatially padded NHWC image.  Output columns are ordered
    (w%2, w//2, c_out) so the 2x2 width-pool is a max of the two column halves.
    `cin_pad` zero-pads the input-channel stride (extra rows are zero)."""
    w_np = np.asarray(w_torch, np.float32)           # (Cout, Cin, 3, 3) PyTorch layout
    Cout, Cin, KH, KW = w_np.shape
    if cin_pad is None:
        cin_pad = Cin
    W2 = W // 2
    m = np.zeros((KH, (W + 2) * cin_pad, W * Cout), np.float32)
    for kh in range(KH):
        for w in range(W):
            col0 = (w % 2) * (W2 * Cout) + (w // 2) * Cout
            for kw in range(KW):
                row0 = (w + kw) * cin_pad
                m[kh, row0:row0 + Cin, col0:col0 + Cout] = w_np[:, :, kh, kw].T
    return jnp.asarray(m, jnp.bfloat16)


def prepare_params(raw, H, W):
    """One-time host-side repack of PyTorch-layout weights into kernel layout."""
    W2 = W // 2
    H4, W4 = H // 4, W // 4
    c2 = raw["w2"].shape[0]
    # Permute w_ih columns from NCHW flatten (c, h, w) to NHWC flatten (h, w, c).
    w_ih_nhwc = (raw["w_ih"].reshape(4 * HIDDEN, c2, H4, W4)
                 .transpose(0, 2, 3, 1).reshape(4 * HIDDEN, H4 * W4 * c2))
    # Lane-dense fc head: pad output columns to a multiple of 128.
    nc = raw["w_fc"].shape[0]
    ncp = ((nc + 127) // 128) * 128
    w_fc_p = np.zeros((HIDDEN, ncp), np.float32)
    w_fc_p[:, :nc] = np.asarray(raw["w_fc"], np.float32).T
    b_fc_p = np.zeros((1, ncp), np.float32)
    b_fc_p[0, :nc] = np.asarray(raw["b_fc"], np.float32)
    return {
        "m1": _build_conv_mats(raw["w1"], W, cin_pad=4),                  # Cin 3 -> 4
        "bbig1": jnp.tile(raw["b1"], W).reshape(1, -1).astype(jnp.float32),
        "m2": _build_conv_mats(raw["w2"], W2),
        "bbig2": jnp.tile(raw["b2"], W2).reshape(1, -1).astype(jnp.float32),
        "w_ih_T": w_ih_nhwc.T.astype(jnp.bfloat16),                       # (F, 4H)
        "b_gates": (raw["b_ih"] + raw["b_hh"]).reshape(1, -1).astype(jnp.float32),
        "w_hh_T": raw["w_hh"].T.astype(jnp.float32),                      # (H, 4H) f32
        "w_fc_T": jnp.asarray(w_fc_p),                                    # (H, 128) f32
        "b_fc": jnp.asarray(b_fc_p),                                      # (1, 128) f32
    }


def init_params(key, cnn_output_size, num_classes):
    ks = jax.random.split(key, 10)
    s = 0.1
    return {
        "w1": s * jax.random.normal(ks[0], (16, 3, 3, 3), jnp.float32),
        "b1": s * jax.random.normal(ks[1], (16,), jnp.float32),
        "w2": s * jax.random.normal(ks[2], (32, 16, 3, 3), jnp.float32),
        "b2": s * jax.random.normal(ks[3], (32,), jnp.float32),
        "w_ih": s * jax.random.normal(ks[4], (4 * HIDDEN, cnn_output_size), jnp.float32),
        "b_ih": s * jax.random.normal(ks[5], (4 * HIDDEN,), jnp.float32),
        "w_hh": s * jax.random.normal(ks[6], (4 * HIDDEN, HIDDEN), jnp.float32),
        "b_hh": s * jax.random.normal(ks[7], (4 * HIDDEN,), jnp.float32),
        "w_fc": s * jax.random.normal(ks[8], (num_classes, HIDDEN), jnp.float32),
        "b_fc": s * jax.random.normal(ks[9], (num_classes,), jnp.float32),
    }


# ----------------------------- pure-JAX reference -----------------------------

def reference_forward(raw, x):
    B, T, C, H, W = x.shape
    z = x.reshape(B * T, C, H, W)

    def conv_relu(z, w, b):
        z = jax.lax.conv_general_dilated(z, w, (1, 1), "SAME",
                                         dimension_numbers=("NCHW", "OIHW", "NCHW"))
        return jax.nn.relu(z + b[None, :, None, None])

    def pool(z):
        n, c, h, w = z.shape
        return z.reshape(n, c, h // 2, 2, w // 2, 2).max(axis=(3, 5))

    z = pool(conv_relu(z, raw["w1"], raw["b1"]))
    z = pool(conv_relu(z, raw["w2"], raw["b2"]))
    feat = z.reshape(B, T, -1)                      # NCHW flatten (matches torch .view)

    h = jnp.zeros((B, HIDDEN), jnp.float32)
    c = jnp.zeros((B, HIDDEN), jnp.float32)
    for t in range(T):
        gates = (feat[:, t] @ raw["w_ih"].T + raw["b_ih"]
                 + h @ raw["w_hh"].T + raw["b_hh"])
        i, f, g, o = jnp.split(gates, 4, axis=-1)
        c = jax.nn.sigmoid(f) * c + jax.nn.sigmoid(i) * jnp.tanh(g)
        h = jax.nn.sigmoid(o) * jnp.tanh(c)
    return h @ raw["w_fc"].T + raw["b_fc"]


if __name__ == "__main__":
    B, T, C, H, W = 2, 4, 3, 16, 16
    cnn_output_size = 32 * (H // 4) * (W // 4)          # 512

    key = jax.random.PRNGKey(0)
    k_x, k_p = jax.random.split(key)
    x = jax.random.normal(k_x, (B, T, C, H, W), jnp.float32)
    raw = init_params(k_p, cnn_output_size, NUM_CLASSES)
    params = prepare_params(raw, H, W)                  # one-time host-side repack

    logits = cnn_lstm_forward(params, x)
    jax.block_until_ready(logits)
    assert logits.shape == (B, NUM_CLASSES) and logits.dtype == jnp.float32

    ref = reference_forward(raw, x)
    err = float(jnp.max(jnp.abs(logits - ref)))
    assert err < 0.1, f"mismatch vs reference: max abs err = {err}"
    print("KERNEL_OK")
</pallas_src>

<mosaic_0001>
module attributes {stable_mosaic.version = 11 : i64} {
  func.func @conv_relu_pool_kernel(%arg0: i32, %arg1: memref<4x32x72xbf16, #tpu.memory_space<vmem>>, %arg2: memref<3x72x256xbf16, #tpu.memory_space<vmem>>, %arg3: memref<1x256xf32, #tpu.memory_space<vmem>>, %arg4: memref<32x128xbf16, #tpu.memory_space<vmem>>) attributes {dimension_semantics = [#tpu.dimension_semantics<parallel>], iteration_bounds = array<i64: 2>, scalar_prefetch = 0 : i64, scratch_operands = 0 : i64, tpu.core_type = #tpu.core_type<tc>, window_params = [{transform_indices = @transform_0, window_bounds = array<i64: 4, 32, 72>}, {pipeline_mode = #tpu.pipeline_mode<synchronous>, transform_indices = @transform_1, window_bounds = array<i64: 3, 72, 256>}, {pipeline_mode = #tpu.pipeline_mode<synchronous>, transform_indices = @transform_2, window_bounds = array<i64: 1, 256>}, {transform_indices = @transform_3, window_bounds = array<i64: 32, 128>}]} {
    %c0 = arith.constant 0 : index
    %c0_0 = arith.constant 0 : index
    %0 = vector.load %arg3[%c0, %c0_0] : memref<1x256xf32, #tpu.memory_space<vmem>>, vector<1x256xf32>
    %c0_1 = arith.constant 0 : index
    %c0_2 = arith.constant 0 : index
    %c0_3 = arith.constant 0 : index
    %1 = vector.load %arg1[%c0_1, %c0_2, %c0_3] : memref<4x32x72xbf16, #tpu.memory_space<vmem>>, vector<1x32x72xbf16>
    %2 = vector.shape_cast %1 : vector<1x32x72xbf16> to vector<32x72xbf16>
    %c0_4 = arith.constant 0 : index
    %c0_5 = arith.constant 0 : index
    %c0_6 = arith.constant 0 : index
    %3 = vector.load %arg2[%c0_4, %c0_5, %c0_6] : memref<3x72x256xbf16, #tpu.memory_space<vmem>>, vector<1x72x256xbf16>
    %4 = vector.shape_cast %3 : vector<1x72x256xbf16> to vector<72x256xbf16>
    %cst = arith.constant dense<0.000000e+00> : vector<32x256xf32>
    %5 = tpu.matmul %2, %4, %cst {dimension_numbers = #tpu.dot_dimension_numbers<[1], [0], [0], [1], [0, 0, 1, 1], [], []>} : vector<32x72xbf16>, vector<72x256xbf16>, vector<32x256xf32> -> vector<32x256xf32>
    %c1 = arith.constant 1 : index
    %c0_7 = arith.constant 0 : index
    %c0_8 = arith.constant 0 : index
    %6 = vector.load %arg1[%c1, %c0_7, %c0_8] : memref<4x32x72xbf16, #tpu.memory_space<vmem>>, vector<1x32x72xbf16>
    %7 = vector.shape_cast %6 : vector<1x32x72xbf16> to vector<32x72xbf16>
    %c1_9 = arith.constant 1 : index
    %c0_10 = arith.constant 0 : index
    %c0_11 = arith.constant 0 : index
    %8 = vector.load %arg2[%c1_9, %c0_10, %c0_11] : memref<3x72x256xbf16, #tpu.memory_space<vmem>>, vector<1x72x256xbf16>
    %9 = vector.shape_cast %8 : vector<1x72x256xbf16> to vector<72x256xbf16>
    %cst_12 = arith.constant dense<0.000000e+00> : vector<32x256xf32>
    %10 = tpu.matmul %7, %9, %cst_12 {dimension_numbers = #tpu.dot_dimension_numbers<[1], [0], [0], [1], [0, 0, 1, 1], [], []>} : vector<32x72xbf16>, vector<72x256xbf16>, vector<32x256xf32> -> vector<32x256xf32>
    %11 = arith.addf %5, %10 : vector<32x256xf32>
    %c2 = arith.constant 2 : index
    %c0_13 = arith.constant 0 : index
    %c0_14 = arith.constant 0 : index
    %12 = vector.load %arg1[%c2, %c0_13, %c0_14] : memref<4x32x72xbf16, #tpu.memory_space<vmem>>, vector<1x32x72xbf16>
    %13 = vector.shape_cast %12 : vector<1x32x72xbf16> to vector<32x72xbf16>
    %c2_15 = arith.constant 2 : index
    %c0_16 = arith.constant 0 : index
    %c0_17 = arith.constant 0 : index
    %14 = vector.load %arg2[%c2_15, %c0_16, %c0_17] : memref<3x72x256xbf16, #tpu.memory_space<vmem>>, vector<1x72x256xbf16>
    %15 = vector.shape_cast %14 : vector<1x72x256xbf16> to vector<72x256xbf16>
    %cst_18 = arith.constant dense<0.000000e+00> : vector<32x256xf32>
    %16 = tpu.matmul %13, %15, %cst_18 {dimension_numbers = #tpu.dot_dimension_numbers<[1], [0], [0], [1], [0, 0, 1, 1], [], []>} : vector<32x72xbf16>, vector<72x256xbf16>, vector<32x256xf32> -> vector<32x256xf32>
    %17 = arith.addf %11, %16 : vector<32x256xf32>
    %18 = vector.broadcast %0 : vector<1x256xf32> to vector<32x256xf32>
    %19 = arith.addf %17, %18 : vector<32x256xf32>
    %cst_19 = arith.constant 0.000000e+00 : f32
    %20 = vector.broadcast %cst_19 : f32 to vector<32x256xf32>
    %21 = arith.maximumf %19, %20 : vector<32x256xf32>
    %22 = vector.extract_strided_slice %21 {offsets = [0, 0], sizes = [32, 128], strides = [1, 1]} : vector<32x256xf32> to vector<32x128xf32>
    %23 = vector.extract_strided_slice %21 {offsets = [0, 128], sizes = [32, 128], strides = [1, 1]} : vector<32x256xf32> to vector<32x128xf32>
    %24 = arith.maximumf %22, %23 : vector<32x128xf32>
    %c1_20 = arith.constant 1 : index
    %c0_21 = arith.constant 0 : index
    %c0_22 = arith.constant 0 : index
    %25 = vector.load %arg1[%c1_20, %c0_21, %c0_22] : memref<4x32x72xbf16, #tpu.memory_space<vmem>>, vector<1x32x72xbf16>
    %26 = vector.shape_cast %25 : vector<1x32x72xbf16> to vector<32x72xbf16>
    %c0_23 = arith.constant 0 : index
    %c0_24 = arith.constant 0 : index
    %c0_25 = arith.constant 0 : index
    %27 = vector.load %arg2[%c0_23, %c0_24, %c0_25] : memref<3x72x256xbf16, #tpu.memory_space<vmem>>, vector<1x72x256xbf16>
    %28 = vector.shape_cast %27 : vector<1x72x256xbf16> to vector<72x256xbf16>
    %cst_26 = arith.constant dense<0.000000e+00> : vector<32x256xf32>
    %29 = tpu.matmul %26, %28, %cst_26 {dimension_numbers = #tpu.dot_dimension_numbers<[1], [0], [0], [1], [0, 0, 1, 1], [], []>} : vector<32x72xbf16>, vector<72x256xbf16>, vector<32x256xf32> -> vector<32x256xf32>
    %c2_27 = arith.constant 2 : index
    %c0_28 = arith.constant 0 : index
    %c0_29 = arith.constant 0 : index
    %30 = vector.load %arg1[%c2_27, %c0_28, %c0_29] : memref<4x32x72xbf16, #tpu.memory_space<vmem>>, vector<1x32x72xbf16>
    %31 = vector.shape_cast %30 : vector<1x32x72xbf16> to vector<32x72xbf16>
    %c1_30 = arith.constant 1 : index
    %c0_31 = arith.constant 0 : index
    %c0_32 = arith.constant 0 : index
    %32 = vector.load %arg2[%c1_30, %c0_31, %c0_32] : memref<3x72x256xbf16, #tpu.memory_space<vmem>>, vector<1x72x256xbf16>
    %33 = vector.shape_cast %32 : vector<1x72x256xbf16> to vector<72x256xbf16>
    %cst_33 = arith.constant dense<0.000000e+00> : vector<32x256xf32>
    %34 = tpu.matmul %31, %33, %cst_33 {dimension_numbers = #tpu.dot_dimension_numbers<[1], [0], [0], [1], [0, 0, 1, 1], [], []>} : vector<32x72xbf16>, vector<72x256xbf16>, vector<32x256xf32> -> vector<32x256xf32>
    %35 = arith.addf %29, %34 : vector<32x256xf32>
    %c3 = arith.constant 3 : index
    %c0_34 = arith.constant 0 : index
    %c0_35 = arith.constant 0 : index
    %36 = vector.load %arg1[%c3, %c0_34, %c0_35] : memref<4x32x72xbf16, #tpu.memory_space<vmem>>, vector<1x32x72xbf16>
    %37 = vector.shape_cast %36 : vector<1x32x72xbf16> to vector<32x72xbf16>
    %c2_36 = arith.constant 2 : index
    %c0_37 = arith.constant 0 : index
    %c0_38 = arith.constant 0 : index
    %38 = vector.load %arg2[%c2_36, %c0_37, %c0_38] : memref<3x72x256xbf16, #tpu.memory_space<vmem>>, vector<1x72x256xbf16>
    %39 = vector.shape_cast %38 : vector<1x72x256xbf16> to vector<72x256xbf16>
    %cst_39 = arith.constant dense<0.000000e+00> : vector<32x256xf32>
    %40 = tpu.matmul %37, %39, %cst_39 {dimension_numbers = #tpu.dot_dimension_numbers<[1], [0], [0], [1], [0, 0, 1, 1], [], []>} : vector<32x72xbf16>, vector<72x256xbf16>, vector<32x256xf32> -> vector<32x256xf32>
    %41 = arith.addf %35, %40 : vector<32x256xf32>
    %42 = vector.broadcast %0 : vector<1x256xf32> to vector<32x256xf32>
    %43 = arith.addf %41, %42 : vector<32x256xf32>
    %cst_40 = arith.constant 0.000000e+00 : f32
    %44 = vector.broadcast %cst_40 : f32 to vector<32x256xf32>
    %45 = arith.maximumf %43, %44 : vector<32x256xf32>
    %46 = vector.extract_strided_slice %45 {offsets = [0, 0], sizes = [32, 128], strides = [1, 1]} : vector<32x256xf32> to vector<32x128xf32>
    %47 = vector.extract_strided_slice %45 {offsets = [0, 128], sizes = [32, 128], strides = [1, 1]} : vector<32x256xf32> to vector<32x128xf32>
    %48 = arith.maximumf %46, %47 : vector<32x128xf32>
    %49 = arith.maximumf %24, %48 : vector<32x128xf32>
    %50 = arith.truncf %49 : vector<32x128xf32> to vector<32x128xbf16>
    %c0_41 = arith.constant 0 : index
    %c0_42 = arith.constant 0 : index
    %51 = vector.load %arg4[%c0_41, %c0_42] : memref<32x128xbf16, #tpu.memory_space<vmem>>, vector<32x128xbf16>
    tpu.vector_store %arg4[%c0_41, %c0_42], %50 {strides = array<i32>} : memref<32x128xbf16, #tpu.memory_space<vmem>>, vector<32x128xbf16>,
    return
  }
  func.func @transform_0(%arg0: i32) -> (i32, i32, i32) {
    %c0_i32 = arith.constant 0 : i32
    %c0_i32_0 = arith.constant 0 : i32
    %c0_i32_1 = arith.constant 0 : i32
    return %c0_i32, %arg0, %c0_i32_0 : i32, i32, i32
  }
  func.func @transform_1(%arg0: i32) -> (i32, i32, i32) {
    %c0_i32 = arith.constant 0 : i32
    %c0_i32_0 = arith.constant 0 : i32
    %c0_i32_1 = arith.constant 0 : i32
    %c0_i32_2 = arith.constant 0 : i32
    return %c0_i32, %c0_i32_0, %c0_i32_1 : i32, i32, i32
  }
  func.func @transform_2(%arg0: i32) -> (i32, i32) {
    %c0_i32 = arith.constant 0 : i32
    %c0_i32_0 = arith.constant 0 : i32
    %c0_i32_1 = arith.constant 0 : i32
    return %c0_i32, %c0_i32_0 : i32, i32
  }
  func.func @transform_3(%arg0: i32) -> (i32, i32) {
    %c0_i32 = arith.constant 0 : i32
    %c0_i32_0 = arith.constant 0 : i32
    return %arg0, %c0_i32 : i32, i32
  }
}

module attributes {stable_mosaic.version = 11 : i64} {
  func.func @conv_relu_pool_kernel(%arg0: i32, %arg1: memref<4x16x160xbf16, #tpu.memory_space<vmem>>, %arg2: memref<3x160x256xbf16, #tpu.memory_space<vmem>>, %arg3: memref<1x256xf32, #tpu.memory_space<vmem>>, %arg4: memref<16x128xbf16, #tpu.memory_space<vmem>>) attributes {dimension_semantics = [#tpu.dimension_semantics<parallel>], iteration_bounds = array<i64: 2>, scalar_prefetch = 0 : i64, scratch_operands = 0 : i64, tpu.core_type = #tpu.core_type<tc>, window_params = [{transform_indices = @transform_0, window_bounds = array<i64: 4, 16, 160>}, {pipeline_mode = #tpu.pipeline_mode<synchronous>, transform_indices = @transform_1, window_bounds = array<i64: 3, 160, 256>}, {pipeline_mode = #tpu.pipeline_mode<synchronous>, transform_indices = @transform_2, window_bounds = array<i64: 1, 256>}, {transform_indices = @transform_3, window_bounds = array<i64: 16, 128>}]} {
    %c0 = arith.constant 0 : index
    %c0_0 = arith.constant 0 : index
    %0 = vector.load %arg3[%c0, %c0_0] : memref<1x256xf32, #tpu.memory_space<vmem>>, vector<1x256xf32>
    %c0_1 = arith.constant 0 : index
    %c0_2 = arith.constant 0 : index
    %c0_3 = arith.constant 0 : index
    %1 = vector.load %arg1[%c0_1, %c0_2, %c0_3] : memref<4x16x160xbf16, #tpu.memory_space<vmem>>, vector<1x16x160xbf16>
    %2 = vector.shape_cast %1 : vector<1x16x160xbf16> to vector<16x160xbf16>
    %c0_4 = arith.constant 0 : index
    %c0_5 = arith.constant 0 : index
    %c0_6 = arith.constant 0 : index
    %3 = vector.load %arg2[%c0_4, %c0_5, %c0_6] : memref<3x160x256xbf16, #tpu.memory_space<vmem>>, vector<1x160x256xbf16>
    %4 = vector.shape_cast %3 : vector<1x160x256xbf16> to vector<160x256xbf16>
    %cst = arith.constant dense<0.000000e+00> : vector<16x256xf32>
    %5 = tpu.matmul %2, %4, %cst {dimension_numbers = #tpu.dot_dimension_numbers<[1], [0], [0], [1], [0, 0, 1, 1], [], []>} : vector<16x160xbf16>, vector<160x256xbf16>, vector<16x256xf32> -> vector<16x256xf32>
    %c1 = arith.constant 1 : index
    %c0_7 = arith.constant 0 : index
    %c0_8 = arith.constant 0 : index
    %6 = vector.load %arg1[%c1, %c0_7, %c0_8] : memref<4x16x160xbf16, #tpu.memory_space<vmem>>, vector<1x16x160xbf16>
    %7 = vector.shape_cast %6 : vector<1x16x160xbf16> to vector<16x160xbf16>
    %c1_9 = arith.constant 1 : index
    %c0_10 = arith.constant 0 : index
    %c0_11 = arith.constant 0 : index
    %8 = vector.load %arg2[%c1_9, %c0_10, %c0_11] : memref<3x160x256xbf16, #tpu.memory_space<vmem>>, vector<1x160x256xbf16>
    %9 = vector.shape_cast %8 : vector<1x160x256xbf16> to vector<160x256xbf16>
    %cst_12 = arith.constant dense<0.000000e+00> : vector<16x256xf32>
    %10 = tpu.matmul %7, %9, %cst_12 {dimension_numbers = #tpu.dot_dimension_numbers<[1], [0], [0], [1], [0, 0, 1, 1], [], []>} : vector<16x160xbf16>, vector<160x256xbf16>, vector<16x256xf32> -> vector<16x256xf32>
    %11 = arith.addf %5, %10 : vector<16x256xf32>
    %c2 = arith.constant 2 : index
    %c0_13 = arith.constant 0 : index
    %c0_14 = arith.constant 0 : index
    %12 = vector.load %arg1[%c2, %c0_13, %c0_14] : memref<4x16x160xbf16, #tpu.memory_space<vmem>>, vector<1x16x160xbf16>
    %13 = vector.shape_cast %12 : vector<1x16x160xbf16> to vector<16x160xbf16>
    %c2_15 = arith.constant 2 : index
    %c0_16 = arith.constant 0 : index
    %c0_17 = arith.constant 0 : index
    %14 = vector.load %arg2[%c2_15, %c0_16, %c0_17] : memref<3x160x256xbf16, #tpu.memory_space<vmem>>, vector<1x160x256xbf16>
    %15 = vector.shape_cast %14 : vector<1x160x256xbf16> to vector<160x256xbf16>
    %cst_18 = arith.constant dense<0.000000e+00> : vector<16x256xf32>
    %16 = tpu.matmul %13, %15, %cst_18 {dimension_numbers = #tpu.dot_dimension_numbers<[1], [0], [0], [1], [0, 0, 1, 1], [], []>} : vector<16x160xbf16>, vector<160x256xbf16>, vector<16x256xf32> -> vector<16x256xf32>
    %17 = arith.addf %11, %16 : vector<16x256xf32>
    %18 = vector.broadcast %0 : vector<1x256xf32> to vector<16x256xf32>
    %19 = arith.addf %17, %18 : vector<16x256xf32>
    %cst_19 = arith.constant 0.000000e+00 : f32
    %20 = vector.broadcast %cst_19 : f32 to vector<16x256xf32>
    %21 = arith.maximumf %19, %20 : vector<16x256xf32>
    %22 = vector.extract_strided_slice %21 {offsets = [0, 0], sizes = [16, 128], strides = [1, 1]} : vector<16x256xf32> to vector<16x128xf32>
    %23 = vector.extract_strided_slice %21 {offsets = [0, 128], sizes = [16, 128], strides = [1, 1]} : vector<16x256xf32> to vector<16x128xf32>
    %24 = arith.maximumf %22, %23 : vector<16x128xf32>
    %c1_20 = arith.constant 1 : index
    %c0_21 = arith.constant 0 : index
    %c0_22 = arith.constant 0 : index
    %25 = vector.load %arg1[%c1_20, %c0_21, %c0_22] : memref<4x16x160xbf16, #tpu.memory_space<vmem>>, vector<1x16x160xbf16>
    %26 = vector.shape_cast %25 : vector<1x16x160xbf16> to vector<16x160xbf16>
    %c0_23 = arith.constant 0 : index
    %c0_24 = arith.constant 0 : index
    %c0_25 = arith.constant 0 : index
    %27 = vector.load %arg2[%c0_23, %c0_24, %c0_25] : memref<3x160x256xbf16, #tpu.memory_space<vmem>>, vector<1x160x256xbf16>
    %28 = vector.shape_cast %27 : vector<1x160x256xbf16> to vector<160x256xbf16>
    %cst_26 = arith.constant dense<0.000000e+00> : vector<16x256xf32>
    %29 = tpu.matmul %26, %28, %cst_26 {dimension_numbers = #tpu.dot_dimension_numbers<[1], [0], [0], [1], [0, 0, 1, 1], [], []>} : vector<16x160xbf16>, vector<160x256xbf16>, vector<16x256xf32> -> vector<16x256xf32>
    %c2_27 = arith.constant 2 : index
    %c0_28 = arith.constant 0 : index
    %c0_29 = arith.constant 0 : index
    %30 = vector.load %arg1[%c2_27, %c0_28, %c0_29] : memref<4x16x160xbf16, #tpu.memory_space<vmem>>, vector<1x16x160xbf16>
    %31 = vector.shape_cast %30 : vector<1x16x160xbf16> to vector<16x160xbf16>
    %c1_30 = arith.constant 1 : index
    %c0_31 = arith.constant 0 : index
    %c0_32 = arith.constant 0 : index
    %32 = vector.load %arg2[%c1_30, %c0_31, %c0_32] : memref<3x160x256xbf16, #tpu.memory_space<vmem>>, vector<1x160x256xbf16>
    %33 = vector.shape_cast %32 : vector<1x160x256xbf16> to vector<160x256xbf16>
    %cst_33 = arith.constant dense<0.000000e+00> : vector<16x256xf32>
    %34 = tpu.matmul %31, %33, %cst_33 {dimension_numbers = #tpu.dot_dimension_numbers<[1], [0], [0], [1], [0, 0, 1, 1], [], []>} : vector<16x160xbf16>, vector<160x256xbf16>, vector<16x256xf32> -> vector<16x256xf32>
    %35 = arith.addf %29, %34 : vector<16x256xf32>
    %c3 = arith.constant 3 : index
    %c0_34 = arith.constant 0 : index
    %c0_35 = arith.constant 0 : index
    %36 = vector.load %arg1[%c3, %c0_34, %c0_35] : memref<4x16x160xbf16, #tpu.memory_space<vmem>>, vector<1x16x160xbf16>
    %37 = vector.shape_cast %36 : vector<1x16x160xbf16> to vector<16x160xbf16>
    %c2_36 = arith.constant 2 : index
    %c0_37 = arith.constant 0 : index
    %c0_38 = arith.constant 0 : index
    %38 = vector.load %arg2[%c2_36, %c0_37, %c0_38] : memref<3x160x256xbf16, #tpu.memory_space<vmem>>, vector<1x160x256xbf16>
    %39 = vector.shape_cast %38 : vector<1x160x256xbf16> to vector<160x256xbf16>
    %cst_39 = arith.constant dense<0.000000e+00> : vector<16x256xf32>
    %40 = tpu.matmul %37, %39, %cst_39 {dimension_numbers = #tpu.dot_dimension_numbers<[1], [0], [0], [1], [0, 0, 1, 1], [], []>} : vector<16x160xbf16>, vector<160x256xbf16>, vector<16x256xf32> -> vector<16x256xf32>
    %41 = arith.addf %35, %40 : vector<16x256xf32>
    %42 = vector.broadcast %0 : vector<1x256xf32> to vector<16x256xf32>
    %43 = arith.addf %41, %42 : vector<16x256xf32>
    %cst_40 = arith.constant 0.000000e+00 : f32
    %44 = vector.broadcast %cst_40 : f32 to vector<16x256xf32>
    %45 = arith.maximumf %43, %44 : vector<16x256xf32>
    %46 = vector.extract_strided_slice %45 {offsets = [0, 0], sizes = [16, 128], strides = [1, 1]} : vector<16x256xf32> to vector<16x128xf32>
    %47 = vector.extract_strided_slice %45 {offsets = [0, 128], sizes = [16, 128], strides = [1, 1]} : vector<16x256xf32> to vector<16x128xf32>
    %48 = arith.maximumf %46, %47 : vector<16x128xf32>
    %49 = arith.maximumf %24, %48 : vector<16x128xf32>
    %50 = arith.truncf %49 : vector<16x128xf32> to vector<16x128xbf16>
    %c0_41 = arith.constant 0 : index
    %c0_42 = arith.constant 0 : index
    %51 = vector.load %arg4[%c0_41, %c0_42] : memref<16x128xbf16, #tpu.memory_space<vmem>>, vector<16x128xbf16>
    tpu.vector_store %arg4[%c0_41, %c0_42], %50 {strides = array<i32>} : memref<16x128xbf16, #tpu.memory_space<vmem>>, vector<16x128xbf16>,
    return
  }
  func.func @transform_0(%arg0: i32) -> (i32, i32, i32) {
    %c0_i32 = arith.constant 0 : i32
    %c0_i32_0 = arith.constant 0 : i32
    %c0_i32_1 = arith.constant 0 : i32
    return %c0_i32, %arg0, %c0_i32_0 : i32, i32, i32
  }
  func.func @transform_1(%arg0: i32) -> (i32, i32, i32) {
    %c0_i32 = arith.constant 0 : i32
    %c0_i32_0 = arith.constant 0 : i32
    %c0_i32_1 = arith.constant 0 : i32
    %c0_i32_2 = arith.constant 0 : i32
    return %c0_i32, %c0_i32_0, %c0_i32_1 : i32, i32, i32
  }
  func.func @transform_2(%arg0: i32) -> (i32, i32) {
    %c0_i32 = arith.constant 0 : i32
    %c0_i32_0 = arith.constant 0 : i32
    %c0_i32_1 = arith.constant 0 : i32
    return %c0_i32, %c0_i32_0 : i32, i32
  }
  func.func @transform_3(%arg0: i32) -> (i32, i32) {
    %c0_i32 = arith.constant 0 : i32
    %c0_i32_0 = arith.constant 0 : i32
    return %arg0, %c0_i32 : i32, i32
  }
}

module attributes {stable_mosaic.version = 11 : i64} {
  func.func @lstm_fc_kernel(%arg0: memref<32x512xbf16, #tpu.memory_space<vmem>>, %arg1: memref<512x512xbf16, #tpu.memory_space<vmem>>, %arg2: memref<1x512xf32, #tpu.memory_space<vmem>>, %arg3: memref<128x512xf32, #tpu.memory_space<vmem>>, %arg4: memref<128x128xf32, #tpu.memory_space<vmem>>, %arg5: memref<1x128xf32, #tpu.memory_space<vmem>>, %arg6: memref<8x128xf32, #tpu.memory_space<vmem>>, %arg7: memref<4x8x512xf32, #tpu.memory_space<vmem>>) attributes {dimension_semantics = [], scalar_prefetch = 0 : i64, scratch_operands = 1 : i64, tpu.core_type = #tpu.core_type<tc>} {
    %c0 = arith.constant 0 : index
    %c0_0 = arith.constant 0 : index
    %0 = vector.load %arg0[%c0, %c0_0] : memref<32x512xbf16, #tpu.memory_space<vmem>>, vector<32x512xbf16>
    %c0_1 = arith.constant 0 : index
    %c0_2 = arith.constant 0 : index
    %1 = vector.load %arg1[%c0_1, %c0_2] : memref<512x512xbf16, #tpu.memory_space<vmem>>, vector<512x512xbf16>
    %cst = arith.constant dense<0.000000e+00> : vector<32x512xf32>
    %2 = tpu.matmul %0, %1, %cst {dimension_numbers = #tpu.dot_dimension_numbers<[1], [0], [0], [1], [0, 0, 1, 1], [], []>} : vector<32x512xbf16>, vector<512x512xbf16>, vector<32x512xf32> -> vector<32x512xf32>
    %c0_3 = arith.constant 0 : index
    %c0_4 = arith.constant 0 : index
    %3 = vector.load %arg2[%c0_3, %c0_4] : memref<1x512xf32, #tpu.memory_space<vmem>>, vector<1x512xf32>
    %4 = vector.broadcast %3 : vector<1x512xf32> to vector<32x512xf32>
    %5 = arith.addf %2, %4 : vector<32x512xf32>
    %6 = vector.shape_cast %5 : vector<32x512xf32> to vector<4x8x512xf32>
    %c0_5 = arith.constant 0 : index
    %c0_6 = arith.constant 0 : index
    %c0_7 = arith.constant 0 : index
    %7 = vector.load %arg7[%c0_5, %c0_6, %c0_7] : memref<4x8x512xf32, #tpu.memory_space<vmem>>, vector<4x8x512xf32>
    tpu.vector_store %arg7[%c0_5, %c0_6, %c0_7], %6 {strides = array<i32>} : memref<4x8x512xf32, #tpu.memory_space<vmem>>, vector<4x8x512xf32>,
    %cst_8 = arith.constant 0.000000e+00 : f32
    %8 = vector.broadcast %cst_8 : f32 to vector<8x128xf32>
    %c0_i32 = arith.constant 0 : i32
    %9 = arith.index_cast %c0_i32 : i32 to index
    %c0_9 = arith.constant 0 : index
    %c0_10 = arith.constant 0 : index
    %10 = vector.load %arg7[%9, %c0_9, %c0_10] : memref<4x8x512xf32, #tpu.memory_space<vmem>>, vector<1x8x512xf32>
    %11 = vector.shape_cast %10 : vector<1x8x512xf32> to vector<8x512xf32>
    %c0_11 = arith.constant 0 : index
    %c0_12 = arith.constant 0 : index
    %12 = vector.load %arg3[%c0_11, %c0_12] : memref<128x512xf32, #tpu.memory_space<vmem>>, vector<128x512xf32>
    %cst_13 = arith.constant dense<0.000000e+00> : vector<8x512xf32>
    %13 = tpu.matmul %8, %12, %cst_13 {dimension_numbers = #tpu.dot_dimension_numbers<[1], [0], [0], [1], [0, 0, 1, 1], [], []>} : vector<8x128xf32>, vector<128x512xf32>, vector<8x512xf32> -> vector<8x512xf32>
    %14 = arith.addf %11, %13 : vector<8x512xf32>
    %15 = vector.extract_strided_slice %14 {offsets = [0, 0], sizes = [8, 128], strides = [1, 1]} : vector<8x512xf32> to vector<8x128xf32>
    %16 = arith.negf %15 : vector<8x128xf32>
    %17 = math.exp %16 : vector<8x128xf32>
    %cst_14 = arith.constant 1.000000e+00 : f32
    %18 = vector.broadcast %cst_14 : f32 to vector<8x128xf32>
    %19 = arith.addf %18, %17 : vector<8x128xf32>
    %20 = arith.divf %18, %19 : vector<8x128xf32>
    %21 = vector.extract_strided_slice %14 {offsets = [0, 128], sizes = [8, 128], strides = [1, 1]} : vector<8x512xf32> to vector<8x128xf32>
    %22 = arith.negf %21 : vector<8x128xf32>
    %23 = math.exp %22 : vector<8x128xf32>
    %cst_15 = arith.constant 1.000000e+00 : f32
    %24 = vector.broadcast %cst_15 : f32 to vector<8x128xf32>
    %25 = arith.addf %24, %23 : vector<8x128xf32>
    %26 = arith.divf %24, %25 : vector<8x128xf32>
    %27 = vector.extract_strided_slice %14 {offsets = [0, 256], sizes = [8, 128], strides = [1, 1]} : vector<8x512xf32> to vector<8x128xf32>
    %28 = math.tanh %27 : vector<8x128xf32>
    %29 = vector.extract_strided_slice %14 {offsets = [0, 384], sizes = [8, 128], strides = [1, 1]} : vector<8x512xf32> to vector<8x128xf32>
    %30 = arith.negf %29 : vector<8x128xf32>
    %31 = math.exp %30 : vector<8x128xf32>
    %cst_16 = arith.constant 1.000000e+00 : f32
    %32 = vector.broadcast %cst_16 : f32 to vector<8x128xf32>
    %33 = arith.addf %32, %31 : vector<8x128xf32>
    %34 = arith.divf %32, %33 : vector<8x128xf32>
    %35 = arith.mulf %26, %8 : vector<8x128xf32>
    %36 = arith.mulf %20, %28 : vector<8x128xf32>
    %37 = arith.addf %35, %36 : vector<8x128xf32>
    %38 = math.tanh %37 : vector<8x128xf32>
    %39 = arith.mulf %34, %38 : vector<8x128xf32>
    %c1_i32 = arith.constant 1 : i32
    %40 = arith.index_cast %c1_i32 : i32 to index
    %c0_17 = arith.constant 0 : index
    %c0_18 = arith.constant 0 : index
    %41 = vector.load %arg7[%40, %c0_17, %c0_18] : memref<4x8x512xf32, #tpu.memory_space<vmem>>, vector<1x8x512xf32>
    %42 = vector.shape_cast %41 : vector<1x8x512xf32> to vector<8x512xf32>
    %c0_19 = arith.constant 0 : index
    %c0_20 = arith.constant 0 : index
    %43 = vector.load %arg3[%c0_19, %c0_20] : memref<128x512xf32, #tpu.memory_space<vmem>>, vector<128x512xf32>
    %cst_21 = arith.constant dense<0.000000e+00> : vector<8x512xf32>
    %44 = tpu.matmul %39, %43, %cst_21 {dimension_numbers = #tpu.dot_dimension_numbers<[1], [0], [0], [1], [0, 0, 1, 1], [], []>} : vector<8x128xf32>, vector<128x512xf32>, vector<8x512xf32> -> vector<8x512xf32>
    %45 = arith.addf %42, %44 : vector<8x512xf32>
    %46 = vector.extract_strided_slice %45 {offsets = [0, 0], sizes = [8, 128], strides = [1, 1]} : vector<8x512xf32> to vector<8x128xf32>
    %47 = arith.negf %46 : vector<8x128xf32>
    %48 = math.exp %47 : vector<8x128xf32>
    %cst_22 = arith.constant 1.000000e+00 : f32
    %49 = vector.broadcast %cst_22 : f32 to vector<8x128xf32>
    %50 = arith.addf %49, %48 : vector<8x128xf32>
    %51 = arith.divf %49, %50 : vector<8x128xf32>
    %52 = vector.extract_strided_slice %45 {offsets = [0, 128], sizes = [8, 128], strides = [1, 1]} : vector<8x512xf32> to vector<8x128xf32>
    %53 = arith.negf %52 : vector<8x128xf32>
    %54 = math.exp %53 : vector<8x128xf32>
    %cst_23 = arith.constant 1.000000e+00 : f32
    %55 = vector.broadcast %cst_23 : f32 to vector<8x128xf32>
    %56 = arith.addf %55, %54 : vector<8x128xf32>
    %57 = arith.divf %55, %56 : vector<8x128xf32>
    %58 = vector.extract_strided_slice %45 {offsets = [0, 256], sizes = [8, 128], strides = [1, 1]} : vector<8x512xf32> to vector<8x128xf32>
    %59 = math.tanh %58 : vector<8x128xf32>
    %60 = vector.extract_strided_slice %45 {offsets = [0, 384], sizes = [8, 128], strides = [1, 1]} : vector<8x512xf32> to vector<8x128xf32>
    %61 = arith.negf %60 : vector<8x128xf32>
    %62 = math.exp %61 : vector<8x128xf32>
    %cst_24 = arith.constant 1.000000e+00 : f32
    %63 = vector.broadcast %cst_24 : f32 to vector<8x128xf32>
    %64 = arith.addf %63, %62 : vector<8x128xf32>
    %65 = arith.divf %63, %64 : vector<8x128xf32>
    %66 = arith.mulf %57, %37 : vector<8x128xf32>
    %67 = arith.mulf %51, %59 : vector<8x128xf32>
    %68 = arith.addf %66, %67 : vector<8x128xf32>
    %69 = math.tanh %68 : vector<8x128xf32>
    %70 = arith.mulf %65, %69 : vector<8x128xf32>
    %c2_i32 = arith.constant 2 : i32
    %71 = arith.index_cast %c2_i32 : i32 to index
    %c0_25 = arith.constant 0 : index
    %c0_26 = arith.constant 0 : index
    %72 = vector.load %arg7[%71, %c0_25, %c0_26] : memref<4x8x512xf32, #tpu.memory_space<vmem>>, vector<1x8x512xf32>
    %73 = vector.shape_cast %72 : vector<1x8x512xf32> to vector<8x512xf32>
    %c0_27 = arith.constant 0 : index
    %c0_28 = arith.constant 0 : index
    %74 = vector.load %arg3[%c0_27, %c0_28] : memref<128x512xf32, #tpu.memory_space<vmem>>, vector<128x512xf32>
    %cst_29 = arith.constant dense<0.000000e+00> : vector<8x512xf32>
    %75 = tpu.matmul %70, %74, %cst_29 {dimension_numbers = #tpu.dot_dimension_numbers<[1], [0], [0], [1], [0, 0, 1, 1], [], []>} : vector<8x128xf32>, vector<128x512xf32>, vector<8x512xf32> -> vector<8x512xf32>
    %76 = arith.addf %73, %75 : vector<8x512xf32>
    %77 = vector.extract_strided_slice %76 {offsets = [0, 0], sizes = [8, 128], strides = [1, 1]} : vector<8x512xf32> to vector<8x128xf32>
    %78 = arith.negf %77 : vector<8x128xf32>
    %79 = math.exp %78 : vector<8x128xf32>
    %cst_30 = arith.constant 1.000000e+00 : f32
    %80 = vector.broadcast %cst_30 : f32 to vector<8x128xf32>
    %81 = arith.addf %80, %79 : vector<8x128xf32>
    %82 = arith.divf %80, %81 : vector<8x128xf32>
    %83 = vector.extract_strided_slice %76 {offsets = [0, 128], sizes = [8, 128], strides = [1, 1]} : vector<8x512xf32> to vector<8x128xf32>
    %84 = arith.negf %83 : vector<8x128xf32>
    %85 = math.exp %84 : vector<8x128xf32>
    %cst_31 = arith.constant 1.000000e+00 : f32
    %86 = vector.broadcast %cst_31 : f32 to vector<8x128xf32>
    %87 = arith.addf %86, %85 : vector<8x128xf32>
    %88 = arith.divf %86, %87 : vector<8x128xf32>
    %89 = vector.extract_strided_slice %76 {offsets = [0, 256], sizes = [8, 128], strides = [1, 1]} : vector<8x512xf32> to vector<8x128xf32>
    %90 = math.tanh %89 : vector<8x128xf32>
    %91 = vector.extract_strided_slice %76 {offsets = [0, 384], sizes = [8, 128], strides = [1, 1]} : vector<8x512xf32> to vector<8x128xf32>
    %92 = arith.negf %91 : vector<8x128xf32>
    %93 = math.exp %92 : vector<8x128xf32>
    %cst_32 = arith.constant 1.000000e+00 : f32
    %94 = vector.broadcast %cst_32 : f32 to vector<8x128xf32>
    %95 = arith.addf %94, %93 : vector<8x128xf32>
    %96 = arith.divf %94, %95 : vector<8x128xf32>
    %97 = arith.mulf %88, %68 : vector<8x128xf32>
    %98 = arith.mulf %82, %90 : vector<8x128xf32>
    %99 = arith.addf %97, %98 : vector<8x128xf32>
    %100 = math.tanh %99 : vector<8x128xf32>
    %101 = arith.mulf %96, %100 : vector<8x128xf32>
    %c3_i32 = arith.constant 3 : i32
    %102 = arith.index_cast %c3_i32 : i32 to index
    %c0_33 = arith.constant 0 : index
    %c0_34 = arith.constant 0 : index
    %103 = vector.load %arg7[%102, %c0_33, %c0_34] : memref<4x8x512xf32, #tpu.memory_space<vmem>>, vector<1x8x512xf32>
    %104 = vector.shape_cast %103 : vector<1x8x512xf32> to vector<8x512xf32>
    %c0_35 = arith.constant 0 : index
    %c0_36 = arith.constant 0 : index
    %105 = vector.load %arg3[%c0_35, %c0_36] : memref<128x512xf32, #tpu.memory_space<vmem>>, vector<128x512xf32>
    %cst_37 = arith.constant dense<0.000000e+00> : vector<8x512xf32>
    %106 = tpu.matmul %101, %105, %cst_37 {dimension_numbers = #tpu.dot_dimension_numbers<[1], [0], [0], [1], [0, 0, 1, 1], [], []>} : vector<8x128xf32>, vector<128x512xf32>, vector<8x512xf32> -> vector<8x512xf32>
    %107 = arith.addf %104, %106 : vector<8x512xf32>
    %108 = vector.extract_strided_slice %107 {offsets = [0, 0], sizes = [8, 128], strides = [1, 1]} : vector<8x512xf32> to vector<8x128xf32>
    %109 = arith.negf %108 : vector<8x128xf32>
    %110 = math.exp %109 : vector<8x128xf32>
    %cst_38 = arith.constant 1.000000e+00 : f32
    %111 = vector.broadcast %cst_38 : f32 to vector<8x128xf32>
    %112 = arith.addf %111, %110 : vector<8x128xf32>
    %113 = arith.divf %111, %112 : vector<8x128xf32>
    %114 = vector.extract_strided_slice %107 {offsets = [0, 128], sizes = [8, 128], strides = [1, 1]} : vector<8x512xf32> to vector<8x128xf32>
    %115 = arith.negf %114 : vector<8x128xf32>
    %116 = math.exp %115 : vector<8x128xf32>
    %cst_39 = arith.constant 1.000000e+00 : f32
    %117 = vector.broadcast %cst_39 : f32 to vector<8x128xf32>
    %118 = arith.addf %117, %116 : vector<8x128xf32>
    %119 = arith.divf %117, %118 : vector<8x128xf32>
    %120 = vector.extract_strided_slice %107 {offsets = [0, 256], sizes = [8, 128], strides = [1, 1]} : vector<8x512xf32> to vector<8x128xf32>
    %121 = math.tanh %120 : vector<8x128xf32>
    %122 = vector.extract_strided_slice %107 {offsets = [0, 384], sizes = [8, 128], strides = [1, 1]} : vector<8x512xf32> to vector<8x128xf32>
    %123 = arith.negf %122 : vector<8x128xf32>
    %124 = math.exp %123 : vector<8x128xf32>
    %cst_40 = arith.constant 1.000000e+00 : f32
    %125 = vector.broadcast %cst_40 : f32 to vector<8x128xf32>
    %126 = arith.addf %125, %124 : vector<8x128xf32>
    %127 = arith.divf %125, %126 : vector<8x128xf32>
    %128 = arith.mulf %119, %99 : vector<8x128xf32>
    %129 = arith.mulf %113, %121 : vector<8x128xf32>
    %130 = arith.addf %128, %129 : vector<8x128xf32>
    %131 = math.tanh %130 : vector<8x128xf32>
    %132 = arith.mulf %127, %131 : vector<8x128xf32>
    %c4_i32 = arith.constant 4 : i32
    %c0_41 = arith.constant 0 : index
    %c0_42 = arith.constant 0 : index
    %133 = vector.load %arg4[%c0_41, %c0_42] : memref<128x128xf32, #tpu.memory_space<vmem>>, vector<128x128xf32>
    %cst_43 = arith.constant dense<0.000000e+00> : vector<8x128xf32>
    %134 = tpu.matmul %132, %133, %cst_43 {dimension_numbers = #tpu.dot_dimension_numbers<[1], [0], [0], [1], [0, 0, 1, 1], [], []>} : vector<8x128xf32>, vector<128x128xf32>, vector<8x128xf32> -> vector<8x128xf32>
    %c0_44 = arith.constant 0 : index
    %c0_45 = arith.constant 0 : index
    %135 = vector.load %arg5[%c0_44, %c0_45] : memref<1x128xf32, #tpu.memory_space<vmem>>, vector<1x128xf32>
    %136 = vector.broadcast %135 : vector<1x128xf32> to vector<8x128xf32>
    %137 = arith.addf %134, %136 : vector<8x128xf32>
    %c0_46 = arith.constant 0 : index
    %c0_47 = arith.constant 0 : index
    %138 = vector.load %arg6[%c0_46, %c0_47] : memref<8x128xf32, #tpu.memory_space<vmem>>, vector<8x128xf32>
    tpu.vector_store %arg6[%c0_46, %c0_47], %137 {strides = array<i32>} : memref<8x128xf32, #tpu.memory_space<vmem>>, vector<8x128xf32>,
    return
  }
}

</mosaic_0001>

<bundles_post_ra>
// kernel: cnn_lstm_forward.3
= control target key start
LH: loop header
LB: loop body
LE: loop exit
PB: predicated region body
PF: predicated region fallthrough
CT: control target
= control target key end

     0   :  { %s1216_s12 = smov 0   ;;  %s1218_s13 = smov 0   ;;  %s1582_s0 = inlined_call_operand.vmem [shape: bf16[4,64,72], index: 0, kind: input, shape index: {}]   ;;  %s1583_s1 = inlined_call_operand.vmem [shape: bf16[3,72,256], index: 1, kind: input, shape index: {}]   ;;  %s1584_s2 = inlined_call_operand.vmem [shape: f32[1,256], index: 2, kind: input, shape index: {}]   ;;  %s1585_s3 = inlined_call_operand.vmem [shape: bf16[64,128], index: 3, kind: output, shape index: {}]  }
   0x1   :  { %s1220_s14 = smov 0  }
   0x2 LB: > { %s909_s15 = sadd.s32 4294967295, %s1194_s14   ;;  %s1233_s16 = sadd.s32 1, %s1194_s14   ;;  %s1194_s14 = sphi %s1220_s14, %s1588_s14   ;;  %s1190_s13 = sphi %s1218_s13, %s1587_s13   ;;  %s1186_s12 = sphi %s1216_s12, %s1586_s12  }
   0x3   : > { %s17_s17 = ssub.s32 %s1194_s14, %s1233_s16  ;;  %s20_s18 = sadd.s32 1, %s1190_s13 }
   0x4   : > { %p18_p0 = scmp.eq.s32.totalorder %s17_s17, 0  ;;  %p27_p1 = scmp.ne.s32.totalorder %s1190_s13, %s1186_s12 }
   0x5   : > { %p28_p2 = scmp.eq.s32.totalorder %s1194_s14, 0  ;;  %p912_p4 = scmp.ge.s32.totalorder %s1194_s14, 2 }
   0x6   : > { %s1242_s19 = scalar_select %p18_p0, %s1190_s13, %s20_s18  }
   0x7   : > { %p29_p3 = por %p28_p2, %p27_p1  ;;  %127 = sbr.rel (%p912_p4) target bundleno = 24 (0x18), region = 24 }
   0xc   : > { %130 = sbr.rel (!%p29_p3) target bundleno = 24 (0x18), region = 28  ;;  %s132_s20 = sand.u32 (%p29_p3), 1, %s1190_s13  }
   0xd   : > { %s1104_s21 = sshll.u32 (%p29_p3), %s1194_s14, 4  ;;  %s913_s22 = sshll.u32 (%p29_p3), %s132_s20, 6 }
   0xe   : > { %s137_s25 = scalar_lea.vmem (%p29_p3), %s1582_s0, %s1104_s21  ;;  %s134_s26 = scalar_lea.vmem (%p29_p3), [#allocation2], %s913_s22 }
   0xf   : > { %v154_v0 = vld [vmem:[%s137_s25] sm:$0xff] (%p29_p3)   ;;  %v158_v1 = vld [vmem:[%s137_s25 + $0x8] sm:$0xff] (%p29_p3)  }
  0x10   : > { %v162_v2 = vld [vmem:[%s137_s25 + $0x20] sm:$0xff] (%p29_p3)   ;;  %155 = vst [vmem:[%s134_s26] sm:$0xff] (%p29_p3), %v154_v0   ;;  %v166_v3 = vld [vmem:[%s137_s25 + $0x28] sm:$0xff] (%p29_p3)  }
  0x11   : > { %159 = vst [vmem:[%s134_s26 + $0x8] sm:$0xff] %v158_v1   ;;  %v170_v4 = vld [vmem:[%s137_s25 + $0x40] sm:$0xff]   ;;  %v174_v5 = vld [vmem:[%s137_s25 + $0x48] sm:$0xff]  }
  0x12   : > { %163 = vst [vmem:[%s134_s26 + $0x10] sm:$0xff] %v162_v2   ;;  %v178_v6 = vld [vmem:[%s137_s25 + $0x60] sm:$0xff]   ;;  %v182_v7 = vld [vmem:[%s137_s25 + $0x68] sm:$0xff]  }
  0x13   : > { %167 = vst [vmem:[%s134_s26 + $0x18] sm:$0xff] %v166_v3  }
  0x14   : > { %171 = vst [vmem:[%s134_s26 + $0x20] sm:$0xff] %v170_v4  }
  0x15   : > { %175 = vst [vmem:[%s134_s26 + $0x28] sm:$0xff] %v174_v5  }
  0x16   : > { %179 = vst [vmem:[%s134_s26 + $0x30] sm:$0xff] %v178_v6  }
  0x17   : > { %183 = vst [vmem:[%s134_s26 + $0x38] sm:$0xff] %v182_v7  }
  0x18 PF: > { %p916_p5 = scmp.ge.s32.totalorder %s1194_s14, 1  ;;  %p240_p6 = scmp.lt.s32.totalorder %s1194_s14, 3 }
  0x1a   : > { %p241_p7 = pnand %p916_p5, %p240_p6 }
  0x1b   : > { %s247_s25 = sand.u32 (!%p241_p7), 1, %s1186_s12   ;;  %s918_s27 = sshll.u32 (!%p241_p7), %s909_s15, 2 }
  0x1c   : > { %244 = sbr.rel (%p241_p7) target bundleno = 292 (0x124), region = 69  ;;  %s917_s29 = sshll.u32 (!%p241_p7), %s247_s25, 6 }
  0x1d   : > { %s1418_s25 = scalar_lea.vmem (!%p241_p7), [#allocation2], %s917_s29  ;;  %p272_p8 = scmp.lt.s32.totalorder (!%p241_p7), %s918_s27, 7 }
  0x21   : > { %v932_v8 = vld [vmem:[%s1583_s1 + $0x88] sm:$0xff]  ;;  %v291_v9 = vld [vmem:[%s1583_s1 + $0x40] sm:$0xff]  ;;  %vm369_vm0 = vcmask 1043456   ;;  %v967_v14 = vld [vmem:[%s1583_s1 + $0x78] sm:$0xf]  ;;  %vm362_vm1 = vcmask 588800  }
  0x22   : > { %v342_v10 = vunpack.c.l.b16 %v932_v8  ;;  %v343_v11 = vunpack.c.h.b16 %v932_v8  ;;  %v449_v12 = vunpack.c.l.b16 %v291_v9  ;;  %v450_v13 = vunpack.c.h.b16 %v291_v9  ;;  %v1124_v15 = vld [vmem:[%s1583_s1 + $0x7c] sm:$0xf0]  ;;  %v1123_v20 = vld [vmem:[%s1583_s1 + $0x7c] sm:$0xf]  ;;  %v969_v21 = vld [vmem:[%s1583_s1 + $0x80] sm:$0xf0] }
  0x23   : > { %v1011_v22 = vld [vmem:[%s1583_s1 + $0x30] sm:$0xf]  ;;  %v1114_v23 = vld [vmem:[%s1583_s1 + $0x34] sm:$0xf0]  ;;  %v1113_v24 = vld [vmem:[%s1583_s1 + $0x34] sm:$0xf]  ;;  %v1296_v30 = vor.u32 %v1124_v15, %v967_v14  ;;  %v1298_v31 = vor.u32 %v1123_v20, %v969_v21 }
  0x24   : > { %v352_v16 = vpack.c.b16 %v342_v10, %v342_v10  ;;  %v353_v17 = vpack.c.b16 %v343_v11, %v343_v11  ;;  %v459_v18 = vpack.c.b16 %v449_v12, %v449_v12  ;;  %v460_v19 = vpack.c.b16 %v450_v13, %v450_v13  ;;  %v1013_v25 = vld [vmem:[%s1583_s1 + $0x38] sm:$0xf0]  ;;  %v959_v32 = vld [vmem:[%s1583_s1 + $0x68] sm:$0xf]  ;;  %v1122_v33 = vld [vmem:[%s1583_s1 + $0x6c] sm:$0xf0] }
  0x25   : > { %v1308_v34 = vor.u32 %v1114_v23, %v1011_v22  ;;  %v1310_v35 = vor.u32 %v1113_v24, %v1013_v25  ;;  %v1121_v36 = vld [vmem:[%s1583_s1 + $0x6c] sm:$0xf]  ;;  %v961_v37 = vld [vmem:[%s1583_s1 + $0x70] sm:$0xf0]  ;;  %v1003_v38 = vld [vmem:[%s1583_s1 + $0x20] sm:$0xf]  ;;  %v1332_v42 = vor.u32 %v1122_v33, %v959_v32 }
  0x26   : > { %v1283_v26 = vsel %vm369_vm0, %v352_v16, 0  ;;  %v1286_v27 = vsel %vm369_vm0, %v353_v17, 0  ;;  %v1289_v28 = vsel %vm369_vm0, %v459_v18, 0  ;;  %v1292_v29 = vsel %vm369_vm0, %v460_v19, 0  ;;  %v1112_v39 = vld [vmem:[%s1583_s1 + $0x24] sm:$0xf0] }
  0x27   : > { %379 = vmatpush.bf16.msra.mxu0 %v1283_v26  ;;  %398 = vmatpush.bf16.msra.mxu1 %v1286_v27  ;;  %v1111_v40 = vld [vmem:[%s1583_s1 + $0x24] sm:$0xf]  ;;  %v1005_v41 = vld [vmem:[%s1583_s1 + $0x28] sm:$0xf0]  ;;  %v1334_v43 = vor.u32 %v1121_v36, %v961_v37  ;;  %v951_v44 = vld [vmem:[%s1583_s1 + $0x58] sm:$0xf]  ;;  %v1345_v46 = vor.u32 %v1112_v39, %v1003_v38 }
  0x28   : > { %484 = vmatpush.bf16.msra.mxu2 %v1289_v28  ;;  %503 = vmatpush.bf16.msra.mxu3 %v1292_v29  ;;  %v1120_v45 = vld [vmem:[%s1583_s1 + $0x5c] sm:$0xf0]  ;;  %v1347_v47 = vor.u32 %v1111_v40, %v1005_v41  ;;  %v1119_v48 = vld [vmem:[%s1583_s1 + $0x5c] sm:$0xf]  ;;  %v953_v49 = vld [vmem:[%s1583_s1 + $0x60] sm:$0xf0] }
  0x29   : > { %v995_v50 = vld [vmem:[%s1583_s1 + $0x10] sm:$0xf]  ;;  %v1110_v51 = vld [vmem:[%s1583_s1 + $0x14] sm:$0xf0]  ;;  %v1109_v52 = vld [vmem:[%s1583_s1 + $0x14] sm:$0xf]  ;;  %v1372_v55 = vor.u32 %v1120_v45, %v951_v44  ;;  %v1374_v56 = vor.u32 %v1119_v48, %v953_v49 }
  0x2a   : > { %v997_v53 = vld [vmem:[%s1583_s1 + $0x18] sm:$0xf0]  ;;  %v1033_v54 = vld [vmem:[%s1583_s1 + $0xd0] sm:$0xff]  ;;  %v943_v57 = vld [vmem:[%s1583_s1 + $0x48] sm:$0xf]  ;;  %v1387_v60 = vor.u32 %v1110_v51, %v995_v50  ;;  %s1590_s27 = smov (!%p272_p8, %s918_s27), 7 }
  0x2b   : > { %380 = vmatpush.bf16.msra.mxu0 %v1296_v30  ;;  %399 = vmatpush.bf16.msra.mxu1 %v1298_v31  ;;  %v1118_v58 = vld [vmem:[%s1583_s1 + $0x4c] sm:$0xf0]  ;;  %v1117_v59 = vld [vmem:[%s1583_s1 + $0x4c] sm:$0xf]  ;;  %v1389_v61 = vor.u32 %v1109_v52, %v997_v53  ;;  %v945_v62 = vld [vmem:[%s1583_s1 + $0x50] sm:$0xf0]  ;;  %v569_v3 = vunpack.c.l.b16 %v1033_v54  ;;  %v570_v4 = vunpack.c.h.b16 %v1033_v54 }
  0x2c   : > { %485 = vmatpush.bf16.msra.mxu2 %v1308_v34  ;;  %504 = vmatpush.bf16.msra.mxu3 %v1310_v35  ;;  %v987_v63 = vld [vmem:[%s1583_s1] sm:$0xf]  ;;  %v1108_v0 = vld [vmem:[%s1583_s1 + $0x4] sm:$0xf0]  ;;  %v1107_v1 = vld [vmem:[%s1583_s1 + $0x4] sm:$0xf]  ;;  %v1408_v5 = vor.u32 %v1118_v58, %v943_v57  ;;  %v1410_v6 = vor.u32 %v1117_v59, %v945_v62 }
  0x2d   : > { %v989_v2 = vld [vmem:[%s1583_s1 + $0x8] sm:$0xf0]  ;;  %v1414_v7 = vor.u32 %v1108_v0, %v987_v63  ;;  %v579_v9 = vpack.c.b16 %v569_v3, %v569_v3  ;;  %v580_v10 = vpack.c.b16 %v570_v4, %v570_v4  ;;  %v1421_v11 = vld [vmem:[%s1418_s25 + $0x10] sm:$0xff]  ;;  %v1105_v12 = vld [vmem:[%s1418_s25] sm:$0xff]  ;;  %s919_s14 = sshll.u32 %s1590_s27, 2 }
  0x2e   : > { %v1416_v8 = vor.u32 %v1107_v1, %v989_v2  ;;  %v1068_v13 = vld [vmem:[%s1583_s1 + $0xc0] sm:$0xf]  ;;  %v1134_v14 = vld [vmem:[%s1583_s1 + $0xc4] sm:$0xf0]  ;;  %v1133_v17 = vld [vmem:[%s1583_s1 + $0xc4] sm:$0xf]  ;;  %s275_s29 = scalar_lea.vmem %s1585_s3, %s919_s14 }
  0x2f   : > { %381 = vmatpush.bf16.msra.mxu0 %v1332_v42  ;;  %400 = vmatpush.bf16.msra.mxu1 %v1334_v43  ;;  %v596_v15 = vsel %vm369_vm0, %v579_v9, 0  ;;  %v599_v16 = vsel %vm369_vm0, %v580_v10, 0  ;;  %v1070_v18 = vld [vmem:[%s1583_s1 + $0xc8] sm:$0xf0]  ;;  %v1069_v19 = vor.u32 %v1134_v14, %v1068_v13  ;;  %v1060_v21 = vld [vmem:[%s1583_s1 + $0xb0] sm:$0xf] }
  0x30   : > { %486 = vmatpush.bf16.msra.mxu2 %v1345_v46  ;;  %505 = vmatpush.bf16.msra.mxu3 %v1347_v47  ;;  %v1073_v20 = vor.u32 %v1133_v17, %v1070_v18  ;;  %v1132_v22 = vld [vmem:[%s1583_s1 + $0xb4] sm:$0xf0]  ;;  %v1131_v23 = vld [vmem:[%s1583_s1 + $0xb4] sm:$0xf]  ;;  %v1062_v24 = vld [vmem:[%s1583_s1 + $0xb8] sm:$0xf0] }
  0x31   : > { %v1061_v25 = vor.u32 %v1132_v22, %v1060_v21  ;;  %v1054_v32 = vld [vmem:[%s1583_s1 + $0xa8] sm:$0xf0]  ;;  %v1044_v37 = vld [vmem:[%s1583_s1 + $0x90] sm:$0xf]  ;;  %v1128_v38 = vld [vmem:[%s1583_s1 + $0x94] sm:$0xf0] }
  0x32   : > { %v1127_v39 = vld [vmem:[%s1583_s1 + $0x94] sm:$0xf]  ;;  %v1046_v40 = vld [vmem:[%s1583_s1 + $0x98] sm:$0xf0]  ;;  %v1125_v45 = vld [vmem:[%s1418_s25 + $0x20] sm:$0xff] }
  0x33   : > { %382 = vmatpush.bf16.msra.mxu0 %v1372_v55  ;;  %401 = vmatpush.bf16.msra.mxu1 %v1374_v56  ;;  %v1116_v41 = vld [vmem:[%s1418_s25 + $0x18] sm:$0xff]  ;;  %v1049_v44 = vor.u32 %v1127_v39, %v1046_v40  ;;  %v278_v63 = vld [vmem:[%s1584_s2] sm:$0x3] }
  0x34   : > { %487 = vmatpush.bf16.msra.mxu2 %v1387_v60  ;;  %506 = vmatpush.bf16.msra.mxu3 %v1389_v61  ;;  %v1535_v2 = vperm.slane %v278_v63, 0  ;;  %v1537_v3 = vperm.slane %v278_v63, 1 }
  0x37   : > { %383 = vmatpush.bf16.msra.mxu0 %v1408_v5  ;;  %402 = vmatpush.bf16.msra.mxu1 %v1410_v6 }
  0x38   : > { %488 = vmatpush.bf16.msra.mxu2 %v1414_v7  ;;  %507 = vmatpush.bf16.msra.mxu3 %v1416_v8 }
  0x3a   : > { %973 = vmatmul.msk.bf16.vlgmr.msra.gmra.mxu0 %vm362_vm1, %v1421_v11  ;;  %975 = vmatmul.msk.bf16.vlgmr.msra.gmra.mxu1 %vm362_vm1, %v1421_v11 }
  0x3b   : > { %1017 = vmatmul.msk.bf16.vlgmr.msra.gmra.mxu2 %vm362_vm1, %v1105_v12  ;;  %1019 = vmatmul.msk.bf16.vlgmr.msra.gmra.mxu3 %vm362_vm1, %v1105_v12 }
  0x3c   : > { %675 = vmatpush.bf16.msrb.mxu2 %v1283_v26  ;;  %694 = vmatpush.bf16.msrb.mxu3 %v1286_v27  ;;  %v1065_v26 = vor.u32 %v1131_v23, %v1062_v24  ;;  %v1052_v27 = vld [vmem:[%s1583_s1 + $0xa0] sm:$0xf] }
  0x3d   : > { %604 = vmatpush.bf16.msrb.mxu0 %v596_v15  ;;  %623 = vmatpush.bf16.msrb.mxu1 %v599_v16 }
  0x40   : > { %676 = vmatpush.bf16.msrb.mxu2 %v1296_v30  ;;  %695 = vmatpush.bf16.msrb.mxu3 %v1298_v31  ;;  %v1130_v30 = vld [vmem:[%s1583_s1 + $0xa4] sm:$0xf0]  ;;  %v1129_v31 = vld [vmem:[%s1583_s1 + $0xa4] sm:$0xf] }
  0x41   : > { %605 = vmatpush.bf16.msrb.mxu0 %v1069_v19  ;;  %624 = vmatpush.bf16.msrb.mxu1 %v1073_v20  ;;  %v1053_v33 = vor.u32 %v1130_v30, %v1052_v27  ;;  %v1057_v36 = vor.u32 %v1129_v31, %v1054_v32 }
  0x44   : > { %677 = vmatpush.bf16.msrb.mxu2 %v1332_v42  ;;  %696 = vmatpush.bf16.msrb.mxu3 %v1334_v43  ;;  %v1106_v42 = vld [vmem:[%s1418_s25 + $0x8] sm:$0xff]  ;;  %v1045_v43 = vor.u32 %v1128_v38, %v1044_v37 }
  0x45   : > { %606 = vmatpush.bf16.msrb.mxu0 %v1061_v25  ;;  %625 = vmatpush.bf16.msrb.mxu1 %v1065_v26 }
  0x48   : > { %678 = vmatpush.bf16.msrb.mxu2 %v1372_v55  ;;  %697 = vmatpush.bf16.msrb.mxu3 %v1374_v56 }
  0x49   : > { %607 = vmatpush.bf16.msrb.mxu0 %v1053_v33  ;;  %626 = vmatpush.bf16.msrb.mxu1 %v1057_v36 }
  0x4a   : > { %974 = vmatmul.msk.bf16.gmra.mxu0 %vm362_vm1, %v1116_v41  ;;  %976 = vmatmul.msk.bf16.gmra.mxu1 %vm362_vm1, %v1116_v41 }
  0x4b   : > { %1018 = vmatmul.msk.bf16.gmra.mxu2 %vm362_vm1, %v1106_v42  ;;  %1020 = vmatmul.msk.bf16.gmra.mxu3 %vm362_vm1, %v1106_v42 }
  0x4c   : > { %679 = vmatpush.bf16.msrb.mxu2 %v1408_v5  ;;  %698 = vmatpush.bf16.msrb.mxu3 %v1410_v6 }
  0x4d   : > { %608 = vmatpush.bf16.msrb.mxu0 %v1045_v43  ;;  %627 = vmatpush.bf16.msrb.mxu1 %v1049_v44 }
  0x50   : > { %772 = vmatpush.bf16.msra.mxu2 %v596_v15  ;;  %791 = vmatpush.bf16.msra.mxu3 %v599_v16 }
  0x51   : > { %713 = vmatpush.bf16.msra.mxu0 %v1289_v28  ;;  %732 = vmatpush.bf16.msra.mxu1 %v1292_v29  ;;  %v1126_v28 = vld [vmem:[%s1418_s25 + $0x28] sm:$0xff]  ;;  %v1135_v29 = vld [vmem:[%s1418_s25 + $0x30] sm:$0xff] }
  0x54   : > { %773 = vmatpush.bf16.msra.mxu2 %v1069_v19  ;;  %792 = vmatpush.bf16.msra.mxu3 %v1073_v20 }
  0x55   : > { %714 = vmatpush.bf16.msra.mxu0 %v1308_v34  ;;  %733 = vmatpush.bf16.msra.mxu1 %v1310_v35  ;;  %v1136_v34 = vld [vmem:[%s1418_s25 + $0x38] sm:$0xff] }
  0x58   : > { %774 = vmatpush.bf16.msra.mxu2 %v1061_v25  ;;  %793 = vmatpush.bf16.msra.mxu3 %v1065_v26 }
  0x59   : > { %715 = vmatpush.bf16.msra.mxu0 %v1345_v46  ;;  %734 = vmatpush.bf16.msra.mxu1 %v1347_v47 }
  0x5a   : > { %1074 = vmatmul.msk.bf16.vlgmr.msrb.gmra.mxu0 %vm362_vm1, %v1125_v45  ;;  %1076 = vmatmul.msk.bf16.vlgmr.msrb.gmra.mxu1 %vm362_vm1, %v1125_v45 }
  0x5b   : > { %1078 = vmatmul.msk.bf16.vlgmr.msrb.gmra.mxu2 %vm362_vm1, %v1125_v45  ;;  %1080 = vmatmul.msk.bf16.vlgmr.msrb.gmra.mxu3 %vm362_vm1, %v1125_v45 }
  0x5c   : > { %775 = vmatpush.bf16.msra.mxu2 %v1053_v33  ;;  %794 = vmatpush.bf16.msra.mxu3 %v1057_v36 }
  0x5d   : > { %716 = vmatpush.bf16.msra.mxu0 %v1387_v60  ;;  %735 = vmatpush.bf16.msra.mxu1 %v1389_v61 }
  0x60   : > { %776 = vmatpush.bf16.msra.mxu2 %v1045_v43  ;;  %795 = vmatpush.bf16.msra.mxu3 %v1049_v44 }
  0x61   : > { %717 = vmatpush.bf16.msra.mxu0 %v1414_v7  ;;  %736 = vmatpush.bf16.msra.mxu1 %v1416_v8 }
  0x6a   : > { %1075 = vmatmul.msk.bf16.gmra.mxu0 %vm362_vm1, %v1126_v28  ;;  %1077 = vmatmul.msk.bf16.gmra.mxu1 %vm362_vm1, %v1126_v28 }
  0x6b   : > { %1079 = vmatmul.msk.bf16.gmra.mxu2 %vm362_vm1, %v1126_v28  ;;  %1081 = vmatmul.msk.bf16.gmra.mxu3 %vm362_vm1, %v1126_v28 }
  0x7a   : > { %1082 = vmatmul.msk.bf16.vlgmr.msra.gmra.mxu0 %vm362_vm1, %v1421_v11  ;;  %1084 = vmatmul.msk.bf16.vlgmr.msra.gmra.mxu1 %vm362_vm1, %v1421_v11 }
  0x7b   : > { %1098 = vmatmul.msk.bf16.vlgmr.msra.gmra.mxu2 %vm362_vm1, %v1135_v29  ;;  %1100 = vmatmul.msk.bf16.vlgmr.msra.gmra.mxu3 %vm362_vm1, %v1135_v29 }
  0x8a   : > { %1083 = vmatmul.msk.bf16.gmra.mxu0 %vm362_vm1, %v1116_v41  ;;  %1085 = vmatmul.msk.bf16.gmra.mxu1 %vm362_vm1, %v1116_v41 }
  0x8b   : > { %1099 = vmatmul.msk.bf16.gmra.mxu2 %vm362_vm1, %v1136_v34  ;;  %1101 = vmatmul.msk.bf16.gmra.mxu3 %vm362_vm1, %v1136_v34 }
  0xb7   : > { %v385_v35 = vpop.f32.mrf.mxu0  ;;  %v404_v46 = vpop.f32.mrf.mxu1 }
  0xbe   : > { %v490_v47 = vpop.f32.mrf.mxu2  ;;  %v509_v48 = vpop.f32.mrf.mxu3 }
  0xbf   : > { %v491_v49 = vadd.f32 %v490_v47, %v385_v35  ;;  %v510_v50 = vadd.f32 %v509_v48, %v404_v46  ;;  %v387_v51 = vpop.f32.mrf.mxu0  ;;  %v406_v52 = vpop.f32.mrf.mxu1 }
  0xc6   : > { %v492_v53 = vpop.f32.mrf.mxu2  ;;  %v511_v54 = vpop.f32.mrf.mxu3 }
  0xc7   : > { %v390_v55 = vpop.f32.mrf.mxu0  ;;  %v409_v56 = vpop.f32.mrf.mxu1  ;;  %v493_v12 = vadd.f32 %v492_v53, %v387_v51  ;;  %v512_v13 = vadd.f32 %v511_v54, %v406_v52 }
  0xce   : > { %v495_v57 = vpop.f32.mrf.mxu2  ;;  %v514_v58 = vpop.f32.mrf.mxu3 }
  0xcf   : > { %v496_v59 = vadd.f32 %v495_v57, %v390_v55  ;;  %v515_v60 = vadd.f32 %v514_v58, %v409_v56  ;;  %v392_v61 = vpop.f32.mrf.mxu0  ;;  %v411_v62 = vpop.f32.mrf.mxu1 }
  0xd6   : > { %v497_v0 = vpop.f32.mrf.mxu2  ;;  %v516_v1 = vpop.f32.mrf.mxu3 }
  0xd7   : > { %v610_v4 = vpop.f32.mrf.mxu0  ;;  %v629_v5 = vpop.f32.mrf.mxu1  ;;  %v498_v40 = vadd.f32 %v497_v0, %v392_v61  ;;  %v517_v41 = vadd.f32 %v516_v1, %v411_v62 }
  0xd8   : > { %v639_v6 = vadd.f32 %v610_v4, %v491_v49  ;;  %v640_v7 = vadd.f32 %v629_v5, %v510_v50 }
  0xda   : > { %v652_v8 = vadd.f32 %v1535_v2, %v639_v6  ;;  %v653_v9 = vadd.f32 %v1537_v3, %v640_v7 }
  0xdc   : > { %v660_v10 = vmax.f32 %v652_v8, 0.0  ;;  %v661_v11 = vmax.f32 %v653_v9, 0.0 }
  0xde   : > { %v1541_v14 = vmax.f32 %v660_v10, %v661_v11  ;;  %v681_v15 = vpop.f32.mrf.mxu2  ;;  %v700_v16 = vpop.f32.mrf.mxu3 }
  0xdf   : > { %v612_v17 = vpop.f32.mrf.mxu0  ;;  %v631_v18 = vpop.f32.mrf.mxu1 }
  0xe0   : > { %v641_v19 = vadd.f32 %v612_v17, %v493_v12  ;;  %v642_v20 = vadd.f32 %v631_v18, %v512_v13 }
  0xe2   : > { %v654_v21 = vadd.f32 %v1535_v2, %v641_v19  ;;  %v655_v22 = vadd.f32 %v1537_v3, %v642_v20 }
  0xe4   : > { %v662_v23 = vmax.f32 %v654_v21, 0.0  ;;  %v663_v24 = vmax.f32 %v655_v22, 0.0 }
  0xe6   : > { %v1545_v25 = vmax.f32 %v662_v23, %v663_v24  ;;  %v683_v26 = vpop.f32.mrf.mxu2  ;;  %v702_v27 = vpop.f32.mrf.mxu3 }
  0xe7   : > { %v615_v30 = vpop.f32.mrf.mxu0  ;;  %v634_v31 = vpop.f32.mrf.mxu1 }
  0xe8   : > { %v643_v32 = vadd.f32 %v615_v30, %v496_v59  ;;  %v644_v33 = vadd.f32 %v634_v31, %v515_v60 }
  0xea   : > { %v656_v36 = vadd.f32 %v1535_v2, %v643_v32  ;;  %v657_v37 = vadd.f32 %v1537_v3, %v644_v33 }
  0xec   : > { %v664_v38 = vmax.f32 %v656_v36, 0.0  ;;  %v665_v39 = vmax.f32 %v657_v37, 0.0 }
  0xee   : > { %v1549_v42 = vmax.f32 %v664_v38, %v665_v39  ;;  %v686_v43 = vpop.f32.mrf.mxu2  ;;  %v705_v44 = vpop.f32.mrf.mxu3 }
  0xef   : > { %v617_v45 = vpop.f32.mrf.mxu0  ;;  %v636_v28 = vpop.f32.mrf.mxu1 }
  0xf0   : > { %v645_v29 = vadd.f32 %v617_v45, %v498_v40  ;;  %v646_v34 = vadd.f32 %v636_v28, %v517_v41 }
  0xf2   : > { %v658_v35 = vadd.f32 %v1535_v2, %v645_v29  ;;  %v659_v46 = vadd.f32 %v1537_v3, %v646_v34 }
  0xf4   : > { %v666_v47 = vmax.f32 %v658_v35, 0.0  ;;  %v667_v48 = vmax.f32 %v659_v46, 0.0 }
  0xf6   : > { %v1553_v49 = vmax.f32 %v666_v47, %v667_v48  ;;  %v688_v50 = vpop.f32.mrf.mxu2  ;;  %v707_v51 = vpop.f32.mrf.mxu3 }
  0xf7   : > { %v719_v52 = vpop.f32.mrf.mxu0  ;;  %v738_v53 = vpop.f32.mrf.mxu1 }
  0xf8   : > { %v720_v54 = vadd.f32 %v719_v52, %v681_v15  ;;  %v739_v55 = vadd.f32 %v738_v53, %v700_v16 }
  0xfe   : > { %v778_v56 = vpop.f32.mrf.mxu2  ;;  %v797_v57 = vpop.f32.mrf.mxu3 }
  0xff   : > { %v807_v58 = vadd.f32 %v778_v56, %v720_v54  ;;  %v808_v59 = vadd.f32 %v797_v57, %v739_v55  ;;  %v721_v60 = vpop.f32.mrf.mxu0  ;;  %v740_v61 = vpop.f32.mrf.mxu1 }
 0x100   : > { %v722_v0 = vadd.f32 %v721_v60, %v683_v26  ;;  %v741_v1 = vadd.f32 %v740_v61, %v702_v27 }
 0x101   : > { %v815_v62 = vadd.f32 %v807_v58, %v1535_v2  ;;  %v816_v63 = vadd.f32 %v808_v59, %v1537_v3 }
 0x103   : > { %v823_v6 = vmax.f32 %v815_v62, 0.0  ;;  %v824_v7 = vmax.f32 %v816_v63, 0.0 }
 0x105   : > { %v831_v15 = vmax.f32 %v823_v6, %v824_v7 }
 0x106   : > { %v780_v4 = vpop.f32.mrf.mxu2  ;;  %v799_v5 = vpop.f32.mrf.mxu3 }
 0x107   : > { %v809_v8 = vadd.f32 %v780_v4, %v722_v0  ;;  %v810_v9 = vadd.f32 %v799_v5, %v741_v1  ;;  %v724_v10 = vpop.f32.mrf.mxu0  ;;  %v743_v11 = vpop.f32.mrf.mxu1  ;;  %v835_v23 = vmax.f32 %v1541_v14, %v831_v15 }
 0x108   : > { %v725_v19 = vadd.f32 %v724_v10, %v686_v43  ;;  %v744_v20 = vadd.f32 %v743_v11, %v705_v44 }
 0x109   : > { %v817_v12 = vadd.f32 %v809_v8, %v1535_v2  ;;  %v818_v13 = vadd.f32 %v810_v9, %v1537_v3 }
 0x10b   : > { %v825_v16 = vmax.f32 %v817_v12, 0.0  ;;  %v826_v17 = vmax.f32 %v818_v13, 0.0 }
 0x10d   : > { %v832_v18 = vmax.f32 %v825_v16, %v826_v17 }
 0x10e   : > { %v783_v21 = vpop.f32.mrf.mxu2  ;;  %v802_v22 = vpop.f32.mrf.mxu3 }
 0x10f   : > { %v836_v24 = vmax.f32 %v1545_v25, %v832_v18  ;;  %v811_v26 = vadd.f32 %v783_v21, %v725_v19  ;;  %v812_v27 = vadd.f32 %v802_v22, %v744_v20  ;;  %v726_v31 = vpop.f32.mrf.mxu0  ;;  %v745_v32 = vpop.f32.mrf.mxu1 }
 0x110   : > { %v727_v37 = vadd.f32 %v726_v31, %v688_v50  ;;  %v746_v38 = vadd.f32 %v745_v32, %v707_v51 }
 0x111   : > { %v1140_v30 = vpack.c.bf16 %v836_v24, %v835_v23  ;;  %v819_v33 = vadd.f32 %v811_v26, %v1535_v2  ;;  %v820_v36 = vadd.f32 %v812_v27, %v1537_v3 }
 0x113   : > { %1141 = vst [vmem:[%s275_s29] sm:$0xff] %v1140_v30   ;;  %v827_v40 = vmax.f32 %v819_v33, 0.0  ;;  %v828_v25 = vmax.f32 %v820_v36, 0.0 }
 0x115   : > { %v833_v28 = vmax.f32 %v827_v40, %v828_v25 }
 0x116   : > { %v785_v39 = vpop.f32.mrf.mxu2  ;;  %v804_v14 = vpop.f32.mrf.mxu3 }
 0x117   : > { %v813_v41 = vadd.f32 %v785_v39, %v727_v37  ;;  %v814_v43 = vadd.f32 %v804_v14, %v746_v38  ;;  %v837_v46 = vmax.f32 %v1549_v42, %v833_v28 }
 0x119   : > { %v821_v44 = vadd.f32 %v813_v41, %v1535_v2  ;;  %v822_v45 = vadd.f32 %v814_v43, %v1537_v3 }
 0x11b   : > { %v829_v29 = vmax.f32 %v821_v44, 0.0  ;;  %v830_v34 = vmax.f32 %v822_v45, 0.0 }
 0x11d   : > { %v834_v35 = vmax.f32 %v829_v29, %v830_v34 }
 0x11f   : > { %v838_v47 = vmax.f32 %v1553_v49, %v834_v35 }
 0x121   : > { %v1145_v48 = vpack.c.bf16 %v838_v47, %v837_v46 }
 0x123   : > { %1147 = vst [vmem:[%s275_s29 + $0x8] sm:$0xff] %v1145_v48  }
 0x124 PF: > { %p10_p9 = scmp.ge.s32.totalorder %s1233_s16, 4   ;;  %s1586_s12 = smov %s1190_s13 }
 0x125   : > { %s1587_s13 = smov %s1242_s19  ;;  %s1588_s14 = smov %s1233_s16 }
 0x126   :  { %12 = sbr.rel (!%p10_p9) target bundleno = 2 (0x2), region = 113 }

// kernel: cnn_lstm_forward.4
= control target key start
LH: loop header
LB: loop body
LE: loop exit
PB: predicated region body
PF: predicated region fallthrough
CT: control target
= control target key end

     0   :  { %s1586_s12 = smov 0   ;;  %s1588_s13 = smov 0   ;;  %s2312_s0 = inlined_call_operand.vmem [shape: bf16[4,32,160], index: 0, kind: input, shape index: {}]   ;;  %s2313_s1 = inlined_call_operand.vmem [shape: bf16[3,160,256], index: 1, kind: input, shape index: {}]   ;;  %s2314_s2 = inlined_call_operand.vmem [shape: f32[1,256], index: 2, kind: input, shape index: {}]   ;;  %s2315_s3 = inlined_call_operand.vmem [shape: bf16[32,128], index: 3, kind: output, shape index: {}]  }
   0x1   :  { %s1590_s14 = smov 0  }
   0x2 LB: > { %s1099_s15 = sadd.s32 4294967295, %s1564_s14   ;;  %s1603_s16 = sadd.s32 1, %s1564_s14   ;;  %s1564_s14 = sphi %s1590_s14, %s2318_s14   ;;  %s1560_s13 = sphi %s1588_s13, %s2317_s13   ;;  %s1556_s12 = sphi %s1586_s12, %s2316_s12  }
   0x3   : > { %s17_s17 = ssub.s32 %s1564_s14, %s1603_s16  ;;  %s20_s18 = sadd.s32 1, %s1560_s13 }
   0x4   : > { %p18_p0 = scmp.eq.s32.totalorder %s17_s17, 0  ;;  %p27_p1 = scmp.ne.s32.totalorder %s1560_s13, %s1556_s12 }
   0x5   : > { %p28_p2 = scmp.eq.s32.totalorder %s1564_s14, 0  ;;  %p1102_p4 = scmp.ge.s32.totalorder %s1564_s14, 2 }
   0x6   : > { %s1612_s19 = scalar_select %p18_p0, %s1560_s13, %s20_s18  }
   0x7   : > { %p29_p3 = por %p28_p2, %p27_p1  ;;  %127 = sbr.rel (%p1102_p4) target bundleno = 24 (0x18), region = 24 }
   0xc   : > { %130 = sbr.rel (!%p29_p3) target bundleno = 24 (0x18), region = 28  ;;  %s132_s20 = sand.u32 (%p29_p3), 1, %s1560_s13  }
   0xd   : > { %s1444_s21 = sshll.u32 (%p29_p3), %s1564_s14, 4  ;;  %s1103_s22 = sshll.u32 (%p29_p3), %s132_s20, 6 }
   0xe   : > { %s138_s25 = scalar_lea.vmem (%p29_p3), %s2312_s0, %s1444_s21  ;;  %s134_s26 = scalar_lea.vmem (%p29_p3), [#allocation2], %s1103_s22 }
   0xf   : > { %v181_v0 = vld [vmem:[%s138_s25] sm:$0xff] (%p29_p3)  ;;  %v183_v1 = vld [vmem:[%s138_s25 + $0x8] sm:$0xff] (%p29_p3) }
  0x10   : > { %v185_v2 = vld [vmem:[%s138_s25 + $0x20] sm:$0xff] (%p29_p3)  ;;  %182 = vst [vmem:[%s134_s26] sm:$0xff] (%p29_p3), %v181_v0  ;;  %v187_v3 = vld [vmem:[%s138_s25 + $0x28] sm:$0xff] (%p29_p3) }
  0x11   : > { %184 = vst [vmem:[%s134_s26 + $0x8] sm:$0xff] %v183_v1  ;;  %v189_v4 = vld [vmem:[%s138_s25 + $0x40] sm:$0xff]  ;;  %v191_v5 = vld [vmem:[%s138_s25 + $0x48] sm:$0xff] }
  0x12   : > { %186 = vst [vmem:[%s134_s26 + $0x10] sm:$0xff] %v185_v2  ;;  %v193_v6 = vld [vmem:[%s138_s25 + $0x60] sm:$0xff]  ;;  %v195_v7 = vld [vmem:[%s138_s25 + $0x68] sm:$0xff] }
  0x13   : > { %188 = vst [vmem:[%s134_s26 + $0x18] sm:$0xff] %v187_v3 }
  0x14   : > { %190 = vst [vmem:[%s134_s26 + $0x20] sm:$0xff] %v189_v4 }
  0x15   : > { %192 = vst [vmem:[%s134_s26 + $0x28] sm:$0xff] %v191_v5 }
  0x16   : > { %194 = vst [vmem:[%s134_s26 + $0x30] sm:$0xff] %v193_v6 }
  0x17   : > { %196 = vst [vmem:[%s134_s26 + $0x38] sm:$0xff] %v195_v7 }
  0x18 PF: > { %p1107_p5 = scmp.ge.s32.totalorder %s1564_s14, 1  ;;  %p201_p6 = scmp.lt.s32.totalorder %s1564_s14, 3 }
  0x1a   : > { %p202_p7 = pnand %p1107_p5, %p201_p6 }
  0x1b   : > { %s208_s6 = sand.u32 (!%p202_p7), 1, %s1556_s12   ;;  %s1109_s17 = sshll.u32 (!%p202_p7), %s1099_s15, 1 }
  0x1c   : > { %205 = sbr.rel (%p202_p7) target bundleno = 319 (0x13f), region = 66  ;;  %s1108_s11 = sshll.u32 (!%p202_p7), %s208_s6, 6 }
  0x1d   : > { %s1750_s25 = scalar_lea.vmem (!%p202_p7), [#allocation2], %s1108_s11  ;;  %p233_p8 = scmp.lt.s32.totalorder (!%p202_p7), %s1109_s17, 3 }
  0x21   : > { %v1199_v8 = vld [vmem:[%s2313_s1 + $0x110] sm:$0xf]  ;;  %v1484_v9 = vld [vmem:[%s2313_s1 + $0x114] sm:$0xf0]  ;;  %v1487_v13 = vld [vmem:[%s2313_s1 + $0x134] sm:$0xf] }
  0x22   : > { %v1215_v10 = vld [vmem:[%s2313_s1 + $0x130] sm:$0xf]  ;;  %v1631_v11 = vor.u32 %v1484_v9, %v1199_v8  ;;  %v1488_v12 = vld [vmem:[%s2313_s1 + $0x134] sm:$0xf0]  ;;  %v1217_v14 = vld [vmem:[%s2313_s1 + $0x138] sm:$0xf0] }
  0x23   : > { %v1642_v15 = vor.u32 %v1488_v12, %v1215_v10  ;;  %v1644_v16 = vor.u32 %v1487_v13, %v1217_v14  ;;  %v1289_v17 = vld [vmem:[%s2313_s1 + $0x70] sm:$0xf]  ;;  %v1462_v18 = vld [vmem:[%s2313_s1 + $0x74] sm:$0xf0]  ;;  %v1191_v19 = vld [vmem:[%s2313_s1 + $0x100] sm:$0xf] }
  0x24   : > { %399 = vmatpush.bf16.msra.mxu0 %v1631_v11  ;;  %v1656_v20 = vor.u32 %v1462_v18, %v1289_v17  ;;  %v1482_v21 = vld [vmem:[%s2313_s1 + $0x104] sm:$0xf0]  ;;  %v1207_v22 = vld [vmem:[%s2313_s1 + $0x120] sm:$0xf]  ;;  %v1485_v26 = vld [vmem:[%s2313_s1 + $0x124] sm:$0xf] }
  0x25   : > { %v1486_v23 = vld [vmem:[%s2313_s1 + $0x124] sm:$0xf0]  ;;  %419 = vmatpush.bf16.msra.mxu2 %v1642_v15  ;;  %447 = vmatpush.bf16.msra.mxu3 %v1644_v16  ;;  %v1669_v24 = vor.u32 %v1482_v21, %v1191_v19  ;;  %v1209_v27 = vld [vmem:[%s2313_s1 + $0x128] sm:$0xf0]  ;;  %v1483_v28 = vld [vmem:[%s2313_s1 + $0x114] sm:$0xf] }
  0x26   : > { %v1671_v25 = vor.u32 %v1486_v23, %v1207_v22  ;;  %567 = vmatpush.bf16.msra.mxu1 %v1656_v20  ;;  %v1683_v29 = vor.u32 %v1485_v26, %v1209_v27  ;;  %v1201_v30 = vld [vmem:[%s2313_s1 + $0x118] sm:$0xf0]  ;;  %v1281_v31 = vld [vmem:[%s2313_s1 + $0x60] sm:$0xf]  ;;  %v1460_v32 = vld [vmem:[%s2313_s1 + $0x64] sm:$0xf0] }
  0x27   : > { %v1694_v33 = vor.u32 %v1483_v28, %v1201_v30  ;;  %v1696_v34 = vor.u32 %v1460_v32, %v1281_v31  ;;  %v1305_v35 = vld [vmem:[%s2313_s1 + $0x90] sm:$0xf]  ;;  %v1466_v36 = vld [vmem:[%s2313_s1 + $0x94] sm:$0xf0]  ;;  %v1481_v40 = vld [vmem:[%s2313_s1 + $0x104] sm:$0xf] }
  0x28   : > { %v1183_v37 = vld [vmem:[%s2313_s1 + $0xf0] sm:$0xf]  ;;  %400 = vmatpush.bf16.msra.mxu0 %v1669_v24  ;;  %v1708_v38 = vor.u32 %v1466_v36, %v1305_v35  ;;  %v1480_v39 = vld [vmem:[%s2313_s1 + $0xf4] sm:$0xf0]  ;;  %v1193_v41 = vld [vmem:[%s2313_s1 + $0x108] sm:$0xf0] }
  0x29   : > { %420 = vmatpush.bf16.msra.mxu2 %v1671_v25  ;;  %448 = vmatpush.bf16.msra.mxu3 %v1683_v29  ;;  %v1721_v42 = vor.u32 %v1480_v39, %v1183_v37  ;;  %v1273_v43 = vld [vmem:[%s2313_s1 + $0x50] sm:$0xf]  ;;  %v1458_v44 = vld [vmem:[%s2313_s1 + $0x54] sm:$0xf0]  ;;  %v1732_v45 = vor.u32 %v1481_v40, %v1193_v41  ;;  %v1297_v47 = vld [vmem:[%s2313_s1 + $0x80] sm:$0xf] }
  0x2a   : > { %568 = vmatpush.bf16.msra.mxu1 %v1696_v34  ;;  %v1734_v46 = vor.u32 %v1458_v44, %v1273_v43  ;;  %v1464_v48 = vld [vmem:[%s2313_s1 + $0x84] sm:$0xf0]  ;;  %vm395_vm0 = vcmask 261120   ;;  %v1461_v49 = vld [vmem:[%s2313_s1 + $0x74] sm:$0xf]  ;;  %s2320_s17 = smov (!%p233_p8, %s1109_s17), 3 }
  0x2b   : > { %v1291_v50 = vld [vmem:[%s2313_s1 + $0x78] sm:$0xf0]  ;;  %v1467_v51 = vld [vmem:[%s1750_s25 + $0x14] sm:$0xf]  ;;  %v1754_v53 = vor.u32 %v1464_v48, %v1297_v47  ;;  %v1175_v54 = vld [vmem:[%s2313_s1 + $0xe0] sm:$0xf] }
  0x2c   : > { %401 = vmatpush.bf16.msra.mxu0 %v1721_v42  ;;  %v1137_v52 = vld [vmem:[%s1750_s25 + $0x18] sm:$0xf0]  ;;  %v1761_v56 = vor.u32 %v1461_v49, %v1291_v50  ;;  %v1478_v57 = vld [vmem:[%s2313_s1 + $0xe4] sm:$0xf0]  ;;  %v1479_v58 = vld [vmem:[%s2313_s1 + $0xf4] sm:$0xf] }
  0x2d   : > { %427 = vmatpush.bf16.msrb.mxu2 %v1694_v33  ;;  %587 = vmatpush.bf16.msrb.mxu3 %v1708_v38  ;;  %v1759_v55 = vor.u32 %v1467_v51, %v1137_v52  ;;  %v1185_v59 = vld [vmem:[%s2313_s1 + $0xf8] sm:$0xf0]  ;;  %v1774_v60 = vor.u32 %v1478_v57, %v1175_v54  ;;  %v1265_v62 = vld [vmem:[%s2313_s1 + $0x40] sm:$0xf]  ;;  %v1456_v63 = vld [vmem:[%s2313_s1 + $0x44] sm:$0xf0] }
  0x2e   : > { %569 = vmatpush.bf16.msra.mxu1 %v1734_v46  ;;  %v1776_v61 = vor.u32 %v1479_v58, %v1185_v59  ;;  %v1459_v0 = vld [vmem:[%s2313_s1 + $0x64] sm:$0xf]  ;;  %v1789_v1 = vor.u32 %v1456_v63, %v1265_v62  ;;  %v1283_v2 = vld [vmem:[%s2313_s1 + $0x68] sm:$0xf0]  ;;  %v1167_v3 = vld [vmem:[%s2313_s1 + $0xd0] sm:$0xf] }
  0x2f   : > { %1222 = vmatmul.msk.bf16.vlgmr.msra.gmra.mxu3 %vm395_vm0, %v1759_v55  ;;  %v1476_v4 = vld [vmem:[%s2313_s1 + $0xd4] sm:$0xf0]  ;;  %1221 = vmatmul.msk.bf16.vlgmr.msra.gmra.mxu2 %vm395_vm0, %v1759_v55  ;;  %v1477_v6 = vld [vmem:[%s2313_s1 + $0xe4] sm:$0xf]  ;;  %v1177_v7 = vld [vmem:[%s2313_s1 + $0xe8] sm:$0xf0]  ;;  %v1816_v9 = vor.u32 %v1459_v0, %v1283_v2 }
  0x30   : > { %402 = vmatpush.bf16.msra.mxu0 %v1774_v60  ;;  %v1804_v5 = vor.u32 %v1476_v4, %v1167_v3  ;;  %v1257_v8 = vld [vmem:[%s2313_s1 + $0x30] sm:$0xf]  ;;  %v1454_v10 = vld [vmem:[%s2313_s1 + $0x34] sm:$0xf0]  ;;  %v1457_v12 = vld [vmem:[%s2313_s1 + $0x54] sm:$0xf]  ;;  %v1829_v14 = vor.u32 %v1477_v6, %v1177_v7 }
  0x31   : > { %428 = vmatpush.bf16.msrb.mxu2 %v1732_v45  ;;  %588 = vmatpush.bf16.msrb.mxu3 %v1754_v53  ;;  %v1275_v13 = vld [vmem:[%s2313_s1 + $0x58] sm:$0xf0]  ;;  %v1831_v17 = vor.u32 %v1454_v10, %v1257_v8  ;;  %v1159_v18 = vld [vmem:[%s2313_s1 + $0xc0] sm:$0xf]  ;;  %v1474_v19 = vld [vmem:[%s2313_s1 + $0xc4] sm:$0xf0] }
  0x32   : > { %570 = vmatpush.bf16.msra.mxu1 %v1789_v1  ;;  %v1475_v21 = vld [vmem:[%s2313_s1 + $0xd4] sm:$0xf]  ;;  %v1169_v22 = vld [vmem:[%s2313_s1 + $0xd8] sm:$0xf0]  ;;  %v1249_v23 = vld [vmem:[%s2313_s1 + $0x20] sm:$0xf]  ;;  %v1852_v27 = vor.u32 %v1474_v19, %v1159_v18  ;;  %v1855_v28 = vor.u32 %v1457_v12, %v1275_v13 }
  0x33   : > { %v1452_v26 = vld [vmem:[%s2313_s1 + $0x24] sm:$0xf0]  ;;  %v1151_v30 = vld [vmem:[%s2313_s1 + $0xb0] sm:$0xf]  ;;  %v1472_v31 = vld [vmem:[%s2313_s1 + $0xb4] sm:$0xf0]  ;;  %v1865_v32 = vor.u32 %v1475_v21, %v1169_v22 }
  0x34   : > { %403 = vmatpush.bf16.msra.mxu0 %v1804_v5  ;;  %v1867_v35 = vor.u32 %v1452_v26, %v1249_v23  ;;  %v1455_v36 = vld [vmem:[%s2313_s1 + $0x44] sm:$0xf]  ;;  %v1267_v37 = vld [vmem:[%s2313_s1 + $0x48] sm:$0xf0]  ;;  %v1241_v41 = vld [vmem:[%s2313_s1 + $0x10] sm:$0xf]  ;;  %v1888_v44 = vor.u32 %v1472_v31, %v1151_v30 }
  0x35   : > { %595 = vmatpush.bf16.msra.mxu3 %v1761_v56  ;;  %429 = vmatpush.bf16.msrb.mxu2 %v1776_v61  ;;  %v1473_v39 = vld [vmem:[%s2313_s1 + $0xc4] sm:$0xf]  ;;  %v1161_v40 = vld [vmem:[%s2313_s1 + $0xc8] sm:$0xf0]  ;;  %v1450_v43 = vld [vmem:[%s2313_s1 + $0x14] sm:$0xf0]  ;;  %v1896_v50 = vor.u32 %v1455_v36, %v1267_v37 }
  0x36   : > { %571 = vmatpush.bf16.msra.mxu1 %v1831_v17  ;;  %v1445_v47 = vld [vmem:[%s1750_s25 + $0x4] sm:$0xf]  ;;  %v1227_v48 = vld [vmem:[%s1750_s25 + $0x8] sm:$0xf0]  ;;  %v1453_v49 = vld [vmem:[%s2313_s1 + $0x34] sm:$0xf]  ;;  %v1909_v57 = vor.u32 %v1473_v39, %v1161_v40  ;;  %v1911_v58 = vor.u32 %v1450_v43, %v1241_v41 }
  0x37   : > { %v1259_v51 = vld [vmem:[%s2313_s1 + $0x38] sm:$0xf0]  ;;  %v1143_v52 = vld [vmem:[%s2313_s1 + $0xa0] sm:$0xf]  ;;  %v1470_v54 = vld [vmem:[%s2313_s1 + $0xa4] sm:$0xf0]  ;;  %v1922_v0 = vor.u32 %v1445_v47, %v1227_v48 }
  0x38   : > { %404 = vmatpush.bf16.msra.mxu0 %v1852_v27  ;;  %v1471_v59 = vld [vmem:[%s2313_s1 + $0xb4] sm:$0xf]  ;;  %v1307_v63 = vld [vmem:[%s2313_s1 + $0x98] sm:$0xf0]  ;;  %v1233_v3 = vld [vmem:[%s2313_s1] sm:$0xf]  ;;  %v1934_v6 = vor.u32 %v1470_v54, %v1143_v52  ;;  %v1939_v10 = vor.u32 %v1453_v49, %v1259_v51 }
  0x39   : > { %596 = vmatpush.bf16.msra.mxu3 %v1816_v9  ;;  %430 = vmatpush.bf16.msrb.mxu2 %v1829_v14  ;;  %v1465_v62 = vld [vmem:[%s2313_s1 + $0x94] sm:$0xf]  ;;  %v1153_v2 = vld [vmem:[%s2313_s1 + $0xb8] sm:$0xf0]  ;;  %v1448_v4 = vld [vmem:[%s2313_s1 + $0x4] sm:$0xf0] }
  0x3a   : > { %572 = vmatpush.bf16.msra.mxu1 %v1867_v35  ;;  %v1135_v7 = vld [vmem:[%s1750_s25 + $0x10] sm:$0xf]  ;;  %v1468_v8 = vld [vmem:[%s1750_s25 + $0x14] sm:$0xf0]  ;;  %v1941_v12 = vor.u32 %v1465_v62, %v1307_v63  ;;  %v1451_v13 = vld [vmem:[%s2313_s1 + $0x24] sm:$0xf]  ;;  %v1952_v21 = vor.u32 %v1471_v59, %v1153_v2  ;;  %v1954_v22 = vor.u32 %v1448_v4, %v1233_v3 }
  0x3b   : > { %v1251_v18 = vld [vmem:[%s2313_s1 + $0x28] sm:$0xf0]  ;;  %v1225_v19 = vld [vmem:[%s1750_s25] sm:$0xf]  ;;  %v1446_v23 = vld [vmem:[%s1750_s25 + $0x4] sm:$0xf0]  ;;  %v1965_v31 = vor.u32 %v1468_v8, %v1135_v7 }
  0x3c   : > { %405 = vmatpush.bf16.msra.mxu0 %v1888_v44  ;;  %v1469_v26 = vld [vmem:[%s2313_s1 + $0xa4] sm:$0xf]  ;;  %v1145_v30 = vld [vmem:[%s2313_s1 + $0xa8] sm:$0xf0]  ;;  %v1401_v39 = vld [vmem:[%s2313_s1 + $0x1b0] sm:$0xf]  ;;  %v1988_v47 = vor.u32 %v1451_v13, %v1251_v18  ;;  %v1990_v48 = vor.u32 %v1446_v23, %v1225_v19 }
  0x3d   : > { %597 = vmatpush.bf16.msra.mxu3 %v1855_v28  ;;  %431 = vmatpush.bf16.msrb.mxu2 %v1865_v32  ;;  %v1463_v36 = vld [vmem:[%s2313_s1 + $0x84] sm:$0xf]  ;;  %v1299_v37 = vld [vmem:[%s2313_s1 + $0x88] sm:$0xf0]  ;;  %v1506_v40 = vld [vmem:[%s2313_s1 + $0x1b4] sm:$0xf0]  ;;  %v2000_v52 = vor.u32 %v1469_v26, %v1145_v30 }
  0x3e   : > { %573 = vmatpush.bf16.msra.mxu1 %v1911_v58  ;;  %v1505_v41 = vld [vmem:[%s2313_s1 + $0x1b4] sm:$0xf]  ;;  %v1403_v43 = vld [vmem:[%s2313_s1 + $0x1b8] sm:$0xf0]  ;;  %v1417_v49 = vld [vmem:[%s2313_s1 + $0x1d0] sm:$0xf]  ;;  %v2002_v54 = vor.u32 %v1463_v36, %v1299_v37  ;;  %v2016_v3 = vor.u32 %v1506_v40, %v1401_v39 }
  0x3f   : > { %1311 = vmatmul.msk.bf16.vlgmr.msrb.gmra.mxu3 %vm395_vm0, %v1922_v0  ;;  %v1510_v51 = vld [vmem:[%s2313_s1 + $0x1d4] sm:$0xf0]  ;;  %v1449_v59 = vld [vmem:[%s2313_s1 + $0x14] sm:$0xf]  ;;  %v1243_v62 = vld [vmem:[%s2313_s1 + $0x18] sm:$0xf0]  ;;  %v2018_v4 = vor.u32 %v1505_v41, %v1403_v43 }
  0x40   : > { %406 = vmatpush.bf16.msra.mxu0 %v1934_v6  ;;  %v1393_v63 = vld [vmem:[%s2313_s1 + $0x1a0] sm:$0xf]  ;;  %v2013_v2 = vor.u32 %v1510_v51, %v1417_v49  ;;  %v1504_v7 = vld [vmem:[%s2313_s1 + $0x1a4] sm:$0xf0]  ;;  %v1503_v18 = vld [vmem:[%s2313_s1 + $0x1a4] sm:$0xf]  ;;  %v2043_v30 = vor.u32 %v1449_v59, %v1243_v62 }
  0x41   : > { %598 = vmatpush.bf16.msra.mxu3 %v1896_v50  ;;  %432 = vmatpush.bf16.msrb.mxu2 %v1909_v57  ;;  %v1409_v8 = vld [vmem:[%s2313_s1 + $0x1c0] sm:$0xf]  ;;  %v1508_v13 = vld [vmem:[%s2313_s1 + $0x1c4] sm:$0xf0]  ;;  %v1395_v19 = vld [vmem:[%s2313_s1 + $0x1a8] sm:$0xf0]  ;;  %v2060_v41 = vor.u32 %v1504_v7, %v1393_v63 }
  0x42   : > { %574 = vmatpush.bf16.msra.mxu1 %v1954_v22  ;;  %v2036_v23 = vor.u32 %v1508_v13, %v1409_v8  ;;  %v1509_v26 = vld [vmem:[%s2313_s1 + $0x1d4] sm:$0xf]  ;;  %v1419_v36 = vld [vmem:[%s2313_s1 + $0x1d8] sm:$0xf0]  ;;  %v1447_v37 = vld [vmem:[%s2313_s1 + $0x4] sm:$0xf]  ;;  %v2062_v43 = vor.u32 %v1503_v18, %v1395_v19 }
  0x43   : > { %407 = vmatmul.bf16.vlgmr.msra.gmra.mxu0 %v1965_v31  ;;  %v1235_v39 = vld [vmem:[%s2313_s1 + $0x8] sm:$0xf0]  ;;  %v2056_v40 = vor.u32 %v1509_v26, %v1419_v36  ;;  %v1385_v49 = vld [vmem:[%s2313_s1 + $0x190] sm:$0xf]  ;;  %v1507_v51 = vld [vmem:[%s2313_s1 + $0x1c4] sm:$0xf] }
  0x44   : > { %615 = vmatpush.bf16.msrb.mxu0 %v1941_v12  ;;  %v1411_v59 = vld [vmem:[%s2313_s1 + $0x1c8] sm:$0xf0]  ;;  %v1502_v62 = vld [vmem:[%s2313_s1 + $0x194] sm:$0xf0]  ;;  %v1501_v63 = vld [vmem:[%s2313_s1 + $0x194] sm:$0xf]  ;;  %v2085_v8 = vor.u32 %v1447_v37, %v1235_v39 }
  0x45   : > { %599 = vmatpush.bf16.msra.mxu3 %v1939_v10  ;;  %433 = vmatpush.bf16.msrb.mxu2 %v1952_v21  ;;  %v1387_v7 = vld [vmem:[%s2313_s1 + $0x198] sm:$0xf0]  ;;  %v2088_v13 = vor.u32 %v1507_v51, %v1411_v59  ;;  %v2092_v18 = vor.u32 %v1502_v62, %v1385_v49  ;;  %v1377_v26 = vld [vmem:[%s2313_s1 + $0x180] sm:$0xf]  ;;  %v1500_v36 = vld [vmem:[%s2313_s1 + $0x184] sm:$0xf0] }
  0x46   : > { %779 = vmatpush.bf16.msrb.mxu1 %v2013_v2  ;;  %v2094_v19 = vor.u32 %v1501_v63, %v1387_v7  ;;  %v1499_v37 = vld [vmem:[%s2313_s1 + $0x184] sm:$0xf]  ;;  %v1379_v39 = vld [vmem:[%s2313_s1 + $0x188] sm:$0xf0]  ;;  %v2115_v59 = vor.u32 %v1500_v36, %v1377_v26  ;;  %v1369_v63 = vld [vmem:[%s2313_s1 + $0x170] sm:$0xf] }
  0x47   : > { %575 = vmatmul.bf16.vlgmr.msra.gmra.mxu1 %v1990_v48  ;;  %v1489_v49 = vld [vmem:[%s1750_s25 + $0x24] sm:$0xf]  ;;  %v1339_v51 = vld [vmem:[%s1750_s25 + $0x28] sm:$0xf0]  ;;  %v2117_v62 = vor.u32 %v1499_v37, %v1379_v39  ;;  %v1497_v7 = vld [vmem:[%s2313_s1 + $0x174] sm:$0xf] }
  0x48   : > { %616 = vmatpush.bf16.msrb.mxu0 %v2002_v54  ;;  %v1371_v26 = vld [vmem:[%s2313_s1 + $0x178] sm:$0xf0]  ;;  %v2132_v36 = vor.u32 %v1489_v49, %v1339_v51  ;;  %v1361_v39 = vld [vmem:[%s2313_s1 + $0x160] sm:$0xf]  ;;  %v1496_v49 = vld [vmem:[%s2313_s1 + $0x164] sm:$0xf0] }
  0x49   : > { %600 = vmatpush.bf16.msra.mxu3 %v1988_v47  ;;  %434 = vmatpush.bf16.msrb.mxu2 %v2000_v52  ;;  %v2139_v37 = vor.u32 %v1497_v7, %v1371_v26  ;;  %v1363_v51 = vld [vmem:[%s2313_s1 + $0x168] sm:$0xf0]  ;;  %v1494_v7 = vld [vmem:[%s2313_s1 + $0x154] sm:$0xf0]  ;;  %s1110_s14 = sshll.u32 %s2320_s17, 2 }
  0x4a   : > { %780 = vmatpush.bf16.msrb.mxu1 %v2036_v23  ;;  %s236_s12 = scalar_lea.vmem %s2315_s3, %s1110_s14 }
  0x4c   : > { %787 = vmatpush.bf16.msra.mxu0 %v2018_v4  ;;  %435 = vmatmul.bf16.vlgmr.msrb.gmra.mxu2 %v1965_v31 }
  0x4d   : > { %759 = vmatpush.bf16.msra.mxu2 %v2016_v3  ;;  %601 = vmatpush.bf16.msra.mxu3 %v2043_v30 }
  0x4e   : > { %807 = vmatpush.bf16.msra.mxu1 %v2056_v40 }
  0x50   : > { %788 = vmatpush.bf16.msra.mxu0 %v2062_v43 }
  0x51   : > { %760 = vmatpush.bf16.msra.mxu2 %v2060_v41  ;;  %602 = vmatpush.bf16.msra.mxu3 %v2085_v8 }
  0x52   : > { %808 = vmatpush.bf16.msra.mxu1 %v2088_v13 }
  0x53   : > { %1312 = vmatmul.msk.bf16.vlgmr.msrb.gmra.mxu0 %vm395_vm0, %v1922_v0  ;;  %v2161_v0 = vor.u32 %v1496_v49, %v1361_v39  ;;  %v1345_v49 = vld [vmem:[%s2313_s1 + $0x140] sm:$0xf] }
  0x54   : > { %789 = vmatpush.bf16.msra.mxu0 %v2094_v19  ;;  %603 = vmatmul.bf16.vlgmr.msra.gmra.mxu3 %v1990_v48 }
  0x55   : > { %834 = vmatpush.bf16.msrb.mxu3 %v1631_v11  ;;  %761 = vmatpush.bf16.msra.mxu2 %v2092_v18  ;;  %v1498_v11 = vld [vmem:[%s2313_s1 + $0x174] sm:$0xf0] }
  0x56   : > { %v2137_v48 = vor.u32 %v1498_v11, %v1369_v63  ;;  %v1353_v11 = vld [vmem:[%s2313_s1 + $0x150] sm:$0xf] }
  0x57   : > { %1423 = vmatmul.msk.bf16.vlgmr.msrb.gmra.mxu1 %vm395_vm0, %v2132_v36  ;;  %v2181_v26 = vor.u32 %v1494_v7, %v1353_v11  ;;  %v1337_v7 = vld [vmem:[%s1750_s25 + $0x20] sm:$0xf] }
  0x58   : > { %790 = vmatpush.bf16.msra.mxu0 %v2117_v62  ;;  %862 = vmatpush.bf16.msrb.mxu1 %v1694_v33  ;;  %v1493_v33 = vld [vmem:[%s2313_s1 + $0x154] sm:$0xf] }
  0x59   : > { %835 = vmatpush.bf16.msrb.mxu3 %v1669_v24  ;;  %762 = vmatpush.bf16.msra.mxu2 %v2115_v59  ;;  %v1495_v24 = vld [vmem:[%s2313_s1 + $0x164] sm:$0xf] }
  0x5a   : > { %v2163_v63 = vor.u32 %v1495_v24, %v1363_v51  ;;  %v1347_v24 = vld [vmem:[%s2313_s1 + $0x148] sm:$0xf0] }
  0x5c   : > { %791 = vmatpush.bf16.msra.mxu0 %v2139_v37  ;;  %863 = vmatpush.bf16.msrb.mxu1 %v1732_v45  ;;  %v1492_v45 = vld [vmem:[%s2313_s1 + $0x144] sm:$0xf0] }
  0x5d   : > { %836 = vmatpush.bf16.msrb.mxu3 %v1721_v42  ;;  %763 = vmatpush.bf16.msra.mxu2 %v2137_v48  ;;  %v1355_v42 = vld [vmem:[%s2313_s1 + $0x158] sm:$0xf0]  ;;  %v2201_v51 = vor.u32 %v1492_v45, %v1345_v49 }
  0x5e   : > { %v2183_v39 = vor.u32 %v1493_v33, %v1355_v42  ;;  %v1490_v33 = vld [vmem:[%s1750_s25 + $0x24] sm:$0xf0] }
  0x5f   : > { %v1338_v42 = vor.u32 %v1490_v33, %v1337_v7 }
  0x60   : > { %792 = vmatpush.bf16.msra.mxu0 %v2163_v63  ;;  %864 = vmatpush.bf16.msrb.mxu1 %v1776_v61 }
  0x61   : > { %837 = vmatpush.bf16.msrb.mxu3 %v1774_v60  ;;  %764 = vmatpush.bf16.msra.mxu2 %v2161_v0  ;;  %v1491_v60 = vld [vmem:[%s2313_s1 + $0x144] sm:$0xf] }
  0x62   : > { %v2203_v11 = vor.u32 %v1491_v60, %v1347_v24 }
  0x64   : > { %793 = vmatpush.bf16.msra.mxu0 %v2183_v39  ;;  %865 = vmatpush.bf16.msrb.mxu1 %v1829_v14 }
  0x65   : > { %838 = vmatpush.bf16.msrb.mxu3 %v1804_v5  ;;  %765 = vmatpush.bf16.msra.mxu2 %v2181_v26 }
  0x67   : > { %1424 = vmatmul.msk.bf16.vlgmr.msra.gmra.mxu1 %vm395_vm0, %v2132_v36 }
  0x68   : > { %794 = vmatpush.bf16.msra.mxu0 %v2203_v11  ;;  %866 = vmatpush.bf16.msrb.mxu1 %v1865_v32 }
  0x69   : > { %839 = vmatpush.bf16.msrb.mxu3 %v1852_v27  ;;  %766 = vmatpush.bf16.msra.mxu2 %v2201_v51 }
  0x6b   : > { %795 = vmatmul.bf16.vlgmr.msra.gmra.mxu0 %v1338_v42 }
  0x6c   : > { %882 = vmatpush.bf16.msrb.mxu0 %v1644_v16  ;;  %767 = vmatmul.bf16.vlgmr.msra.gmra.mxu2 %v1338_v42  ;;  %v1512_v16 = vld [vmem:[%s1750_s25 + $0x34] sm:$0xf0] }
  0x6d   : > { %854 = vmatpush.bf16.msrb.mxu2 %v1642_v15  ;;  %840 = vmatpush.bf16.msrb.mxu3 %v1888_v44  ;;  %v1433_v15 = vld [vmem:[%s1750_s25 + $0x30] sm:$0xf] }
  0x6e   : > { %867 = vmatpush.bf16.msrb.mxu1 %v1909_v57 }
  0x70   : > { %883 = vmatpush.bf16.msrb.mxu0 %v1683_v29  ;;  %v1435_v29 = vld [vmem:[%s1750_s25 + $0x38] sm:$0xf0] }
  0x71   : > { %855 = vmatpush.bf16.msrb.mxu2 %v1671_v25  ;;  %841 = vmatpush.bf16.msrb.mxu3 %v1934_v6  ;;  %v1511_v25 = vld [vmem:[%s1750_s25 + $0x34] sm:$0xf] }
  0x72   : > { %868 = vmatpush.bf16.msrb.mxu1 %v1952_v21 }
  0x74   : > { %918 = vmatpush.bf16.msra.mxu0 %v1761_v56  ;;  %842 = vmatmul.bf16.vlgmr.msrb.gmra.mxu3 %v1338_v42 }
  0x75   : > { %890 = vmatpush.bf16.msra.mxu2 %v1656_v20  ;;  %910 = vmatpush.bf16.msra.mxu3 %v1708_v38  ;;  %v1434_v20 = vor.u32 %v1512_v16, %v1433_v15 }
  0x76   : > { %869 = vmatpush.bf16.msrb.mxu1 %v2000_v52 }
  0x78   : > { %919 = vmatpush.bf16.msra.mxu0 %v1816_v9 }
  0x79   : > { %891 = vmatpush.bf16.msra.mxu2 %v1696_v34  ;;  %911 = vmatpush.bf16.msra.mxu3 %v1754_v53  ;;  %v1438_v34 = vor.u32 %v1511_v25, %v1435_v29 }
  0x7a   : > { %938 = vmatpush.bf16.msra.mxu1 %v1941_v12 }
  0x7b   : > { %870 = vmatmul.bf16.vlgmr.msrb.gmra.mxu1 %v1338_v42  ;;  %1426 = vmatmul.msk.bf16.vlgmr.msrb.gmra.mxu0 %vm395_vm0, %v2132_v36 }
  0x7c   : > { %920 = vmatpush.bf16.msra.mxu0 %v1855_v28  ;;  %1425 = vmatmul.msk.bf16.vlgmr.msrb.gmra.mxu2 %vm395_vm0, %v2132_v36 }
  0x7d   : > { %892 = vmatpush.bf16.msra.mxu2 %v1734_v46  ;;  %961 = vmatpush.bf16.msrb.mxu3 %v2016_v3 }
  0x7e   : > { %939 = vmatpush.bf16.msra.mxu1 %v2002_v54 }
  0x80   : > { %921 = vmatpush.bf16.msra.mxu0 %v1896_v50 }
  0x81   : > { %893 = vmatpush.bf16.msra.mxu2 %v1789_v1  ;;  %962 = vmatpush.bf16.msrb.mxu3 %v2060_v41 }
  0x82   : > { %989 = vmatpush.bf16.msrb.mxu1 %v2018_v4 }
  0x84   : > { %922 = vmatpush.bf16.msra.mxu0 %v1939_v10  ;;  %1427 = vmatmul.msk.bf16.vlgmr.msra.gmra.mxu3 %vm395_vm0, %v1759_v55 }
  0x85   : > { %894 = vmatpush.bf16.msra.mxu2 %v1831_v17  ;;  %963 = vmatpush.bf16.msrb.mxu3 %v2092_v18 }
  0x86   : > { %990 = vmatpush.bf16.msrb.mxu1 %v2062_v43 }
  0x88   : > { %923 = vmatpush.bf16.msra.mxu0 %v1988_v47 }
  0x89   : > { %895 = vmatpush.bf16.msra.mxu2 %v1867_v35  ;;  %964 = vmatpush.bf16.msrb.mxu3 %v2115_v59 }
  0x8a   : > { %991 = vmatpush.bf16.msrb.mxu1 %v2094_v19 }
  0x8b   : > { %1428 = vmatmul.msk.bf16.vlgmr.msra.gmra.mxu1 %vm395_vm0, %v1759_v55 }
  0x8c   : > { %924 = vmatpush.bf16.msra.mxu0 %v2043_v30  ;;  %v239_v30 = vld [vmem:[%s2314_s2] sm:$0x3] }
  0x8d   : > { %896 = vmatpush.bf16.msra.mxu2 %v1911_v58  ;;  %965 = vmatpush.bf16.msrb.mxu3 %v2137_v48  ;;  %v2282_v43 = vperm.slane %v239_v30, 1  ;;  %v2284_v18 = vperm.slane %v239_v30, 0 }
  0x8e   : > { %992 = vmatpush.bf16.msrb.mxu1 %v2117_v62 }
  0x90   : > { %925 = vmatpush.bf16.msra.mxu0 %v2085_v8 }
  0x91   : > { %897 = vmatpush.bf16.msra.mxu2 %v1954_v22  ;;  %966 = vmatpush.bf16.msrb.mxu3 %v2161_v0 }
  0x92   : > { %993 = vmatpush.bf16.msrb.mxu1 %v2139_v37 }
  0x93   : > { %926 = vmatmul.bf16.vlgmr.msra.gmra.mxu0 %v1965_v31 }
  0x94   : > { %898 = vmatmul.bf16.vlgmr.msra.gmra.mxu2 %v1965_v31  ;;  %1009 = vmatpush.bf16.msrb.mxu0 %v2056_v40 }
  0x95   : > { %981 = vmatpush.bf16.msrb.mxu2 %v2013_v2  ;;  %967 = vmatpush.bf16.msrb.mxu3 %v2181_v26 }
  0x96   : > { %994 = vmatpush.bf16.msrb.mxu1 %v2163_v63 }
  0x98   : > { %1010 = vmatpush.bf16.msrb.mxu0 %v2088_v13 }
  0x99   : > { %982 = vmatpush.bf16.msrb.mxu2 %v2036_v23  ;;  %968 = vmatpush.bf16.msrb.mxu3 %v2201_v51 }
  0x9a   : > { %995 = vmatpush.bf16.msrb.mxu1 %v2183_v39 }
  0x9c   : > { %969 = vmatmul.bf16.vlgmr.msrb.gmra.mxu3 %v1434_v20 }
  0x9e   : > { %996 = vmatpush.bf16.msrb.mxu1 %v2203_v11 }
  0xa1   : > { %997 = vmatmul.bf16.vlgmr.msrb.gmra.mxu1 %v1434_v20 }
  0xa3   : > { %1440 = vmatmul.msk.bf16.vlgmr.msrb.gmra.mxu0 %vm395_vm0, %v1438_v34 }
  0xa4   : > { %1439 = vmatmul.msk.bf16.vlgmr.msrb.gmra.mxu2 %vm395_vm0, %v1438_v34 }
  0xb2   : > { %v450_v38 = vpop.f32.mrf.mxu3  ;;  %v422_v46 = vpop.f32.mrf.mxu2 }
  0xba   : > { %v452_v53 = vpop.f32.mrf.mxu3  ;;  %v424_v61 = vpop.f32.mrf.mxu2 }
  0xc0   : > { %v408_v55 = vpop.f32.mrf.mxu0 }
  0xc1   : > { %v423_v56 = vadd.f32 %v422_v46, %v408_v55 }
  0xc2   : > { %v590_v1 = vpop.f32.mrf.mxu3 }
  0xc4   : > { %v576_v5 = vpop.f32.mrf.mxu1 }
  0xc5   : > { %v577_v9 = vadd.f32 %v576_v5, %v423_v56 }
  0xc7   : > { %v591_v14 = vadd.f32 %v590_v1, %v577_v9 }
  0xc8   : > { %v410_v17 = vpop.f32.mrf.mxu0 }
  0xc9   : > { %v425_v27 = vadd.f32 %v424_v61, %v410_v17 }
  0xca   : > { %v592_v28 = vpop.f32.mrf.mxu3 }
  0xcc   : > { %v578_v32 = vpop.f32.mrf.mxu1 }
  0xcd   : > { %v579_v35 = vadd.f32 %v578_v32, %v425_v27 }
  0xcf   : > { %v436_v44 = vpop.f32.mrf.mxu2  ;;  %v593_v50 = vadd.f32 %v592_v28, %v579_v35 }
  0xd0   : > { %v451_v57 = vadd.f32 %v450_v38, %v436_v44  ;;  %v618_v58 = vpop.f32.mrf.mxu0 }
  0xd4   : > { %v782_v6 = vpop.f32.mrf.mxu1 }
  0xd7   : > { %v604_v10 = vpop.f32.mrf.mxu3  ;;  %v438_v22 = vpop.f32.mrf.mxu2 }
  0xd8   : > { %v605_v12 = vadd.f32 %v604_v10, %v451_v57  ;;  %v453_v31 = vadd.f32 %v452_v53, %v438_v22  ;;  %v620_v52 = vpop.f32.mrf.mxu0 }
  0xda   : > { %v619_v21 = vadd.f32 %v618_v58, %v605_v12 }
  0xdc   : > { %v784_v47 = vpop.f32.mrf.mxu1 }
  0xdf   : > { %v606_v54 = vpop.f32.mrf.mxu3 }
  0xe0   : > { %v607_v2 = vadd.f32 %v606_v54, %v453_v31 }
  0xe2   : > { %v621_v3 = vadd.f32 %v620_v52, %v607_v2 }
  0xe4   : > { %v810_v4 = vpop.f32.mrf.mxu1 }
  0xe8   : > { %v796_v23 = vpop.f32.mrf.mxu0 }
  0xe9   : > { %v811_v40 = vadd.f32 %v810_v4, %v796_v23 }
  0xeb   : > { %v816_v41 = vadd.f32 %v811_v40, %v619_v21 }
  0xec   : > { %v812_v19 = vpop.f32.mrf.mxu1 }
  0xed   : > { %v825_v59 = vadd.f32 %v2282_v43, %v816_v41 }
  0xef   : > { %v768_v8 = vpop.f32.mrf.mxu2  ;;  %v829_v0 = vmax.f32 %v825_v59, 0.0 }
  0xf0   : > { %v783_v13 = vadd.f32 %v782_v6, %v768_v8  ;;  %v798_v36 = vpop.f32.mrf.mxu0 }
  0xf1   : > { %v813_v48 = vadd.f32 %v812_v19, %v798_v36 }
  0xf2   : > { %v815_v62 = vadd.f32 %v783_v13, %v591_v14 }
  0xf3   : > { %v818_v26 = vadd.f32 %v813_v48, %v621_v3 }
  0xf4   : > { %v824_v37 = vadd.f32 %v2284_v18, %v815_v62 }
  0xf5   : > { %v827_v24 = vadd.f32 %v2282_v43, %v818_v26 }
  0xf6   : > { %v828_v63 = vmax.f32 %v824_v37, 0.0 }
  0xf7   : > { %v770_v39 = vpop.f32.mrf.mxu2  ;;  %v843_v49 = vpop.f32.mrf.mxu3  ;;  %v831_v42 = vmax.f32 %v827_v24, 0.0 }
  0xf8   : > { %v2288_v45 = vmax.f32 %v828_v63, %v829_v0  ;;  %v785_v60 = vadd.f32 %v784_v47, %v770_v39  ;;  %v871_v11 = vpop.f32.mrf.mxu1  ;;  %v885_v7 = vpop.f32.mrf.mxu0 }
  0xf9   : > { %v886_v28 = vadd.f32 %v885_v7, %v871_v11 }
  0xfa   : > { %v817_v51 = vadd.f32 %v785_v60, %v593_v50 }
  0xfc   : > { %v826_v33 = vadd.f32 %v2284_v18, %v817_v51 }
  0xfe   : > { %v830_v15 = vmax.f32 %v826_v33, 0.0 }
  0xff   : > { %v857_v16 = vpop.f32.mrf.mxu2  ;;  %v845_v25 = vpop.f32.mrf.mxu3 }
 0x100   : > { %v833_v20 = vmax.f32 %v830_v15, %v831_v42  ;;  %v873_v29 = vpop.f32.mrf.mxu1  ;;  %v887_v34 = vpop.f32.mrf.mxu0  ;;  %v858_v17 = vadd.f32 %v857_v16, %v843_v49 }
 0x101   : > { %v888_v44 = vadd.f32 %v887_v34, %v873_v29 }
 0x107   : > { %v859_v38 = vpop.f32.mrf.mxu2  ;;  %v913_v53 = vpop.f32.mrf.mxu3 }
 0x108   : > { %v941_v46 = vpop.f32.mrf.mxu1  ;;  %v860_v21 = vadd.f32 %v859_v38, %v845_v25 }
 0x10f   : > { %v915_v5 = vpop.f32.mrf.mxu3 }
 0x110   : > { %v927_v55 = vpop.f32.mrf.mxu0  ;;  %v943_v61 = vpop.f32.mrf.mxu1 }
 0x111   : > { %v928_v50 = vadd.f32 %v927_v55, %v886_v28 }
 0x113   : > { %v942_v22 = vadd.f32 %v941_v46, %v928_v50 }
 0x117   : > { %v899_v56 = vpop.f32.mrf.mxu2 }
 0x118   : > { %v929_v1 = vpop.f32.mrf.mxu0  ;;  %v900_v32 = vadd.f32 %v899_v56, %v858_v17 }
 0x119   : > { %v930_v6 = vadd.f32 %v929_v1, %v888_v44 }
 0x11a   : > { %v914_v58 = vadd.f32 %v913_v53, %v900_v32 }
 0x11b   : > { %v944_v2 = vadd.f32 %v943_v61, %v930_v6 }
 0x11e   : > { %v998_v14 = vpop.f32.mrf.mxu1 }
 0x11f   : > { %v901_v9 = vpop.f32.mrf.mxu2  ;;  %v970_v35 = vpop.f32.mrf.mxu3 }
 0x120   : > { %v1012_v27 = vpop.f32.mrf.mxu0  ;;  %v902_v3 = vadd.f32 %v901_v9, %v860_v21 }
 0x121   : > { %v1013_v10 = vadd.f32 %v1012_v27, %v998_v14 }
 0x122   : > { %v916_v8 = vadd.f32 %v915_v5, %v902_v3 }
 0x123   : > { %v1018_v4 = vadd.f32 %v1013_v10, %v942_v22 }
 0x125   : > { %v1022_v13 = vadd.f32 %v1018_v4, %v2282_v43 }
 0x126   : > { %v1000_v47 = vpop.f32.mrf.mxu1 }
 0x127   : > { %v984_v57 = vpop.f32.mrf.mxu2  ;;  %v972_v40 = vpop.f32.mrf.mxu3  ;;  %v1026_v48 = vmax.f32 %v1022_v13, 0.0 }
 0x128   : > { %v985_v12 = vadd.f32 %v984_v57, %v970_v35  ;;  %v1014_v52 = vpop.f32.mrf.mxu0 }
 0x129   : > { %v1015_v54 = vadd.f32 %v1014_v52, %v1000_v47 }
 0x12a   : > { %v1017_v31 = vadd.f32 %v985_v12, %v914_v58 }
 0x12b   : > { %v1020_v30 = vadd.f32 %v1015_v54, %v944_v2 }
 0x12c   : > { %v1021_v23 = vadd.f32 %v1017_v31, %v2284_v18 }
 0x12d   : > { %v1024_v62 = vadd.f32 %v1020_v30, %v2282_v43 }
 0x12e   : > { %v1025_v59 = vmax.f32 %v1021_v23, 0.0 }
 0x12f   : > { %v986_v41 = vpop.f32.mrf.mxu2  ;;  %v1028_v63 = vmax.f32 %v1024_v62, 0.0 }
 0x130   : > { %v987_v19 = vadd.f32 %v986_v41, %v972_v40  ;;  %v1029_v0 = vmax.f32 %v1025_v59, %v1026_v48 }
 0x132   : > { %v1019_v36 = vadd.f32 %v987_v19, %v916_v8  ;;  %v1031_v49 = vmax.f32 %v2288_v45, %v1029_v0 }
 0x134   : > { %v1023_v37 = vadd.f32 %v1019_v36, %v2284_v18 }
 0x136   : > { %v1027_v26 = vmax.f32 %v1023_v37, 0.0 }
 0x138   : > { %v1030_v39 = vmax.f32 %v1027_v26, %v1028_v63 }
 0x13a   : > { %v1032_v60 = vmax.f32 %v833_v20, %v1030_v39 }
 0x13c   : > { %v1516_v24 = vpack.c.bf16 %v1032_v60, %v1031_v49 }
 0x13e   : > { %1517 = vst [vmem:[%s236_s12] sm:$0xff] %v1516_v24  }
 0x13f PF: > { %p10_p9 = scmp.ge.s32.totalorder %s1603_s16, 4   ;;  %s2316_s12 = smov %s1560_s13 }
 0x140   : > { %s2317_s13 = smov %s1612_s19  ;;  %s2318_s14 = smov %s1603_s16 }
 0x141   :  { %12 = sbr.rel (!%p10_p9) target bundleno = 2 (0x2), region = 110 }

// kernel: cnn_lstm_forward.5
= control target key start
LH: loop header
LB: loop body
LE: loop exit
PB: predicated region body
PF: predicated region fallthrough
CT: control target
= control target key end

     0   :  { %s4251_s1 = inlined_call_operand.vmem [shape: bf16[512,512], index: 1, kind: input, shape index: {}]   ;;  %s4252_s0 = inlined_call_operand.vmem [shape: bf16[32,512], index: 0, kind: input, shape index: {}]   ;;  %s4253_s3 = inlined_call_operand.vmem [shape: f32[128,512], index: 3, kind: input, shape index: {}]   ;;  %s4254_s2 = inlined_call_operand.vmem [shape: f32[1,512], index: 2, kind: input, shape index: {}]   ;;  %s4255_s5 = inlined_call_operand.vmem [shape: f32[1,128], index: 5, kind: input, shape index: {}]   ;;  %s4256_s4 = inlined_call_operand.vmem [shape: f32[128,128], index: 4, kind: input, shape index: {}]   ;;  %s4257_s6 = inlined_call_operand.vmem [shape: f32[8,128], index: 6, kind: output, shape index: {}]  }
   0x1   :  { %v2031_v0 = vld [vmem:[%s4251_s1 + $0xe0] sm:$0xf]  ;;  %v2479_v1 = vld [vmem:[%s4251_s1 + $0xec] sm:$0xf0] }
   0x2   :  { %v2159_v2 = vld [vmem:[%s4251_s1 + $0x1e0] sm:$0xf]  ;;  %v2032_v3 = vor.u32 %v2479_v1, %v2031_v0  ;;  %v2511_v4 = vld [vmem:[%s4251_s1 + $0x1ec] sm:$0xf0] }
   0x3   :  { %v2287_v5 = vld [vmem:[%s4251_s1 + $0x2e0] sm:$0xf]  ;;  %v2543_v6 = vld [vmem:[%s4251_s1 + $0x2ec] sm:$0xf0]  ;;  %v2160_v7 = vor.u32 %v2511_v4, %v2159_v2 }
   0x4   :  { %v2288_v8 = vor.u32 %v2543_v6, %v2287_v5  ;;  %v2415_v9 = vld [vmem:[%s4251_s1 + $0x3e0] sm:$0xf]  ;;  %v2575_v10 = vld [vmem:[%s4251_s1 + $0x3ec] sm:$0xf0]  ;;  %849 = vmatpush.bf16.msra.mxu0 %v2032_v3 }
   0x5   :  { %v2015_v11 = vld [vmem:[%s4251_s1 + $0xc0] sm:$0xf]  ;;  %v2416_v12 = vor.u32 %v2575_v10, %v2415_v9  ;;  %v2475_v13 = vld [vmem:[%s4251_s1 + $0xcc] sm:$0xf0]  ;;  %868 = vmatpush.bf16.msra.mxu1 %v2160_v7 }
   0x6   :  { %v2143_v14 = vld [vmem:[%s4251_s1 + $0x1c0] sm:$0xf]  ;;  %v2507_v15 = vld [vmem:[%s4251_s1 + $0x1cc] sm:$0xf0]  ;;  %887 = vmatpush.bf16.msra.mxu2 %v2288_v8  ;;  %v2016_v16 = vor.u32 %v2475_v13, %v2015_v11 }
   0x7   :  { %v2144_v17 = vor.u32 %v2507_v15, %v2143_v14  ;;  %v2271_v18 = vld [vmem:[%s4251_s1 + $0x2c0] sm:$0xf]  ;;  %v2539_v19 = vld [vmem:[%s4251_s1 + $0x2cc] sm:$0xf0]  ;;  %906 = vmatpush.bf16.msra.mxu3 %v2416_v12 }
   0x8   :  { %v2399_v20 = vld [vmem:[%s4251_s1 + $0x3c0] sm:$0xf]  ;;  %v2272_v21 = vor.u32 %v2539_v19, %v2271_v18  ;;  %v2571_v22 = vld [vmem:[%s4251_s1 + $0x3cc] sm:$0xf0]  ;;  %850 = vmatpush.bf16.msra.mxu0 %v2016_v16 }
   0x9   :  { %v1999_v23 = vld [vmem:[%s4251_s1 + $0xa0] sm:$0xf]  ;;  %v2471_v24 = vld [vmem:[%s4251_s1 + $0xac] sm:$0xf0]  ;;  %v2400_v25 = vor.u32 %v2571_v22, %v2399_v20  ;;  %869 = vmatpush.bf16.msra.mxu1 %v2144_v17 }
   0xa   :  { %v2127_v26 = vld [vmem:[%s4251_s1 + $0x1a0] sm:$0xf]  ;;  %v2503_v27 = vld [vmem:[%s4251_s1 + $0x1ac] sm:$0xf0]  ;;  %v2000_v29 = vor.u32 %v2471_v24, %v1999_v23  ;;  %888 = vmatpush.bf16.msra.mxu2 %v2272_v21 }
   0xb   :  { %v2255_v28 = vld [vmem:[%s4251_s1 + $0x2a0] sm:$0xf]  ;;  %v2535_v30 = vld [vmem:[%s4251_s1 + $0x2ac] sm:$0xf0]  ;;  %v2128_v33 = vor.u32 %v2503_v27, %v2127_v26  ;;  %907 = vmatpush.bf16.msra.mxu3 %v2400_v25 }
   0xc   :  { %v2383_v31 = vld [vmem:[%s4251_s1 + $0x3a0] sm:$0xf]  ;;  %v2567_v32 = vld [vmem:[%s4251_s1 + $0x3ac] sm:$0xf0]  ;;  %v2256_v34 = vor.u32 %v2535_v30, %v2255_v28  ;;  %851 = vmatpush.bf16.msra.mxu0 %v2000_v29  ;;  %v2441_v30 = vld [vmem:[%s4252_s0 + $0x4] sm:$0xf] }
   0xd   :  { %v1983_v35 = vld [vmem:[%s4251_s1 + $0x80] sm:$0xf]  ;;  %v2467_v36 = vld [vmem:[%s4251_s1 + $0x8c] sm:$0xf0]  ;;  %v2384_v38 = vor.u32 %v2567_v32, %v2383_v31  ;;  %870 = vmatpush.bf16.msra.mxu1 %v2128_v33  ;;  %v1889_v31 = vld [vmem:[%s4252_s0 + $0x10] sm:$0xf0] }
   0xe   :  { %v2111_v37 = vld [vmem:[%s4251_s1 + $0x180] sm:$0xf]  ;;  %v2499_v39 = vld [vmem:[%s4251_s1 + $0x18c] sm:$0xf0]  ;;  %v1984_v44 = vor.u32 %v2467_v36, %v1983_v35  ;;  %889 = vmatpush.bf16.msra.mxu2 %v2256_v34  ;;  %v2477_v32 = vld [vmem:[%s4251_s1 + $0xe4] sm:$0xf] }
   0xf   :  { %v2239_v40 = vld [vmem:[%s4251_s1 + $0x280] sm:$0xf]  ;;  %v2531_v41 = vld [vmem:[%s4251_s1 + $0x28c] sm:$0xf0]  ;;  %v2112_v45 = vor.u32 %v2499_v39, %v2111_v37  ;;  %908 = vmatpush.bf16.msra.mxu3 %v2384_v38  ;;  %v2033_v33 = vld [vmem:[%s4251_s1 + $0xf0] sm:$0xf0] }
  0x10   :  { %v2367_v42 = vld [vmem:[%s4251_s1 + $0x380] sm:$0xf]  ;;  %v2563_v43 = vld [vmem:[%s4251_s1 + $0x38c] sm:$0xf0]  ;;  %v2240_v46 = vor.u32 %v2531_v41, %v2239_v40  ;;  %852 = vmatpush.bf16.msra.mxu0 %v1984_v44  ;;  %v1895_v35 = vld [vmem:[%s4252_s0 + $0x8] sm:$0xf]  ;;  %v2036_v44 = vor.u32 %v2477_v32, %v2033_v33 }
  0x11   :  { %v1967_v47 = vld [vmem:[%s4251_s1 + $0x60] sm:$0xf]  ;;  %v2463_v48 = vld [vmem:[%s4251_s1 + $0x6c] sm:$0xf0]  ;;  %v2368_v50 = vor.u32 %v2563_v43, %v2367_v42  ;;  %871 = vmatpush.bf16.msra.mxu1 %v2112_v45  ;;  %v2509_v36 = vld [vmem:[%s4251_s1 + $0x1e4] sm:$0xf] }
  0x12   :  { %v2095_v49 = vld [vmem:[%s4251_s1 + $0x160] sm:$0xf]  ;;  %v2495_v51 = vld [vmem:[%s4251_s1 + $0x16c] sm:$0xf0]  ;;  %v1968_v56 = vor.u32 %v2463_v48, %v1967_v47  ;;  %890 = vmatpush.bf16.msra.mxu2 %v2240_v46  ;;  %v2161_v37 = vld [vmem:[%s4251_s1 + $0x1f0] sm:$0xf0] }
  0x13   :  { %v2223_v52 = vld [vmem:[%s4251_s1 + $0x260] sm:$0xf]  ;;  %v2527_v53 = vld [vmem:[%s4251_s1 + $0x26c] sm:$0xf0]  ;;  %v2096_v57 = vor.u32 %v2495_v51, %v2095_v49  ;;  %909 = vmatpush.bf16.msra.mxu3 %v2368_v50  ;;  %v2444_v40 = vld [vmem:[%s4252_s0 + $0x14] sm:$0xf0]  ;;  %v2164_v49 = vor.u32 %v2509_v36, %v2161_v37 }
  0x14   :  { %v2351_v54 = vld [vmem:[%s4251_s1 + $0x360] sm:$0xf]  ;;  %v2559_v55 = vld [vmem:[%s4251_s1 + $0x36c] sm:$0xf0]  ;;  %v2224_v58 = vor.u32 %v2527_v53, %v2223_v52  ;;  %853 = vmatpush.bf16.msra.mxu0 %v1968_v56  ;;  %v2442_v41 = vld [vmem:[%s4252_s0 + $0xc] sm:$0xf]  ;;  %v2927_v53 = vor.u32 %v2441_v30, %v1889_v31 }
  0x15   :  { %v1951_v59 = vld [vmem:[%s4251_s1 + $0x40] sm:$0xf]  ;;  %v2459_v60 = vld [vmem:[%s4251_s1 + $0x4c] sm:$0xf0]  ;;  %v2352_v62 = vor.u32 %v2559_v55, %v2351_v54  ;;  %872 = vmatpush.bf16.msra.mxu1 %v2096_v57  ;;  %v1897_v42 = vld [vmem:[%s4252_s0 + $0x18] sm:$0xf0]  ;;  %v2929_v54 = vor.u32 %v2444_v40, %v1895_v35 }
  0x16   :  { %v2079_v61 = vld [vmem:[%s4251_s1 + $0x140] sm:$0xf]  ;;  %v2491_v63 = vld [vmem:[%s4251_s1 + $0x14c] sm:$0xf0]  ;;  %v1952_v4 = vor.u32 %v2459_v60, %v1951_v59  ;;  %891 = vmatpush.bf16.msra.mxu2 %v2224_v58  ;;  %v2541_v45 = vld [vmem:[%s4251_s1 + $0x2e4] sm:$0xf]  ;;  %v2937_v57 = vor.u32 %v2442_v41, %v1897_v42 }
  0x17   :  { %v2207_v0 = vld [vmem:[%s4251_s1 + $0x240] sm:$0xf]  ;;  %v2523_v1 = vld [vmem:[%s4251_s1 + $0x24c] sm:$0xf0]  ;;  %v2080_v5 = vor.u32 %v2491_v63, %v2079_v61  ;;  %910 = vmatpush.bf16.msra.mxu3 %v2352_v62  ;;  %v2289_v46 = vld [vmem:[%s4251_s1 + $0x2f0] sm:$0xf0] }
  0x18   :  { %v2335_v2 = vld [vmem:[%s4251_s1 + $0x340] sm:$0xf]  ;;  %v2555_v3 = vld [vmem:[%s4251_s1 + $0x34c] sm:$0xf0]  ;;  %v2208_v6 = vor.u32 %v2523_v1, %v2207_v0  ;;  %854 = vmatpush.bf16.msra.mxu0 %v1952_v4  ;;  %v2573_v47 = vld [vmem:[%s4251_s1 + $0x3e4] sm:$0xf]  ;;  %v2292_v58 = vor.u32 %v2541_v45, %v2289_v46 }
  0x19   :  { %v1935_v7 = vld [vmem:[%s4251_s1 + $0x20] sm:$0xf]  ;;  %v2455_v8 = vld [vmem:[%s4251_s1 + $0x2c] sm:$0xf0]  ;;  %v2336_v10 = vor.u32 %v2555_v3, %v2335_v2  ;;  %873 = vmatpush.bf16.msra.mxu1 %v2080_v5  ;;  %v2417_v50 = vld [vmem:[%s4251_s1 + $0x3f0] sm:$0xf0] }
  0x1a   :  { %v2063_v9 = vld [vmem:[%s4251_s1 + $0x120] sm:$0xf]  ;;  %v2487_v11 = vld [vmem:[%s4251_s1 + $0x12c] sm:$0xf0]  ;;  %v1936_v17 = vor.u32 %v2455_v8, %v1935_v7  ;;  %892 = vmatpush.bf16.msra.mxu2 %v2208_v6  ;;  %v2473_v51 = vld [vmem:[%s4251_s1 + $0xc4] sm:$0xf]  ;;  %v2420_v59 = vor.u32 %v2573_v47, %v2417_v50 }
  0x1b   :  { %v2191_v12 = vld [vmem:[%s4251_s1 + $0x220] sm:$0xf]  ;;  %v2519_v13 = vld [vmem:[%s4251_s1 + $0x22c] sm:$0xf0]  ;;  %v2064_v21 = vor.u32 %v2487_v11, %v2063_v9  ;;  %911 = vmatpush.bf16.msra.mxu3 %v2336_v10  ;;  %v2017_v52 = vld [vmem:[%s4251_s1 + $0xd0] sm:$0xf0] }
  0x1c   :  { %v2319_v14 = vld [vmem:[%s4251_s1 + $0x320] sm:$0xf]  ;;  %v2551_v15 = vld [vmem:[%s4251_s1 + $0x32c] sm:$0xf0]  ;;  %v2192_v22 = vor.u32 %v2519_v13, %v2191_v12  ;;  %855 = vmatpush.bf16.msra.mxu0 %v1936_v17  ;;  %v2505_v55 = vld [vmem:[%s4251_s1 + $0x1c4] sm:$0xf]  ;;  %v2020_v60 = vor.u32 %v2473_v51, %v2017_v52 }
  0x1d   :  { %v1919_v16 = vld [vmem:[%s4251_s1] sm:$0xf]  ;;  %v2451_v18 = vld [vmem:[%s4251_s1 + $0xc] sm:$0xf0]  ;;  %v2320_v26 = vor.u32 %v2551_v15, %v2319_v14  ;;  %874 = vmatpush.bf16.msra.mxu1 %v2064_v21  ;;  %v2145_v56 = vld [vmem:[%s4251_s1 + $0x1d0] sm:$0xf0] }
  0x1e   :  { %v2047_v19 = vld [vmem:[%s4251_s1 + $0x100] sm:$0xf]  ;;  %v2483_v20 = vld [vmem:[%s4251_s1 + $0x10c] sm:$0xf0]  ;;  %v1920_v34 = vor.u32 %v2451_v18, %v1919_v16  ;;  %893 = vmatpush.bf16.msra.mxu2 %v2192_v22  ;;  %v2537_v61 = vld [vmem:[%s4251_s1 + $0x2c4] sm:$0xf]  ;;  %v2148_v0 = vor.u32 %v2505_v55, %v2145_v56 }
  0x1f   :  { %v2175_v23 = vld [vmem:[%s4251_s1 + $0x200] sm:$0xf]  ;;  %v2515_v24 = vld [vmem:[%s4251_s1 + $0x20c] sm:$0xf0]  ;;  %v2048_v38 = vor.u32 %v2483_v20, %v2047_v19  ;;  %912 = vmatpush.bf16.msra.mxu3 %v2320_v26  ;;  %v2273_v62 = vld [vmem:[%s4251_s1 + $0x2d0] sm:$0xf0] }
  0x20   :  { %v2303_v25 = vld [vmem:[%s4251_s1 + $0x300] sm:$0xf]  ;;  %v2547_v27 = vld [vmem:[%s4251_s1 + $0x30c] sm:$0xf0]  ;;  %v2176_v39 = vor.u32 %v2515_v24, %v2175_v23  ;;  %856 = vmatpush.bf16.msra.mxu0 %v1920_v34  ;;  %v2569_v63 = vld [vmem:[%s4251_s1 + $0x3c4] sm:$0xf]  ;;  %v2276_v6 = vor.u32 %v2537_v61, %v2273_v62 }
  0x21   :  { %v1887_v28 = vld [vmem:[%s4252_s0] sm:$0xf]  ;;  %v2443_v29 = vld [vmem:[%s4252_s0 + $0xc] sm:$0xf0]  ;;  %v2304_v43 = vor.u32 %v2547_v27, %v2303_v25  ;;  %875 = vmatpush.bf16.msra.mxu1 %v2048_v38  ;;  %v2401_v1 = vld [vmem:[%s4251_s1 + $0x3d0] sm:$0xf0] }
  0x22   :  { %v2916_v48 = vor.u32 %v2443_v29, %v1887_v28  ;;  %894 = vmatpush.bf16.msra.mxu2 %v2176_v39  ;;  %v2469_v2 = vld [vmem:[%s4251_s1 + $0xa4] sm:$0xf]  ;;  %v2001_v3 = vld [vmem:[%s4251_s1 + $0xb0] sm:$0xf0]  ;;  %v2404_v7 = vor.u32 %v2569_v63, %v2401_v1  ;;  %v1903_v25 = vld [vmem:[%s4252_s0 + $0x20] sm:$0xf] }
  0x23   :  { %913 = vmatpush.bf16.msra.mxu3 %v2304_v43  ;;  %v2501_v4 = vld [vmem:[%s4251_s1 + $0x1a4] sm:$0xf]  ;;  %v2129_v5 = vld [vmem:[%s4251_s1 + $0x1b0] sm:$0xf0]  ;;  %v2004_v8 = vor.u32 %v2469_v2, %v2001_v3  ;;  %v2447_v26 = vld [vmem:[%s4252_s0 + $0x2c] sm:$0xf0] }
  0x24   :  { %925 = vmatpush.bf16.msrb.mxu0 %v2036_v44  ;;  %876 = vmatmul.bf16.vlgmr.msra.gmra.mxu1 %v2927_v53  ;;  %v2533_v9 = vld [vmem:[%s4251_s1 + $0x2a4] sm:$0xf]  ;;  %v2257_v10 = vld [vmem:[%s4251_s1 + $0x2b0] sm:$0xf0]  ;;  %v2132_v12 = vor.u32 %v2501_v4, %v2129_v5  ;;  %v1911_v32 = vld [vmem:[%s4252_s0 + $0x28] sm:$0xf]  ;;  %v3048_v44 = vor.u32 %v2447_v26, %v1903_v25 }
  0x25   :  { %857 = vmatmul.bf16.vlgmr.msra.gmra.mxu0 %v2916_v48  ;;  %944 = vmatpush.bf16.msrb.mxu1 %v2164_v49  ;;  %v2565_v11 = vld [vmem:[%s4251_s1 + $0x3a4] sm:$0xf]  ;;  %v2385_v13 = vld [vmem:[%s4251_s1 + $0x3b0] sm:$0xf0]  ;;  %v2260_v18 = vor.u32 %v2533_v9, %v2257_v10  ;;  %v2448_v36 = vld [vmem:[%s4252_s0 + $0x34] sm:$0xf0] }
  0x26   :  { %895 = vmatmul.bf16.vlgmr.msra.gmra.mxu2 %v2929_v54  ;;  %914 = vmatmul.bf16.vlgmr.msra.gmra.mxu3 %v2937_v57  ;;  %v2465_v14 = vld [vmem:[%s4251_s1 + $0x84] sm:$0xf]  ;;  %v1985_v15 = vld [vmem:[%s4251_s1 + $0x90] sm:$0xf0]  ;;  %v2388_v22 = vor.u32 %v2565_v11, %v2385_v13  ;;  %v2446_v37 = vld [vmem:[%s4252_s0 + $0x2c] sm:$0xf]  ;;  %v3061_v51 = vor.u32 %v2448_v36, %v1911_v32 }
  0x27   :  { %963 = vmatpush.bf16.msrb.mxu2 %v2292_v58  ;;  %982 = vmatpush.bf16.msrb.mxu3 %v2420_v59  ;;  %v2497_v16 = vld [vmem:[%s4251_s1 + $0x184] sm:$0xf]  ;;  %v2113_v17 = vld [vmem:[%s4251_s1 + $0x190] sm:$0xf0]  ;;  %v1988_v23 = vor.u32 %v2465_v14, %v1985_v15  ;;  %v1913_v38 = vld [vmem:[%s4252_s0 + $0x38] sm:$0xf0] }
  0x28   :  { %926 = vmatpush.bf16.msrb.mxu0 %v2020_v60  ;;  %v2529_v19 = vld [vmem:[%s4251_s1 + $0x284] sm:$0xf]  ;;  %v2241_v20 = vld [vmem:[%s4251_s1 + $0x290] sm:$0xf0]  ;;  %v2116_v27 = vor.u32 %v2497_v16, %v2113_v17  ;;  %v3069_v56 = vor.u32 %v2446_v37, %v1913_v38  ;;  %v2544_v32 = vld [vmem:[%s4251_s1 + $0x2f4] sm:$0xf0] }
  0x29   :  { %945 = vmatpush.bf16.msrb.mxu1 %v2148_v0  ;;  %v2561_v21 = vld [vmem:[%s4251_s1 + $0x384] sm:$0xf]  ;;  %v2369_v24 = vld [vmem:[%s4251_s1 + $0x390] sm:$0xf0]  ;;  %v2244_v35 = vor.u32 %v2529_v19, %v2241_v20  ;;  %v2480_v19 = vld [vmem:[%s4251_s1 + $0xf4] sm:$0xf0] }
  0x2a   :  { %v2445_v28 = vld [vmem:[%s4252_s0 + $0x24] sm:$0xf]  ;;  %v1905_v29 = vld [vmem:[%s4252_s0 + $0x30] sm:$0xf0]  ;;  %v2372_v39 = vor.u32 %v2561_v21, %v2369_v24  ;;  %v2167_v21 = vld [vmem:[%s4251_s1 + $0x1e8] sm:$0xf] }
  0x2b   :  { %964 = vmatpush.bf16.msrb.mxu2 %v2276_v6  ;;  %983 = vmatpush.bf16.msrb.mxu3 %v2404_v7  ;;  %v2461_v30 = vld [vmem:[%s4251_s1 + $0x64] sm:$0xf]  ;;  %v1969_v31 = vld [vmem:[%s4251_s1 + $0x70] sm:$0xf0]  ;;  %v3059_v50 = vor.u32 %v2445_v28, %v1905_v29 }
  0x2c   :  { %927 = vmatpush.bf16.msrb.mxu0 %v2004_v8  ;;  %v2493_v33 = vld [vmem:[%s4251_s1 + $0x164] sm:$0xf]  ;;  %v2097_v34 = vld [vmem:[%s4251_s1 + $0x170] sm:$0xf0]  ;;  %v1972_v40 = vor.u32 %v2461_v30, %v1969_v31  ;;  %v2295_v31 = vld [vmem:[%s4251_s1 + $0x2e8] sm:$0xf] }
  0x2d   :  { %946 = vmatpush.bf16.msrb.mxu1 %v2132_v12  ;;  %v2525_v41 = vld [vmem:[%s4251_s1 + $0x264] sm:$0xf]  ;;  %v2225_v42 = vld [vmem:[%s4251_s1 + $0x270] sm:$0xf0]  ;;  %v2100_v45 = vor.u32 %v2493_v33, %v2097_v34  ;;  %v2423_v34 = vld [vmem:[%s4251_s1 + $0x3e8] sm:$0xf]  ;;  %v2296_v38 = vor.u32 %v2544_v32, %v2295_v31 }
  0x2e   :  { %v2557_v43 = vld [vmem:[%s4251_s1 + $0x364] sm:$0xf]  ;;  %v2353_v46 = vld [vmem:[%s4251_s1 + $0x370] sm:$0xf0]  ;;  %v2228_v58 = vor.u32 %v2525_v41, %v2225_v42  ;;  %v2151_v41 = vld [vmem:[%s4251_s1 + $0x1c8] sm:$0xf] }
  0x2f   :  { %965 = vmatpush.bf16.msrb.mxu2 %v2260_v18  ;;  %984 = vmatpush.bf16.msrb.mxu3 %v2388_v22  ;;  %v2457_v47 = vld [vmem:[%s4251_s1 + $0x44] sm:$0xf]  ;;  %v1953_v49 = vld [vmem:[%s4251_s1 + $0x50] sm:$0xf0]  ;;  %v2356_v59 = vor.u32 %v2557_v43, %v2353_v46  ;;  %v2039_v18 = vld [vmem:[%s4251_s1 + $0xe8] sm:$0xf] }
  0x30   :  { %928 = vmatpush.bf16.msrb.mxu0 %v1988_v23  ;;  %v2489_v52 = vld [vmem:[%s4251_s1 + $0x144] sm:$0xf]  ;;  %v2081_v55 = vld [vmem:[%s4251_s1 + $0x150] sm:$0xf0]  ;;  %v1956_v60 = vor.u32 %v2457_v47, %v1953_v49  ;;  %v2512_v22 = vld [vmem:[%s4251_s1 + $0x1f4] sm:$0xf0]  ;;  %v2040_v30 = vor.u32 %v2480_v19, %v2039_v18 }
  0x31   :  { %947 = vmatpush.bf16.msrb.mxu1 %v2116_v27  ;;  %v2521_v61 = vld [vmem:[%s4251_s1 + $0x244] sm:$0xf]  ;;  %v2209_v62 = vld [vmem:[%s4251_s1 + $0x250] sm:$0xf0]  ;;  %v2084_v0 = vor.u32 %v2489_v52, %v2081_v55  ;;  %v2168_v33 = vor.u32 %v2512_v22, %v2167_v21  ;;  %v2508_v43 = vld [vmem:[%s4251_s1 + $0x1d4] sm:$0xf0] }
  0x32   :  { %v2553_v63 = vld [vmem:[%s4251_s1 + $0x344] sm:$0xf]  ;;  %v2337_v1 = vld [vmem:[%s4251_s1 + $0x350] sm:$0xf0]  ;;  %v2212_v6 = vor.u32 %v2521_v61, %v2209_v62  ;;  %v2540_v46 = vld [vmem:[%s4251_s1 + $0x2d4] sm:$0xf0]  ;;  %v2152_v55 = vor.u32 %v2508_v43, %v2151_v41 }
  0x33   :  { %966 = vmatpush.bf16.msrb.mxu2 %v2244_v35  ;;  %985 = vmatpush.bf16.msrb.mxu3 %v2372_v39  ;;  %v2453_v2 = vld [vmem:[%s4251_s1 + $0x24] sm:$0xf]  ;;  %v1937_v3 = vld [vmem:[%s4251_s1 + $0x30] sm:$0xf0]  ;;  %v2340_v8 = vor.u32 %v2553_v63, %v2337_v1  ;;  %v2576_v35 = vld [vmem:[%s4251_s1 + $0x3f4] sm:$0xf0] }
  0x34   :  { %929 = vmatpush.bf16.msrb.mxu0 %v1972_v40  ;;  %881 = vmatmul.bf16.gmra.mxu1 %v3059_v50  ;;  %v2485_v4 = vld [vmem:[%s4251_s1 + $0x124] sm:$0xf]  ;;  %v2065_v5 = vld [vmem:[%s4251_s1 + $0x130] sm:$0xf0]  ;;  %v1940_v9 = vor.u32 %v2453_v2, %v1937_v3  ;;  %v2023_v39 = vld [vmem:[%s4251_s1 + $0xc8] sm:$0xf]  ;;  %v2424_v42 = vor.u32 %v2576_v35, %v2423_v34 }
  0x35   :  { %862 = vmatmul.bf16.gmra.mxu0 %v3048_v44  ;;  %948 = vmatpush.bf16.msrb.mxu1 %v2100_v45  ;;  %v2517_v7 = vld [vmem:[%s4251_s1 + $0x224] sm:$0xf]  ;;  %v2193_v10 = vld [vmem:[%s4251_s1 + $0x230] sm:$0xf0]  ;;  %v2068_v13 = vor.u32 %v2485_v4, %v2065_v5  ;;  %v2476_v40 = vld [vmem:[%s4251_s1 + $0xd4] sm:$0xf0] }
  0x36   :  { %900 = vmatmul.bf16.gmra.mxu2 %v3061_v51  ;;  %919 = vmatmul.bf16.gmra.mxu3 %v3069_v56  ;;  %v2549_v11 = vld [vmem:[%s4251_s1 + $0x324] sm:$0xf]  ;;  %v2321_v12 = vld [vmem:[%s4251_s1 + $0x330] sm:$0xf0]  ;;  %v2196_v20 = vor.u32 %v2517_v7, %v2193_v10  ;;  %v2279_v45 = vld [vmem:[%s4251_s1 + $0x2c8] sm:$0xf]  ;;  %v2024_v52 = vor.u32 %v2476_v40, %v2023_v39 }
  0x37   :  { %967 = vmatpush.bf16.msrb.mxu2 %v2228_v58  ;;  %986 = vmatpush.bf16.msrb.mxu3 %v2356_v59  ;;  %v2449_v14 = vld [vmem:[%s4251_s1 + $0x4] sm:$0xf]  ;;  %v1921_v15 = vld [vmem:[%s4251_s1 + $0x10] sm:$0xf0]  ;;  %v2324_v23 = vor.u32 %v2549_v11, %v2321_v12  ;;  %v2407_v47 = vld [vmem:[%s4251_s1 + $0x3c8] sm:$0xf]  ;;  %v2280_v58 = vor.u32 %v2540_v46, %v2279_v45 }
  0x38   :  { %930 = vmatpush.bf16.msrb.mxu0 %v1956_v60  ;;  %v2481_v16 = vld [vmem:[%s4251_s1 + $0x104] sm:$0xf]  ;;  %v2049_v17 = vld [vmem:[%s4251_s1 + $0x110] sm:$0xf0]  ;;  %v1924_v24 = vor.u32 %v2449_v14, %v1921_v15  ;;  %v2572_v49 = vld [vmem:[%s4251_s1 + $0x3d4] sm:$0xf0] }
  0x39   :  { %949 = vmatpush.bf16.msrb.mxu1 %v2084_v0  ;;  %v2513_v25 = vld [vmem:[%s4251_s1 + $0x204] sm:$0xf]  ;;  %v2177_v26 = vld [vmem:[%s4251_s1 + $0x210] sm:$0xf0]  ;;  %v2052_v28 = vor.u32 %v2481_v16, %v2049_v17  ;;  %v2007_v59 = vld [vmem:[%s4251_s1 + $0xa8] sm:$0xf]  ;;  %v2408_v62 = vor.u32 %v2572_v49, %v2407_v47 }
  0x3a   :  { %v2545_v27 = vld [vmem:[%s4251_s1 + $0x304] sm:$0xf]  ;;  %v2305_v29 = vld [vmem:[%s4251_s1 + $0x310] sm:$0xf0]  ;;  %v2180_v36 = vor.u32 %v2513_v25, %v2177_v26  ;;  %v2472_v60 = vld [vmem:[%s4251_s1 + $0xb4] sm:$0xf0] }
  0x3b   :  { %968 = vmatpush.bf16.msrb.mxu2 %v2212_v6  ;;  %987 = vmatpush.bf16.msrb.mxu3 %v2340_v8  ;;  %v2308_v37 = vor.u32 %v2545_v27, %v2305_v29  ;;  %v2135_v61 = vld [vmem:[%s4251_s1 + $0x1a8] sm:$0xf]  ;;  %v2504_v63 = vld [vmem:[%s4251_s1 + $0x1b4] sm:$0xf0]  ;;  %v2008_v4 = vor.u32 %v2472_v60, %v2007_v59 }
  0x3c   :  { %931 = vmatpush.bf16.msrb.mxu0 %v1940_v9  ;;  %v2263_v0 = vld [vmem:[%s4251_s1 + $0x2a8] sm:$0xf]  ;;  %v2536_v1 = vld [vmem:[%s4251_s1 + $0x2b4] sm:$0xf0]  ;;  %v2136_v5 = vor.u32 %v2504_v63, %v2135_v61 }
  0x3d   :  { %950 = vmatpush.bf16.msrb.mxu1 %v2068_v13  ;;  %v2391_v2 = vld [vmem:[%s4251_s1 + $0x3a8] sm:$0xf]  ;;  %v2568_v3 = vld [vmem:[%s4251_s1 + $0x3b4] sm:$0xf0]  ;;  %v2264_v6 = vor.u32 %v2536_v1, %v2263_v0 }
  0x3e   :  { %v1991_v7 = vld [vmem:[%s4251_s1 + $0x88] sm:$0xf]  ;;  %v2468_v8 = vld [vmem:[%s4251_s1 + $0x94] sm:$0xf0]  ;;  %v2392_v10 = vor.u32 %v2568_v3, %v2391_v2 }
  0x3f   :  { %969 = vmatpush.bf16.msrb.mxu2 %v2196_v20  ;;  %988 = vmatpush.bf16.msrb.mxu3 %v2324_v23  ;;  %v2119_v9 = vld [vmem:[%s4251_s1 + $0x188] sm:$0xf]  ;;  %v2500_v11 = vld [vmem:[%s4251_s1 + $0x194] sm:$0xf0]  ;;  %v1992_v16 = vor.u32 %v2468_v8, %v1991_v7  ;;  %v2478_v8 = vld [vmem:[%s4251_s1 + $0xec] sm:$0xf] }
  0x40   :  { %932 = vmatpush.bf16.msrb.mxu0 %v1924_v24  ;;  %v2247_v12 = vld [vmem:[%s4251_s1 + $0x288] sm:$0xf]  ;;  %v2532_v13 = vld [vmem:[%s4251_s1 + $0x294] sm:$0xf0]  ;;  %v2120_v17 = vor.u32 %v2500_v11, %v2119_v9  ;;  %v2041_v9 = vld [vmem:[%s4251_s1 + $0xf8] sm:$0xf0] }
  0x41   :  { %951 = vmatpush.bf16.msrb.mxu1 %v2052_v28  ;;  %v2375_v14 = vld [vmem:[%s4251_s1 + $0x388] sm:$0xf]  ;;  %v2564_v15 = vld [vmem:[%s4251_s1 + $0x394] sm:$0xf0]  ;;  %v2248_v18 = vor.u32 %v2532_v13, %v2247_v12  ;;  %v2169_v12 = vld [vmem:[%s4251_s1 + $0x1f8] sm:$0xf0] }
  0x42   :  { %v1975_v19 = vld [vmem:[%s4251_s1 + $0x68] sm:$0xf]  ;;  %v2464_v20 = vld [vmem:[%s4251_s1 + $0x74] sm:$0xf0]  ;;  %v2376_v22 = vor.u32 %v2564_v15, %v2375_v14  ;;  %v2542_v13 = vld [vmem:[%s4251_s1 + $0x2ec] sm:$0xf] }
  0x43   :  { %970 = vmatpush.bf16.msrb.mxu2 %v2180_v36  ;;  %989 = vmatpush.bf16.msrb.mxu3 %v2308_v37  ;;  %v2103_v21 = vld [vmem:[%s4251_s1 + $0x168] sm:$0xf]  ;;  %v2496_v23 = vld [vmem:[%s4251_s1 + $0x174] sm:$0xf0]  ;;  %v1976_v28 = vor.u32 %v2464_v20, %v1975_v19  ;;  %v2297_v14 = vld [vmem:[%s4251_s1 + $0x2f8] sm:$0xf0]  ;;  %v2044_v20 = vor.u32 %v2478_v8, %v2041_v9 }
  0x44   :  { %1001 = vmatpush.bf16.msra.mxu0 %v2040_v30  ;;  %952 = vmatmul.bf16.vlgmr.msrb.gmra.mxu1 %v2927_v53  ;;  %v2231_v24 = vld [vmem:[%s4251_s1 + $0x268] sm:$0xf]  ;;  %v2528_v25 = vld [vmem:[%s4251_s1 + $0x274] sm:$0xf0]  ;;  %v2104_v29 = vor.u32 %v2496_v23, %v2103_v21  ;;  %v2526_v8 = vld [vmem:[%s4251_s1 + $0x26c] sm:$0xf] }
  0x45   :  { %1020 = vmatpush.bf16.msra.mxu1 %v2168_v33  ;;  %933 = vmatmul.bf16.vlgmr.msrb.gmra.mxu0 %v2916_v48  ;;  %v2359_v26 = vld [vmem:[%s4251_s1 + $0x368] sm:$0xf]  ;;  %v2560_v27 = vld [vmem:[%s4251_s1 + $0x374] sm:$0xf0]  ;;  %v2232_v30 = vor.u32 %v2528_v25, %v2231_v24  ;;  %v2474_v24 = vld [vmem:[%s4251_s1 + $0xcc] sm:$0xf] }
  0x46   :  { %971 = vmatmul.bf16.vlgmr.msrb.gmra.mxu2 %v2929_v54  ;;  %990 = vmatmul.bf16.vlgmr.msrb.gmra.mxu3 %v2937_v57  ;;  %v1959_v31 = vld [vmem:[%s4251_s1 + $0x48] sm:$0xf]  ;;  %v2460_v32 = vld [vmem:[%s4251_s1 + $0x54] sm:$0xf0]  ;;  %v2360_v34 = vor.u32 %v2560_v27, %v2359_v26  ;;  %v2025_v25 = vld [vmem:[%s4251_s1 + $0xd8] sm:$0xf0] }
  0x47   :  { %1039 = vmatpush.bf16.msra.mxu2 %v2296_v38  ;;  %1058 = vmatpush.bf16.msra.mxu3 %v2424_v42  ;;  %v2087_v33 = vld [vmem:[%s4251_s1 + $0x148] sm:$0xf]  ;;  %v2492_v35 = vld [vmem:[%s4251_s1 + $0x154] sm:$0xf0]  ;;  %v1960_v40 = vor.u32 %v2460_v32, %v1959_v31  ;;  %v2506_v26 = vld [vmem:[%s4251_s1 + $0x1cc] sm:$0xf]  ;;  %v2028_v32 = vor.u32 %v2474_v24, %v2025_v25 }
  0x48   :  { %1002 = vmatpush.bf16.msra.mxu0 %v2024_v52  ;;  %v2215_v36 = vld [vmem:[%s4251_s1 + $0x248] sm:$0xf]  ;;  %v2524_v37 = vld [vmem:[%s4251_s1 + $0x254] sm:$0xf0]  ;;  %v2088_v41 = vor.u32 %v2492_v35, %v2087_v33  ;;  %v2153_v27 = vld [vmem:[%s4251_s1 + $0x1d8] sm:$0xf0] }
  0x49   :  { %1021 = vmatpush.bf16.msra.mxu1 %v2152_v55  ;;  %v2343_v38 = vld [vmem:[%s4251_s1 + $0x348] sm:$0xf]  ;;  %v2556_v39 = vld [vmem:[%s4251_s1 + $0x354] sm:$0xf0]  ;;  %v2216_v42 = vor.u32 %v2524_v37, %v2215_v36  ;;  %v2409_v31 = vld [vmem:[%s4251_s1 + $0x3d8] sm:$0xf0]  ;;  %v2156_v33 = vor.u32 %v2506_v26, %v2153_v27 }
  0x4a   :  { %v1943_v43 = vld [vmem:[%s4251_s1 + $0x28] sm:$0xf]  ;;  %v2456_v45 = vld [vmem:[%s4251_s1 + $0x34] sm:$0xf0]  ;;  %v2344_v47 = vor.u32 %v2556_v39, %v2343_v38  ;;  %v2470_v35 = vld [vmem:[%s4251_s1 + $0xac] sm:$0xf] }
  0x4b   :  { %1040 = vmatpush.bf16.msra.mxu2 %v2280_v58  ;;  %1059 = vmatpush.bf16.msra.mxu3 %v2408_v62  ;;  %v2071_v46 = vld [vmem:[%s4251_s1 + $0x128] sm:$0xf]  ;;  %v2488_v49 = vld [vmem:[%s4251_s1 + $0x134] sm:$0xf0]  ;;  %v1944_v60 = vor.u32 %v2456_v45, %v1943_v43  ;;  %v2009_v36 = vld [vmem:[%s4251_s1 + $0xb8] sm:$0xf0] }
  0x4c   :  { %1003 = vmatpush.bf16.msra.mxu0 %v2008_v4  ;;  %v2199_v52 = vld [vmem:[%s4251_s1 + $0x228] sm:$0xf]  ;;  %v2520_v55 = vld [vmem:[%s4251_s1 + $0x234] sm:$0xf0]  ;;  %v2072_v63 = vor.u32 %v2488_v49, %v2071_v46  ;;  %v2502_v37 = vld [vmem:[%s4251_s1 + $0x1ac] sm:$0xf]  ;;  %v2012_v45 = vor.u32 %v2470_v35, %v2009_v36 }
  0x4d   :  { %1022 = vmatpush.bf16.msra.mxu1 %v2136_v5  ;;  %v2327_v58 = vld [vmem:[%s4251_s1 + $0x328] sm:$0xf]  ;;  %v2552_v59 = vld [vmem:[%s4251_s1 + $0x334] sm:$0xf0]  ;;  %v2200_v0 = vor.u32 %v2520_v55, %v2199_v52  ;;  %v2137_v39 = vld [vmem:[%s4251_s1 + $0x1b8] sm:$0xf0] }
  0x4e   :  { %v1927_v61 = vld [vmem:[%s4251_s1 + $0x8] sm:$0xf]  ;;  %v2452_v62 = vld [vmem:[%s4251_s1 + $0x14] sm:$0xf0]  ;;  %v2328_v4 = vor.u32 %v2552_v59, %v2327_v58  ;;  %v2393_v43 = vld [vmem:[%s4251_s1 + $0x3b8] sm:$0xf0]  ;;  %v2140_v46 = vor.u32 %v2502_v37, %v2137_v39 }
  0x4f   :  { %1041 = vmatpush.bf16.msra.mxu2 %v2264_v6  ;;  %1060 = vmatpush.bf16.msra.mxu3 %v2392_v10  ;;  %v2055_v1 = vld [vmem:[%s4251_s1 + $0x108] sm:$0xf]  ;;  %v2484_v2 = vld [vmem:[%s4251_s1 + $0x114] sm:$0xf0]  ;;  %v2510_v10 = vld [vmem:[%s4251_s1 + $0x1ec] sm:$0xf]  ;;  %v1928_v11 = vor.u32 %v2452_v62, %v1927_v61 }
  0x50   :  { %1004 = vmatpush.bf16.msra.mxu0 %v1992_v16  ;;  %v2183_v3 = vld [vmem:[%s4251_s1 + $0x208] sm:$0xf]  ;;  %v2516_v5 = vld [vmem:[%s4251_s1 + $0x214] sm:$0xf0]  ;;  %v2056_v15 = vor.u32 %v2484_v2, %v2055_v1  ;;  %v2172_v21 = vor.u32 %v2510_v10, %v2169_v12  ;;  %v2466_v49 = vld [vmem:[%s4251_s1 + $0x8c] sm:$0xf] }
  0x51   :  { %1023 = vmatpush.bf16.msra.mxu1 %v2120_v17  ;;  %v2311_v6 = vld [vmem:[%s4251_s1 + $0x308] sm:$0xf]  ;;  %v2548_v7 = vld [vmem:[%s4251_s1 + $0x314] sm:$0xf0]  ;;  %v2184_v16 = vor.u32 %v2516_v5, %v2183_v3  ;;  %v2574_v17 = vld [vmem:[%s4251_s1 + $0x3ec] sm:$0xf] }
  0x52   :  { %v2312_v19 = vor.u32 %v2548_v7, %v2311_v6  ;;  %v1993_v52 = vld [vmem:[%s4251_s1 + $0x98] sm:$0xf0]  ;;  %v2498_v55 = vld [vmem:[%s4251_s1 + $0x18c] sm:$0xf] }
  0x53   :  { %1042 = vmatpush.bf16.msra.mxu2 %v2248_v18  ;;  %1061 = vmatpush.bf16.msra.mxu3 %v2376_v22  ;;  %v2425_v18 = vld [vmem:[%s4251_s1 + $0x3f8] sm:$0xf0]  ;;  %v2300_v22 = vor.u32 %v2542_v13, %v2297_v14  ;;  %v2562_v62 = vld [vmem:[%s4251_s1 + $0x38c] sm:$0xf] }
  0x54   :  { %1005 = vmatpush.bf16.msra.mxu0 %v1976_v28  ;;  %957 = vmatmul.bf16.gmra.mxu1 %v3059_v50  ;;  %v2428_v23 = vor.u32 %v2574_v17, %v2425_v18  ;;  %v2538_v28 = vld [vmem:[%s4251_s1 + $0x2cc] sm:$0xf]  ;;  %v2121_v59 = vld [vmem:[%s4251_s1 + $0x198] sm:$0xf0] }
  0x55   :  { %1024 = vmatpush.bf16.msra.mxu1 %v2104_v29  ;;  %938 = vmatmul.bf16.gmra.mxu0 %v3048_v44  ;;  %v2281_v29 = vld [vmem:[%s4251_s1 + $0x2d8] sm:$0xf0]  ;;  %v2124_v1 = vor.u32 %v2498_v55, %v2121_v59  ;;  %v2462_v3 = vld [vmem:[%s4251_s1 + $0x6c] sm:$0xf] }
  0x56   :  { %976 = vmatmul.bf16.gmra.mxu2 %v3061_v51  ;;  %995 = vmatmul.bf16.gmra.mxu3 %v3069_v56  ;;  %v2249_v61 = vld [vmem:[%s4251_s1 + $0x298] sm:$0xf0]  ;;  %v2494_v5 = vld [vmem:[%s4251_s1 + $0x16c] sm:$0xf] }
  0x57   :  { %1043 = vmatpush.bf16.msra.mxu2 %v2232_v30  ;;  %1062 = vmatpush.bf16.msra.mxu3 %v2360_v34  ;;  %v2570_v30 = vld [vmem:[%s4251_s1 + $0x3cc] sm:$0xf]  ;;  %v2284_v34 = vor.u32 %v2538_v28, %v2281_v29  ;;  %v2105_v7 = vld [vmem:[%s4251_s1 + $0x178] sm:$0xf0] }
  0x58   :  { %1006 = vmatpush.bf16.msra.mxu0 %v1960_v40  ;;  %v2412_v38 = vor.u32 %v2570_v30, %v2409_v31  ;;  %v2534_v40 = vld [vmem:[%s4251_s1 + $0x2ac] sm:$0xf]  ;;  %v2233_v9 = vld [vmem:[%s4251_s1 + $0x278] sm:$0xf0]  ;;  %v2108_v13 = vor.u32 %v2494_v5, %v2105_v7  ;;  %v3609_v7 = vld [vmem:[%s4253_s3 + $0x180] sm:$0xff] }
  0x59   :  { %1025 = vmatpush.bf16.msra.mxu1 %v2088_v41  ;;  %v2265_v41 = vld [vmem:[%s4251_s1 + $0x2b8] sm:$0xf0]  ;;  %v2558_v10 = vld [vmem:[%s4251_s1 + $0x36c] sm:$0xf]  ;;  %v2236_v14 = vor.u32 %v2526_v8, %v2233_v9  ;;  %v3633_v8 = vld [vmem:[%s4253_s3 + $0x160] sm:$0xff] }
  0x5a   :  { %v2490_v17 = vld [vmem:[%s4251_s1 + $0x14c] sm:$0xf]  ;;  %v1945_v28 = vld [vmem:[%s4251_s1 + $0x38] sm:$0xf0] }
  0x5b   :  { %1044 = vmatpush.bf16.msra.mxu2 %v2216_v42  ;;  %1063 = vmatpush.bf16.msra.mxu3 %v2344_v47  ;;  %v2566_v42 = vld [vmem:[%s4251_s1 + $0x3ac] sm:$0xf]  ;;  %v2268_v47 = vor.u32 %v2534_v40, %v2265_v41  ;;  %v2073_v31 = vld [vmem:[%s4251_s1 + $0x138] sm:$0xf0] }
  0x5c   :  { %1007 = vmatpush.bf16.msra.mxu0 %v1944_v60  ;;  %v2396_v58 = vor.u32 %v2566_v42, %v2393_v43  ;;  %v2530_v60 = vld [vmem:[%s4251_s1 + $0x28c] sm:$0xf]  ;;  %v2329_v35 = vld [vmem:[%s4251_s1 + $0x338] sm:$0xf0] }
  0x5d   :  { %1026 = vmatpush.bf16.msra.mxu1 %v2072_v63  ;;  %v2377_v63 = vld [vmem:[%s4251_s1 + $0x398] sm:$0xf0]  ;;  %v2252_v2 = vor.u32 %v2530_v60, %v2249_v61  ;;  %v2454_v27 = vld [vmem:[%s4251_s1 + $0x2c] sm:$0xf]  ;;  %v3538_v60 = vld [vmem:[%s4253_s3 + $0x1e0] sm:$0xff] }
  0x5e   :  { %v2380_v6 = vor.u32 %v2562_v62, %v2377_v63  ;;  %v2486_v29 = vld [vmem:[%s4251_s1 + $0x12c] sm:$0xf]  ;;  %v1948_v36 = vor.u32 %v2454_v27, %v1945_v28  ;;  %v1929_v40 = vld [vmem:[%s4251_s1 + $0x18] sm:$0xf0]  ;;  %v3548_v62 = vld [vmem:[%s4253_s3 + $0x1f0] sm:$0xff] }
  0x5f   :  { %1045 = vmatpush.bf16.msra.mxu2 %v2200_v0  ;;  %1064 = vmatpush.bf16.msra.mxu3 %v2328_v4  ;;  %v1996_v0 = vor.u32 %v2466_v49, %v1993_v52  ;;  %v1977_v4 = vld [vmem:[%s4251_s1 + $0x78] sm:$0xf0]  ;;  %v2076_v37 = vor.u32 %v2486_v29, %v2073_v31  ;;  %v2450_v39 = vld [vmem:[%s4251_s1 + $0xc] sm:$0xf]  ;;  %4312 = vst [vmem:[#allocation3_spill] sm:$0xff] %v3548_v62  ;;  %v3757_v28 = vld [vmem:[%s4253_s3 + $0xc0] sm:$0xff] }
  0x60   :  { %1008 = vmatpush.bf16.msra.mxu0 %v1928_v11  ;;  %v2361_v11 = vld [vmem:[%s4251_s1 + $0x378] sm:$0xf0]  ;;  %v1980_v12 = vor.u32 %v2462_v3, %v1977_v4  ;;  %v2482_v41 = vld [vmem:[%s4251_s1 + $0x10c] sm:$0xf]  ;;  %v1932_v52 = vor.u32 %v2450_v39, %v1929_v40  ;;  %v3585_v4 = vld [vmem:[%s4253_s3 + $0x1a0] sm:$0xff] }
  0x61   :  { %1027 = vmatpush.bf16.msra.mxu1 %v2056_v15  ;;  %v2458_v15 = vld [vmem:[%s4251_s1 + $0x4c] sm:$0xf]  ;;  %v2364_v18 = vor.u32 %v2558_v10, %v2361_v11  ;;  %v2057_v43 = vld [vmem:[%s4251_s1 + $0x118] sm:$0xf0]  ;;  %v3645_v10 = vld [vmem:[%s4253_s3 + $0x170] sm:$0xff] }
  0x62   :  { %v2313_v49 = vld [vmem:[%s4251_s1 + $0x318] sm:$0xf0]  ;;  %v2060_v55 = vor.u32 %v2482_v41, %v2057_v43  ;;  %v3543_v61 = vld [vmem:[%s4253_s3 + $0x1e8] sm:$0xff]  ;;  %4313 = vst [vmem:[#allocation4_spill] sm:$0xff] %v3645_v10  ;;  %v3781_v31 = vld [vmem:[%s4253_s3 + $0xa0] sm:$0xff] }
  0x63   :  { %1046 = vmatpush.bf16.msra.mxu2 %v2184_v16  ;;  %1065 = vmatpush.bf16.msra.mxu3 %v2312_v19  ;;  %v1961_v16 = vld [vmem:[%s4251_s1 + $0x58] sm:$0xf0]  ;;  %v3592_v5 = vld [vmem:[%s4253_s3 + $0x1a8] sm:$0xff]  ;;  %4317 = vst [vmem:[#allocation8_spill] sm:$0xff] %v3781_v31  ;;  %v3853_v40 = vld [vmem:[%s4253_s3 + $0x40] sm:$0xff] }
  0x64   :  { %1077 = vmatpush.bf16.msrb.mxu0 %v2044_v20  ;;  %1028 = vmatmul.bf16.vlgmr.msra.gmra.mxu1 %v2927_v53  ;;  %v2089_v19 = vld [vmem:[%s4251_s1 + $0x158] sm:$0xf0]  ;;  %v2522_v20 = vld [vmem:[%s4251_s1 + $0x24c] sm:$0xf]  ;;  %v1964_v24 = vor.u32 %v2458_v15, %v1961_v16  ;;  %v3681_v16 = vld [vmem:[%s4253_s3 + $0x120] sm:$0xff]  ;;  %4329 = vst [vmem:[#allocation20_spill] sm:$0xff] %v3853_v40 }
  0x65   :  { %1096 = vmatpush.bf16.msrb.mxu1 %v2172_v21  ;;  %1009 = vmatmul.bf16.vlgmr.msra.gmra.mxu0 %v2916_v48  ;;  %v2217_v21 = vld [vmem:[%s4251_s1 + $0x258] sm:$0xf0]  ;;  %v2092_v25 = vor.u32 %v2490_v17, %v2089_v19  ;;  %v3640_v9 = vld [vmem:[%s4253_s3 + $0x168] sm:$0xff]  ;;  %v3858_v41 = vld [vmem:[%s4254_s2] sm:$0xf] }
  0x66   :  { %1047 = vmatmul.bf16.vlgmr.msra.gmra.mxu2 %v2929_v54  ;;  %1066 = vmatmul.bf16.vlgmr.msra.gmra.mxu3 %v2937_v57  ;;  %v2220_v26 = vor.u32 %v2522_v20, %v2217_v21  ;;  %v3553_v63 = vld [vmem:[%s4253_s3 + $0x1f8] sm:$0xff]  ;;  %v3688_v17 = vld [vmem:[%s4253_s3 + $0x128] sm:$0xff]  ;;  %v3705_v20 = vld [vmem:[%s4253_s3 + $0x100] sm:$0xff]  ;;  %4330 = vst [vmem:[#allocation21_spill] sm:$0xff] %v3858_v41 }
  0x67   :  { %1115 = vmatpush.bf16.msrb.mxu2 %v2300_v22  ;;  %1134 = vmatpush.bf16.msrb.mxu3 %v2428_v23  ;;  %v2554_v22 = vld [vmem:[%s4251_s1 + $0x34c] sm:$0xf]  ;;  %v2345_v23 = vld [vmem:[%s4251_s1 + $0x358] sm:$0xf0]  ;;  %v3870_v43 = vld [vmem:[%s4253_s3 + $0x50] sm:$0xff] }
  0x68   :  { %1078 = vmatpush.bf16.msrb.mxu0 %v2028_v32  ;;  %v2348_v30 = vor.u32 %v2554_v22, %v2345_v23  ;;  %v2518_v32 = vld [vmem:[%s4251_s1 + $0x22c] sm:$0xf]  ;;  %v3576_v3 = vld [vmem:[%s4253_s3 + $0x1d8] sm:$0xff]  ;;  %v3717_v22 = vld [vmem:[%s4253_s3 + $0x110] sm:$0xff]  ;;  %4332 = vst [vmem:[#allocation23_spill] sm:$0xff] %v3870_v43 }
  0x69   :  { %1097 = vmatpush.bf16.msrb.mxu1 %v2156_v33  ;;  %v2201_v33 = vld [vmem:[%s4251_s1 + $0x238] sm:$0xf0]  ;;  %v3712_v21 = vld [vmem:[%s4253_s3 + $0x108] sm:$0xff] }
  0x6a   :  { %v3652_v11 = vld [vmem:[%s4253_s3 + $0x178] sm:$0xff]  ;;  %v3764_v29 = vld [vmem:[%s4253_s3 + $0xc8] sm:$0xff] }
  0x6b   :  { %1116 = vmatpush.bf16.msrb.mxu2 %v2284_v34  ;;  %1135 = vmatpush.bf16.msrb.mxu3 %v2412_v38  ;;  %v2550_v34 = vld [vmem:[%s4251_s1 + $0x32c] sm:$0xf]  ;;  %v2204_v38 = vor.u32 %v2518_v32, %v2201_v33  ;;  %v3676_v15 = vld [vmem:[%s4253_s3 + $0x158] sm:$0xff]  ;;  %4314 = vst [vmem:[#allocation5_spill] sm:$0xff] %v3764_v29  ;;  %v3805_v32 = vld [vmem:[%s4253_s3 + $0x80] sm:$0xff] }
  0x6c   :  { %1079 = vmatpush.bf16.msrb.mxu0 %v2012_v45  ;;  %v2332_v42 = vor.u32 %v2550_v34, %v2329_v35  ;;  %v2514_v45 = vld [vmem:[%s4251_s1 + $0x20c] sm:$0xf]  ;;  %v3700_v19 = vld [vmem:[%s4253_s3 + $0x138] sm:$0xff]  ;;  %4321 = vst [vmem:[#allocation12_spill] sm:$0xff] %v3805_v32  ;;  %v3817_v34 = vld [vmem:[%s4253_s3 + $0x90] sm:$0xff] }
  0x6d   :  { %1098 = vmatpush.bf16.msrb.mxu1 %v2140_v46  ;;  %v2185_v46 = vld [vmem:[%s4251_s1 + $0x218] sm:$0xf0]  ;;  %v3812_v33 = vld [vmem:[%s4253_s3 + $0x88] sm:$0xff]  ;;  %4323 = vst [vmem:[#allocation14_spill] sm:$0xff] %v3817_v34 }
  0x6e   :  { %v3724_v23 = vld [vmem:[%s4253_s3 + $0x118] sm:$0xff]  ;;  %4322 = vst [vmem:[#allocation13_spill] sm:$0xff] %v3812_v33 }
  0x6f   :  { %1117 = vmatpush.bf16.msrb.mxu2 %v2268_v47  ;;  %1136 = vmatpush.bf16.msrb.mxu3 %v2396_v58  ;;  %v2546_v47 = vld [vmem:[%s4251_s1 + $0x30c] sm:$0xf]  ;;  %v2188_v58 = vor.u32 %v2514_v45, %v2185_v46  ;;  %v3748_v27 = vld [vmem:[%s4253_s3 + $0xf8] sm:$0xff]  ;;  %v3882_v46 = vld [vmem:[%s4253_s3 + $0x20] sm:$0xff] }
  0x70   :  { %1080 = vmatpush.bf16.msrb.mxu0 %v1996_v0  ;;  %v2316_v59 = vor.u32 %v2546_v47, %v2313_v49  ;;  %v3558_v0 = vld [vmem:[%s4253_s3 + $0x1c0] sm:$0xff]  ;;  %v3824_v35 = vld [vmem:[%s4253_s3 + $0x98] sm:$0xff]  ;;  %4334 = vst [vmem:[#allocation25_spill] sm:$0xff] %v3882_v46  ;;  %v3889_v47 = vld [vmem:[%s4253_s3 + $0x28] sm:$0xff]  ;;  %v3892_v49 = vperm.slane %v3858_v41, 0 }
  0x71   :  { %1099 = vmatpush.bf16.msrb.mxu1 %v2124_v1  ;;  %v3564_v1 = vld [vmem:[%s4253_s3 + $0x1c8] sm:$0xff]  ;;  %4324 = vst [vmem:[#allocation15_spill] sm:$0xff] %v3824_v35  ;;  %v3848_v39 = vld [vmem:[%s4253_s3 + $0x78] sm:$0xff] }
  0x72   :  { %4328 = vst [vmem:[#allocation19_spill] sm:$0xff] %v3848_v39  ;;  %v3877_v45 = vld [vmem:[%s4253_s3 + $0x58] sm:$0xff] }
  0x73   :  { %1118 = vmatpush.bf16.msrb.mxu2 %v2252_v2  ;;  %1137 = vmatpush.bf16.msrb.mxu3 %v2380_v6  ;;  %v3569_v2 = vld [vmem:[%s4253_s3 + $0x1d0] sm:$0xff]  ;;  %4333 = vst [vmem:[#allocation24_spill] sm:$0xff] %v3877_v45 }
  0x74   :  { %1081 = vmatpush.bf16.msrb.mxu0 %v1980_v12  ;;  %1033 = vmatmul.bf16.gmra.mxu1 %v3059_v50  ;;  %v3597_v6 = vld [vmem:[%s4253_s3 + $0x1b0] sm:$0xff]  ;;  %v3657_v12 = vld [vmem:[%s4253_s3 + $0x140] sm:$0xff]  ;;  %4335 = vst [vmem:[#allocation26_spill] sm:$0xff] %v3889_v47 }
  0x75   :  { %1100 = vmatpush.bf16.msrb.mxu1 %v2108_v13  ;;  %1014 = vmatmul.bf16.gmra.mxu0 %v3048_v44  ;;  %v3664_v13 = vld [vmem:[%s4253_s3 + $0x148] sm:$0xff] }
  0x76   :  { %1052 = vmatmul.bf16.gmra.mxu2 %v3061_v51  ;;  %1071 = vmatmul.bf16.gmra.mxu3 %v3069_v56 }
  0x77   :  { %1119 = vmatpush.bf16.msrb.mxu2 %v2236_v14  ;;  %1138 = vmatpush.bf16.msrb.mxu3 %v2364_v18  ;;  %v3669_v14 = vld [vmem:[%s4253_s3 + $0x150] sm:$0xff] }
  0x78   :  { %1082 = vmatpush.bf16.msrb.mxu0 %v1964_v24  ;;  %v3693_v18 = vld [vmem:[%s4253_s3 + $0x130] sm:$0xff]  ;;  %v3729_v24 = vld [vmem:[%s4253_s3 + $0xe0] sm:$0xff] }
  0x79   :  { %1101 = vmatpush.bf16.msrb.mxu1 %v2092_v25  ;;  %v3736_v25 = vld [vmem:[%s4253_s3 + $0xe8] sm:$0xff] }
  0x7b   :  { %1120 = vmatpush.bf16.msrb.mxu2 %v2220_v26  ;;  %1139 = vmatpush.bf16.msrb.mxu3 %v2348_v30  ;;  %v3741_v26 = vld [vmem:[%s4253_s3 + $0xf0] sm:$0xff] }
  0x7c   :  { %1083 = vmatpush.bf16.msrb.mxu0 %v1948_v36  ;;  %v3769_v30 = vld [vmem:[%s4253_s3 + $0xd0] sm:$0xff]  ;;  %v3829_v36 = vld [vmem:[%s4253_s3 + $0x60] sm:$0xff] }
  0x7d   :  { %1102 = vmatpush.bf16.msrb.mxu1 %v2076_v37  ;;  %4315 = vst [vmem:[#allocation6_spill] sm:$0xff] %v3769_v30  ;;  %v3836_v37 = vld [vmem:[%s4253_s3 + $0x68] sm:$0xff] }
  0x7e   :  { %4325 = vst [vmem:[#allocation16_spill] sm:$0xff] %v3829_v36 }
  0x7f   :  { %1121 = vmatpush.bf16.msrb.mxu2 %v2204_v38  ;;  %1140 = vmatpush.bf16.msrb.mxu3 %v2332_v42  ;;  %4326 = vst [vmem:[#allocation17_spill] sm:$0xff] %v3836_v37  ;;  %v3841_v38 = vld [vmem:[%s4253_s3 + $0x70] sm:$0xff]  ;;  %v3865_v42 = vld [vmem:[%s4253_s3 + $0x48] sm:$0xff] }
  0x80   :  { %1084 = vmatpush.bf16.msrb.mxu0 %v1932_v52  ;;  %4327 = vst [vmem:[#allocation18_spill] sm:$0xff] %v3841_v38  ;;  %v3897_v52 = vld [vmem:[%s4253_s3 + $0x30] sm:$0xff] }
  0x81   :  { %1103 = vmatpush.bf16.msrb.mxu1 %v2060_v55  ;;  %4331 = vst [vmem:[#allocation22_spill] sm:$0xff] %v3865_v42  ;;  %v3904_v55 = vld [vmem:[%s4253_s3 + $0x38] sm:$0xff] }
  0x82   :  { %4336 = vst [vmem:[#allocation27_spill] sm:$0xff] %v3897_v52 }
  0x83   :  { %1122 = vmatpush.bf16.msrb.mxu2 %v2188_v58  ;;  %1141 = vmatpush.bf16.msrb.mxu3 %v2316_v59  ;;  %4337 = vst [vmem:[#allocation28_spill] sm:$0xff] %v3904_v55  ;;  %v3909_v58 = vld [vmem:[%s4253_s3] sm:$0xff]  ;;  %v3916_v59 = vld [vmem:[%s4253_s3 + $0x8] sm:$0xff] }
  0x84   :  { %1237 = vmatpush.msra.mxu0 %v3538_v60  ;;  %1104 = vmatmul.bf16.vlgmr.msrb.gmra.mxu1 %v2927_v53  ;;  %v3616_v53 = vld [vmem:[%s4253_s3 + $0x188] sm:$0xff]  ;;  %4338 = vst [vmem:[#allocation29_spill] sm:$0xff] %v3909_v58 }
  0x85   :  { %1257 = vmatpush.msra.mxu1 %v3543_v61  ;;  %1085 = vmatmul.bf16.vlgmr.msrb.gmra.mxu0 %v2916_v48  ;;  %v3604_v48 = vld [vmem:[%s4253_s3 + $0x1b8] sm:$0xff]  ;;  %4339 = vst [vmem:[#allocation30_spill] sm:$0xff] %v3916_v59 }
  0x86   :  { %1238 = vmatpush.msra.mxu0 %v3558_v0  ;;  %1123 = vmatmul.bf16.vlgmr.msrb.gmra.mxu2 %v2929_v54  ;;  %v3621_v54 = vld [vmem:[%s4253_s3 + $0x190] sm:$0xff] }
  0x87   :  { %1277 = vmatpush.msra.mxu2 %v3548_v62  ;;  %1297 = vmatpush.msra.mxu3 %v3553_v63 }
  0x88   :  { %1258 = vmatpush.msra.mxu1 %v3564_v1  ;;  %1142 = vmatmul.bf16.vlgmr.msrb.gmra.mxu3 %v2937_v57  ;;  %v3628_v57 = vld [vmem:[%s4253_s3 + $0x198] sm:$0xff] }
  0x89   :  { %1278 = vmatpush.msra.mxu2 %v3569_v2  ;;  %1298 = vmatpush.msra.mxu3 %v3576_v3 }
  0x8a   :  { %1239 = vmatpush.msra.mxu0 %v3585_v4  ;;  %1259 = vmatpush.msra.mxu1 %v3592_v5 }
  0x8b   :  { %1279 = vmatpush.msra.mxu2 %v3597_v6  ;;  %1299 = vmatpush.msra.mxu3 %v3604_v48 }
  0x8c   :  { %1240 = vmatpush.msra.mxu0 %v3609_v7  ;;  %1260 = vmatpush.msra.mxu1 %v3616_v53 }
  0x8d   :  { %1280 = vmatpush.msra.mxu2 %v3621_v54  ;;  %1300 = vmatpush.msra.mxu3 %v3628_v57 }
  0x8e   :  { %1241 = vmatpush.msra.mxu0 %v3633_v8  ;;  %1261 = vmatpush.msra.mxu1 %v3640_v9 }
  0x8f   :  { %1281 = vmatpush.msra.mxu2 %v3645_v10  ;;  %1301 = vmatpush.msra.mxu3 %v3652_v11 }
  0x90   :  { %1242 = vmatpush.msra.mxu0 %v3657_v12  ;;  %1262 = vmatpush.msra.mxu1 %v3664_v13 }
  0x91   :  { %1282 = vmatpush.msra.mxu2 %v3669_v14  ;;  %1302 = vmatpush.msra.mxu3 %v3676_v15 }
  0x92   :  { %1243 = vmatpush.msra.mxu0 %v3681_v16  ;;  %1263 = vmatpush.msra.mxu1 %v3688_v17 }
  0x93   :  { %1283 = vmatpush.msra.mxu2 %v3693_v18  ;;  %1303 = vmatpush.msra.mxu3 %v3700_v19 }
  0x94   :  { %1244 = vmatpush.msra.mxu0 %v3705_v20  ;;  %1264 = vmatpush.msra.mxu1 %v3712_v21 }
  0x95   :  { %1284 = vmatpush.msra.mxu2 %v3717_v22  ;;  %1304 = vmatpush.msra.mxu3 %v3724_v23 }
  0x96   :  { %1245 = vmatpush.msra.mxu0 %v3729_v24  ;;  %1265 = vmatpush.msra.mxu1 %v3736_v25 }
  0x97   :  { %1285 = vmatpush.msra.mxu2 %v3741_v26  ;;  %1090 = vmatmul.bf16.gmra.mxu0 %v3048_v44  ;;  %v3776_v44 = vld [vmem:[%s4253_s3 + $0xd8] sm:$0xff] }
  0x98   :  { %1305 = vmatpush.msra.mxu3 %v3748_v27  ;;  %1109 = vmatmul.bf16.gmra.mxu1 %v3059_v50  ;;  %4316 = vst [vmem:[#allocation7_spill] sm:$0xff] %v3776_v44  ;;  %v3788_v50 = vld [vmem:[%s4253_s3 + $0xa8] sm:$0xff] }
  0x99   :  { %1128 = vmatmul.bf16.gmra.mxu2 %v3061_v51  ;;  %1147 = vmatmul.bf16.gmra.mxu3 %v3069_v56  ;;  %4318 = vst [vmem:[#allocation9_spill] sm:$0xff] %v3788_v50  ;;  %v3793_v51 = vld [vmem:[%s4253_s3 + $0xb0] sm:$0xff]  ;;  %v3800_v56 = vld [vmem:[%s4253_s3 + $0xb8] sm:$0xff] }
  0x9a   :  { %1246 = vmatpush.msra.mxu0 %v3757_v28  ;;  %4319 = vst [vmem:[#allocation10_spill] sm:$0xff] %v3793_v51  ;;  %1266 = vmatpush.msra.mxu1 %v3764_v29 }
  0x9b   :  { %1286 = vmatpush.msra.mxu2 %v3769_v30  ;;  %4320 = vst [vmem:[#allocation11_spill] sm:$0xff] %v3800_v56  ;;  %1306 = vmatpush.msra.mxu3 %v3776_v44 }
  0x9c   :  { %1247 = vmatpush.msra.mxu0 %v3781_v31  ;;  %1267 = vmatpush.msra.mxu1 %v3788_v50 }
  0x9d   :  { %1287 = vmatpush.msra.mxu2 %v3793_v51  ;;  %1307 = vmatpush.msra.mxu3 %v3800_v56 }
  0x9e   :  { %1248 = vmatpush.msra.mxu0 %v3805_v32  ;;  %1268 = vmatpush.msra.mxu1 %v3812_v33 }
  0x9f   :  { %1288 = vmatpush.msra.mxu2 %v3817_v34  ;;  %1308 = vmatpush.msra.mxu3 %v3824_v35 }
  0xa0   :  { %1249 = vmatpush.msra.mxu0 %v3829_v36  ;;  %1269 = vmatpush.msra.mxu1 %v3836_v37 }
  0xa1   :  { %1289 = vmatpush.msra.mxu2 %v3841_v38  ;;  %1309 = vmatpush.msra.mxu3 %v3848_v39 }
  0xa2   :  { %1250 = vmatpush.msra.mxu0 %v3853_v40  ;;  %1270 = vmatpush.msra.mxu1 %v3865_v42  ;;  %v858_v42 = vpop.f32.mrf.mxu0  ;;  %v877_v40 = vpop.f32.mrf.mxu1 }
  0xa3   :  { %1290 = vmatpush.msra.mxu2 %v3870_v43  ;;  %1310 = vmatpush.msra.mxu3 %v3877_v45  ;;  %v3921_v43 = vld [vmem:[%s4253_s3 + $0x10] sm:$0xff]  ;;  %v3928_v45 = vld [vmem:[%s4253_s3 + $0x18] sm:$0xff] }
  0xa4   :  { %1251 = vmatpush.msra.mxu0 %v3882_v46  ;;  %4340 = vst [vmem:[#allocation31_spill] sm:$0xff] %v3921_v43  ;;  %1271 = vmatpush.msra.mxu1 %v3889_v47  ;;  %v859_v46 = vadd.f32 %v858_v42, %v3892_v49 }
  0xa5   :  { %1291 = vmatpush.msra.mxu2 %v3897_v52  ;;  %4341 = vst [vmem:[#allocation32_spill] sm:$0xff] %v3928_v45  ;;  %1311 = vmatpush.msra.mxu3 %v3904_v55  ;;  %v2643_v52 = vmov 0.0  }
  0xa6   :  { %1252 = vmatpush.msra.mxu0 %v3909_v58  ;;  %1272 = vmatpush.msra.mxu1 %v3916_v59  ;;  %v878_v47 = vadd.f32 %v877_v40, %v859_v46 }
  0xa7   :  { %1292 = vmatpush.msra.mxu2 %v3921_v43  ;;  %1312 = vmatpush.msra.mxu3 %v3928_v45 }
  0xa8   :  { %1253 = vmatmul.f32.vlgmr.msra.gmra.mxu0 %v2643_v52  ;;  %1273 = vmatmul.f32.vlgmr.msra.gmra.mxu1 %v2643_v52 }
  0xa9   :  { %1293 = vmatmul.f32.vlgmr.msra.gmra.mxu2 %v2643_v52  ;;  %1313 = vmatmul.f32.vlgmr.msra.gmra.mxu3 %v2643_v52  ;;  %v896_v42 = vpop.f32.mrf.mxu2  ;;  %v915_v40 = vpop.f32.mrf.mxu3 }
  0xaa   :  { %1389 = vmatpush.msrb.mxu0 %v3538_v60  ;;  %1409 = vmatpush.msrb.mxu1 %v3543_v61  ;;  %v897_v43 = vadd.f32 %v896_v42, %v878_v47  ;;  %v860_v46 = vpop.f32.mrf.mxu0  ;;  %v879_v45 = vpop.f32.mrf.mxu1 }
  0xab   :  { %1429 = vmatpush.msrb.mxu2 %v3548_v62  ;;  %1449 = vmatpush.msrb.mxu3 %v3553_v63  ;;  %v861_v52 = vadd.f32 %v860_v46, %v3892_v49 }
  0xac   :  { %1390 = vmatpush.msrb.mxu0 %v3558_v0  ;;  %1410 = vmatpush.msrb.mxu1 %v3564_v1  ;;  %v3946_v62 = vadd.f32 %v915_v40, %v897_v43 }
  0xad   :  { %1430 = vmatpush.msrb.mxu2 %v3569_v2  ;;  %1450 = vmatpush.msrb.mxu3 %v3576_v3  ;;  %v880_v47 = vadd.f32 %v879_v45, %v861_v52 }
  0xae   :  { %1391 = vmatpush.msrb.mxu0 %v3585_v4  ;;  %4342 = vst [vmem:[#allocation33_spill] sm:$0xff] %v3946_v62  ;;  %1411 = vmatpush.msrb.mxu1 %v3592_v5 }
  0xaf   :  { %1431 = vmatpush.msrb.mxu2 %v3597_v6  ;;  %1451 = vmatpush.msrb.mxu3 %v3604_v48 }
  0xb0   :  { %1392 = vmatpush.msrb.mxu0 %v3609_v7  ;;  %1412 = vmatpush.msrb.mxu1 %v3616_v53 }
  0xb1   :  { %1432 = vmatpush.msrb.mxu2 %v3621_v54  ;;  %1452 = vmatpush.msrb.mxu3 %v3628_v57  ;;  %v898_v43 = vpop.f32.mrf.mxu2  ;;  %v917_v42 = vpop.f32.mrf.mxu3 }
  0xb2   :  { %1393 = vmatpush.msrb.mxu0 %v3633_v8  ;;  %1413 = vmatpush.msrb.mxu1 %v3640_v9  ;;  %v899_v45 = vadd.f32 %v898_v43, %v880_v47  ;;  %v863_v40 = vpop.f32.mrf.mxu0  ;;  %v882_v52 = vpop.f32.mrf.mxu1 }
  0xb3   :  { %1433 = vmatpush.msrb.mxu2 %v3645_v10  ;;  %1453 = vmatpush.msrb.mxu3 %v3652_v11  ;;  %v864_v46 = vadd.f32 %v863_v40, %v3892_v49 }
  0xb4   :  { %1394 = vmatpush.msrb.mxu0 %v3657_v12  ;;  %1414 = vmatpush.msrb.mxu1 %v3664_v13  ;;  %v3965_v62 = vadd.f32 %v917_v42, %v899_v45 }
  0xb5   :  { %1434 = vmatpush.msrb.mxu2 %v3669_v14  ;;  %1454 = vmatpush.msrb.mxu3 %v3676_v15  ;;  %v883_v47 = vadd.f32 %v882_v52, %v864_v46 }
  0xb6   :  { %1395 = vmatpush.msrb.mxu0 %v3681_v16  ;;  %4343 = vst [vmem:[#allocation34_spill] sm:$0xff] %v3965_v62  ;;  %1415 = vmatpush.msrb.mxu1 %v3688_v17 }
  0xb7   :  { %1435 = vmatpush.msrb.mxu2 %v3693_v18  ;;  %1455 = vmatpush.msrb.mxu3 %v3700_v19 }
  0xb8   :  { %1396 = vmatpush.msrb.mxu0 %v3705_v20  ;;  %1416 = vmatpush.msrb.mxu1 %v3712_v21 }
  0xb9   :  { %1436 = vmatpush.msrb.mxu2 %v3717_v22  ;;  %1456 = vmatpush.msrb.mxu3 %v3724_v23  ;;  %v901_v43 = vpop.f32.mrf.mxu2  ;;  %v920_v42 = vpop.f32.mrf.mxu3 }
  0xba   :  { %1397 = vmatpush.msrb.mxu0 %v3729_v24  ;;  %1417 = vmatpush.msrb.mxu1 %v3736_v25  ;;  %v902_v45 = vadd.f32 %v901_v43, %v883_v47  ;;  %v865_v40 = vpop.f32.mrf.mxu0  ;;  %v884_v52 = vpop.f32.mrf.mxu1 }
  0xbb   :  { %1437 = vmatpush.msrb.mxu2 %v3741_v26  ;;  %1457 = vmatpush.msrb.mxu3 %v3748_v27  ;;  %v866_v46 = vadd.f32 %v865_v40, %v3892_v49  ;;  %v3993_v49 = vperm.slane %v3858_v41, 1 }
  0xbc   :  { %1398 = vmatpush.msrb.mxu0 %v3757_v28  ;;  %1418 = vmatpush.msrb.mxu1 %v3764_v29  ;;  %v3984_v62 = vadd.f32 %v920_v42, %v902_v45  ;;  %v4345_v45 = vld [vmem:[#allocation20_spill] sm:$0xff] }
  0xbd   :  { %1438 = vmatpush.msrb.mxu2 %v3769_v30  ;;  %1458 = vmatpush.msrb.mxu3 %v3776_v44  ;;  %v885_v47 = vadd.f32 %v884_v52, %v866_v46  ;;  %v4346_v52 = vld [vmem:[#allocation22_spill] sm:$0xff] }
  0xbe   :  { %1399 = vmatpush.msrb.mxu0 %v3781_v31  ;;  %4344 = vst [vmem:[#allocation35_spill] sm:$0xff] %v3984_v62  ;;  %1419 = vmatpush.msrb.mxu1 %v3788_v50  ;;  %v4347_v62 = vld [vmem:[#allocation23_spill] sm:$0xff] }
  0xbf   :  { %1439 = vmatpush.msrb.mxu2 %v3793_v51  ;;  %1459 = vmatpush.msrb.mxu3 %v3800_v56 }
  0xc0   :  { %1400 = vmatpush.msrb.mxu0 %v3805_v32  ;;  %1420 = vmatpush.msrb.mxu1 %v3812_v33 }
  0xc1   :  { %1440 = vmatpush.msrb.mxu2 %v3817_v34  ;;  %1460 = vmatpush.msrb.mxu3 %v3824_v35  ;;  %v903_v43 = vpop.f32.mrf.mxu2  ;;  %v922_v40 = vpop.f32.mrf.mxu3  ;;  %v4351_v34 = vld [vmem:[#allocation26_spill] sm:$0xff] }
  0xc2   :  { %1401 = vmatpush.msrb.mxu0 %v3829_v36  ;;  %1421 = vmatpush.msrb.mxu1 %v3836_v37  ;;  %v904_v42 = vadd.f32 %v903_v43, %v885_v47  ;;  %v934_v46 = vpop.f32.mrf.mxu0  ;;  %v953_v41 = vpop.f32.mrf.mxu1  ;;  %v4348_v36 = vld [vmem:[#allocation24_spill] sm:$0xff]  ;;  %v4349_v37 = vld [vmem:[#allocation25_spill] sm:$0xff]  ;;  %v4353_v43 = vld [vmem:[#allocation31_spill] sm:$0xff] }
  0xc3   :  { %1441 = vmatpush.msrb.mxu2 %v3841_v38  ;;  %1461 = vmatpush.msrb.mxu3 %v3848_v39  ;;  %v935_v35 = vadd.f32 %v934_v46, %v3993_v49  ;;  %v4352_v39 = vld [vmem:[#allocation27_spill] sm:$0xff]  ;;  %v4354_v46 = vld [vmem:[#allocation32_spill] sm:$0xff] }
  0xc4   :  { %1402 = vmatpush.msrb.mxu0 %v4345_v45  ;;  %1422 = vmatpush.msrb.mxu1 %v4346_v52  ;;  %v4006_v38 = vadd.f32 %v922_v40, %v904_v42  ;;  %v4355_v42 = vld [vmem:[#allocation3_spill] sm:$0xff] }
  0xc5   :  { %1442 = vmatpush.msrb.mxu2 %v4347_v62  ;;  %1462 = vmatpush.msrb.mxu3 %v4348_v36  ;;  %v954_v47 = vadd.f32 %v953_v41, %v935_v35 }
  0xc6   :  { %1403 = vmatpush.msrb.mxu0 %v4349_v37  ;;  %4350 = vst [vmem:[#allocation36_spill] sm:$0xff] %v4006_v38  ;;  %1423 = vmatpush.msrb.mxu1 %v4351_v34 }
  0xc7   :  { %1443 = vmatpush.msrb.mxu2 %v4352_v39  ;;  %1463 = vmatpush.msrb.mxu3 %v3904_v55 }
  0xc8   :  { %1404 = vmatpush.msrb.mxu0 %v3909_v58  ;;  %1424 = vmatpush.msrb.mxu1 %v3916_v59 }
  0xc9   :  { %1444 = vmatpush.msrb.mxu2 %v4353_v43  ;;  %1464 = vmatpush.msrb.mxu3 %v4354_v46  ;;  %v972_v40 = vpop.f32.mrf.mxu2  ;;  %v991_v41 = vpop.f32.mrf.mxu3 }
  0xca   :  { %1541 = vmatpush.msra.mxu0 %v3538_v60  ;;  %1561 = vmatpush.msra.mxu1 %v3543_v61  ;;  %v973_v35 = vadd.f32 %v972_v40, %v954_v47  ;;  %v936_v38 = vpop.f32.mrf.mxu0  ;;  %v955_v43 = vpop.f32.mrf.mxu1 }
  0xcb   :  { %1581 = vmatpush.msra.mxu2 %v4355_v42  ;;  %1601 = vmatpush.msra.mxu3 %v3553_v63  ;;  %v937_v46 = vadd.f32 %v936_v38, %v3993_v49 }
  0xcc   :  { %1542 = vmatpush.msra.mxu0 %v3558_v0  ;;  %1562 = vmatpush.msra.mxu1 %v3564_v1  ;;  %v4025_v42 = vadd.f32 %v991_v41, %v973_v35 }
  0xcd   :  { %1582 = vmatpush.msra.mxu2 %v3569_v2  ;;  %1602 = vmatpush.msra.mxu3 %v3576_v3  ;;  %v956_v47 = vadd.f32 %v955_v43, %v937_v46 }
  0xce   :  { %1543 = vmatpush.msra.mxu0 %v3585_v4  ;;  %1563 = vmatpush.msra.mxu1 %v3592_v5 }
  0xcf   :  { %1583 = vmatpush.msra.mxu2 %v3597_v6  ;;  %1603 = vmatpush.msra.mxu3 %v3604_v48 }
  0xd0   :  { %1544 = vmatpush.msra.mxu0 %v3609_v7  ;;  %1564 = vmatpush.msra.mxu1 %v3616_v53 }
  0xd1   :  { %1584 = vmatpush.msra.mxu2 %v3621_v54  ;;  %1604 = vmatpush.msra.mxu3 %v3628_v57  ;;  %v974_v38 = vpop.f32.mrf.mxu2  ;;  %v993_v46 = vpop.f32.mrf.mxu3 }
  0xd2   :  { %1545 = vmatpush.msra.mxu0 %v3633_v8  ;;  %1565 = vmatpush.msra.mxu1 %v3640_v9  ;;  %v975_v43 = vadd.f32 %v974_v38, %v956_v47  ;;  %v939_v40 = vpop.f32.mrf.mxu0  ;;  %v958_v41 = vpop.f32.mrf.mxu1 }
  0xd3   :  { %1585 = vmatpush.msra.mxu2 %v3645_v10  ;;  %1605 = vmatpush.msra.mxu3 %v3652_v11  ;;  %v940_v35 = vadd.f32 %v939_v40, %v3993_v49 }
  0xd4   :  { %1546 = vmatpush.msra.mxu0 %v3657_v12  ;;  %1566 = vmatpush.msra.mxu1 %v3664_v13  ;;  %v4044_v10 = vadd.f32 %v993_v46, %v975_v43 }
  0xd5   :  { %1586 = vmatpush.msra.mxu2 %v3669_v14  ;;  %1606 = vmatpush.msra.mxu3 %v3676_v15  ;;  %v959_v47 = vadd.f32 %v958_v41, %v940_v35 }
  0xd6   :  { %1547 = vmatpush.msra.mxu0 %v3681_v16  ;;  %4356 = vst [vmem:[#allocation37_spill] sm:$0xff] %v4044_v10  ;;  %1567 = vmatpush.msra.mxu1 %v3688_v17 }
  0xd7   :  { %1587 = vmatpush.msra.mxu2 %v3693_v18  ;;  %1607 = vmatpush.msra.mxu3 %v3700_v19 }
  0xd8   :  { %1548 = vmatpush.msra.mxu0 %v3705_v20  ;;  %1568 = vmatpush.msra.mxu1 %v3712_v21 }
  0xd9   :  { %1588 = vmatpush.msra.mxu2 %v3717_v22  ;;  %1608 = vmatpush.msra.mxu3 %v3724_v23  ;;  %v977_v38 = vpop.f32.mrf.mxu2  ;;  %v996_v46 = vpop.f32.mrf.mxu3 }
  0xda   :  { %1549 = vmatpush.msra.mxu0 %v3729_v24  ;;  %1569 = vmatpush.msra.mxu1 %v3736_v25  ;;  %v978_v43 = vadd.f32 %v977_v38, %v959_v47  ;;  %v941_v40 = vpop.f32.mrf.mxu0  ;;  %v960_v41 = vpop.f32.mrf.mxu1  ;;  %v4358_v38 = vld [vmem:[#allocation14_spill] sm:$0xff] }
  0xdb   :  { %1589 = vmatpush.msra.mxu2 %v3741_v26  ;;  %1609 = vmatpush.msra.mxu3 %v3748_v27  ;;  %v942_v35 = vadd.f32 %v941_v40, %v3993_v49  ;;  %v4359_v49 = vld [vmem:[#allocation21_spill] sm:$0xff] }
  0xdc   :  { %1550 = vmatpush.msra.mxu0 %v3757_v28  ;;  %1570 = vmatpush.msra.mxu1 %v3764_v29  ;;  %v4063_v10 = vadd.f32 %v996_v46, %v978_v43  ;;  %v163_v40 = vperm.slane %v4359_v49, 2  ;;  %v4362_v43 = vld [vmem:[#allocation17_spill] sm:$0xff]  ;;  %v4363_v46 = vld [vmem:[#allocation18_spill] sm:$0xff] }
  0xdd   :  { %1590 = vmatpush.msra.mxu2 %v3769_v30  ;;  %1610 = vmatpush.msra.mxu3 %v3776_v44  ;;  %v961_v47 = vadd.f32 %v960_v41, %v942_v35  ;;  %v4360_v44 = vld [vmem:[#allocation15_spill] sm:$0xff] }
  0xde   :  { %1551 = vmatpush.msra.mxu0 %v3781_v31  ;;  %4357 = vst [vmem:[#allocation38_spill] sm:$0xff] %v4063_v10  ;;  %1571 = vmatpush.msra.mxu1 %v3788_v50  ;;  %v4361_v31 = vld [vmem:[#allocation16_spill] sm:$0xff]  ;;  %v4364_v35 = vld [vmem:[#allocation19_spill] sm:$0xff] }
  0xdf   :  { %1591 = vmatpush.msra.mxu2 %v3793_v51  ;;  %1611 = vmatpush.msra.mxu3 %v3800_v56 }
  0xe0   :  { %1552 = vmatpush.msra.mxu0 %v3805_v32  ;;  %1572 = vmatpush.msra.mxu1 %v3812_v33 }
  0xe1   :  { %1592 = vmatpush.msra.mxu2 %v4358_v38  ;;  %1612 = vmatpush.msra.mxu3 %v4360_v44  ;;  %v979_v10 = vpop.f32.mrf.mxu2  ;;  %v998_v32 = vpop.f32.mrf.mxu3 }
  0xe2   :  { %1553 = vmatpush.msra.mxu0 %v4361_v31  ;;  %1573 = vmatpush.msra.mxu1 %v4362_v43  ;;  %v980_v41 = vadd.f32 %v979_v10, %v961_v47  ;;  %v1010_v33 = vpop.f32.mrf.mxu0  ;;  %v1029_v44 = vpop.f32.mrf.mxu1  ;;  %v4366_v10 = vld [vmem:[#allocation31_spill] sm:$0xff] }
  0xe3   :  { %1593 = vmatpush.msra.mxu2 %v4363_v46  ;;  %1613 = vmatpush.msra.mxu3 %v4364_v35  ;;  %v1011_v38 = vadd.f32 %v1010_v33, %v163_v40  ;;  %v4367_v33 = vld [vmem:[#allocation32_spill] sm:$0xff] }
  0xe4   :  { %1554 = vmatpush.msra.mxu0 %v4345_v45  ;;  %1574 = vmatpush.msra.mxu1 %v4346_v52  ;;  %v4082_v43 = vadd.f32 %v998_v32, %v980_v41 }
  0xe5   :  { %1594 = vmatpush.msra.mxu2 %v4347_v62  ;;  %1614 = vmatpush.msra.mxu3 %v4348_v36  ;;  %v1030_v45 = vadd.f32 %v1029_v44, %v1011_v38 }
  0xe6   :  { %1555 = vmatpush.msra.mxu0 %v4349_v37  ;;  %4365 = vst [vmem:[#allocation21_spill] sm:$0xff] %v4082_v43  ;;  %1575 = vmatpush.msra.mxu1 %v4351_v34 }
  0xe7   :  { %1595 = vmatpush.msra.mxu2 %v4352_v39  ;;  %1615 = vmatpush.msra.mxu3 %v3904_v55 }
  0xe8   :  { %1556 = vmatpush.msra.mxu0 %v3909_v58  ;;  %1576 = vmatpush.msra.mxu1 %v3916_v59 }
  0xe9   :  { %1596 = vmatpush.msra.mxu2 %v4366_v10  ;;  %1616 = vmatpush.msra.mxu3 %v4367_v33  ;;  %v1048_v47 = vpop.f32.mrf.mxu2  ;;  %v1067_v37 = vpop.f32.mrf.mxu3 }
  0xea   :  { %v1049_v36 = vadd.f32 %v1048_v47, %v1030_v45  ;;  %v1012_v32 = vpop.f32.mrf.mxu0  ;;  %v1031_v43 = vpop.f32.mrf.mxu1 }
  0xeb   :  { %v1013_v41 = vadd.f32 %v1012_v32, %v163_v40 }
  0xec   :  { %v4091_v34 = vadd.f32 %v1067_v37, %v1049_v36 }
  0xed   :  { %v1032_v39 = vadd.f32 %v1031_v43, %v1013_v41 }
  0xf1   :  { %v1050_v44 = vpop.f32.mrf.mxu2  ;;  %v1069_v55 = vpop.f32.mrf.mxu3 }
  0xf2   :  { %v1051_v38 = vadd.f32 %v1050_v44, %v1032_v39  ;;  %v1015_v62 = vpop.f32.mrf.mxu0  ;;  %v1034_v52 = vpop.f32.mrf.mxu1 }
  0xf3   :  { %v1016_v58 = vadd.f32 %v1015_v62, %v163_v40  ;;  %v164_v62 = vperm.slane %v4359_v49, 3 }
  0xf4   :  { %v4093_v59 = vadd.f32 %v1069_v55, %v1051_v38 }
  0xf5   :  { %v1035_v10 = vadd.f32 %v1034_v52, %v1016_v58 }
  0xf6   :  { %4368 = vst [vmem:[#allocation39_spill] sm:$0xff] %v4093_v59 }
  0xf9   :  { %v1053_v35 = vpop.f32.mrf.mxu2  ;;  %v1072_v46 = vpop.f32.mrf.mxu3 }
  0xfa   :  { %v1054_v33 = vadd.f32 %v1053_v35, %v1035_v10  ;;  %v1017_v45 = vpop.f32.mrf.mxu0  ;;  %v1036_v31 = vpop.f32.mrf.mxu1 }
  0xfb   :  { %v1018_v47 = vadd.f32 %v1017_v45, %v163_v40 }
  0xfc   :  { %v4095_v32 = vadd.f32 %v1072_v46, %v1054_v33 }
  0xfd   :  { %v1037_v36 = vadd.f32 %v1036_v31, %v1018_v47 }
  0xfe   :  { %4369 = vst [vmem:[#allocation40_spill] sm:$0xff] %v4095_v32 }
 0x101   :  { %v1055_v37 = vpop.f32.mrf.mxu2  ;;  %v1074_v41 = vpop.f32.mrf.mxu3 }
 0x102   :  { %v1056_v43 = vadd.f32 %v1055_v37, %v1037_v36  ;;  %v1086_v39 = vpop.f32.mrf.mxu0  ;;  %v1105_v44 = vpop.f32.mrf.mxu1 }
 0x103   :  { %v1087_v50 = vadd.f32 %v1086_v39, %v164_v62 }
 0x104   :  { %v4097_v56 = vadd.f32 %v1074_v41, %v1056_v43 }
 0x105   :  { %v1106_v30 = vadd.f32 %v1105_v44, %v1087_v50 }
 0x106   :  { %4370 = vst [vmem:[#allocation41_spill] sm:$0xff] %v4097_v56 }
 0x109   :  { %v1124_v55 = vpop.f32.mrf.mxu2 }
 0x10a   :  { %v1088_v52 = vpop.f32.mrf.mxu0  ;;  %v1107_v10 = vpop.f32.mrf.mxu1 }
 0x10b   :  { %v1143_v58 = vpop.f32.mrf.mxu3  ;;  %v1089_v35 = vadd.f32 %v1088_v52, %v164_v62 }
 0x10d   :  { %v1108_v38 = vadd.f32 %v1107_v10, %v1089_v35 }
 0x111   :  { %v1126_v40 = vpop.f32.mrf.mxu2 }
 0x112   :  { %v1127_v45 = vadd.f32 %v1126_v40, %v1108_v38 }
 0x113   :  { %v1145_v46 = vpop.f32.mrf.mxu3 }
 0x114   :  { %v1091_v33 = vpop.f32.mrf.mxu0  ;;  %v4100_v36 = vadd.f32 %v1145_v46, %v1127_v45 }
 0x115   :  { %v1092_v31 = vadd.f32 %v1091_v33, %v164_v62  ;;  %v1110_v47 = vpop.f32.mrf.mxu1  ;;  %v4371_v33 = vld [vmem:[#allocation33_spill] sm:$0xff] }
 0x117   :  { %v1111_v37 = vadd.f32 %v1110_v47, %v1092_v31  ;;  %v1125_v31 = vadd.f32 %v1124_v55, %v1106_v30 }
 0x11c   :  { %v1129_v32 = vpop.f32.mrf.mxu2  ;;  %v1148_v41 = vpop.f32.mrf.mxu3 }
 0x11d   :  { %v1130_v43 = vadd.f32 %v1129_v32, %v1111_v37  ;;  %v1093_v56 = vpop.f32.mrf.mxu0  ;;  %v1112_v59 = vpop.f32.mrf.mxu1  ;;  %v1144_v37 = vadd.f32 %v1143_v58, %v1125_v31 }
 0x11e   :  { %v1094_v49 = vadd.f32 %v1093_v56, %v164_v62 }
 0x11f   :  { %v4102_v51 = vadd.f32 %v1148_v41, %v1130_v43 }
 0x120   :  { %v1113_v52 = vadd.f32 %v1112_v59, %v1094_v49 }
 0x124   :  { %v1131_v35 = vpop.f32.mrf.mxu2  ;;  %v1150_v38 = vpop.f32.mrf.mxu3 }
 0x125   :  { %v1132_v10 = vadd.f32 %v1131_v35, %v1113_v52  ;;  %v1254_v40 = vpop.f32.mrf.mxu0  ;;  %v1274_v45 = vpop.f32.mrf.mxu1 }
 0x126   :  { %v1317_v29 = vadd.f32 %v1254_v40, %v4371_v33  ;;  %v1318_v32 = vadd.f32 %v1274_v45, %v4025_v42 }
 0x127   :  { %v4105_v46 = vadd.f32 %v1150_v38, %v1132_v10 }
 0x128   :  { %v2429_v47 = vmul.f32 -1.442695, %v1317_v29  ;;  %v2430_v56 = vmul.f32 -1.442695, %v1318_v32 }
 0x12a   :  { %2579 = vpow2.f32 %v2429_v47 }
 0x12b   :  { %2581 = vpow2.f32 %v2430_v56 }
 0x12c   :  { %v1314_v59 = vpop.f32.mrf.mxu3  ;;  %v1294_v44 = vpop.f32.mrf.mxu2 }
 0x12d   :  { %v1320_v39 = vadd.f32 %v1314_v59, %v1144_v37  ;;  %v1319_v30 = vadd.f32 %v1294_v44, %v4091_v34 }
 0x12f   :  { %v2431_v43 = vmul.f32 -1.442695, %v1320_v39 }
 0x130   :  { %v2580_v62 = vpop.eup %2579 }
 0x131   :  { %v2582_v41 = vpop.eup %2581  ;;  %v1324_v49 = vadd.f32 1.0, %v2580_v62  ;;  %2583 = vpow2.f32 %v2431_v43 }
 0x132   :  { %v1343_v50 = vadd.f32 1.0, %v2582_v41 }
 0x133   :  { %2585 = vrcp.f32 %v1324_v49  ;;  %v1336_v40 = vand.u32 2147483648, %v1324_v49  ;;  %v1334_v32 = vand.u32 2147483647, %v1324_v49  ;;  %vm1330_vm2 = vweird.f32 %v1324_v49 }
 0x134   :  { %2587 = vrcp.f32 %v1343_v50  ;;  %v1355_v33 = vand.u32 2147483648, %v1343_v50  ;;  %v1353_v47 = vand.u32 2147483647, %v1343_v50  ;;  %vm1349_vm3 = vweird.f32 %v1343_v50 }
 0x135   :  { %v1337_v34 = vor.u32 1.1754944e-38, %v1336_v40  ;;  %vm1335_vm5 = vcmp.eq.f32.partialorder %v1334_v32, 8.507059e+37 }
 0x136   :  { %v1356_v39 = vor.u32 1.1754944e-38, %v1355_v33  ;;  %vm1354_vm7 = vcmp.eq.f32.partialorder %v1353_v47, 8.507059e+37  ;;  %v4372_v47 = vld [vmem:[#allocation3_spill] sm:$0xff] }
 0x137   :  { %v2584_v52 = vpop.eup %2583 }
 0x138   :  { %v1363_v29 = vadd.f32 1.0, %v2584_v52 }
 0x139   :  { %v2586_v35 = vpop.eup %2585 }
 0x13a   :  { %v2588_v42 = vpop.eup %2587  ;;  %v1326_v55 = vmul.f32 %v2586_v35, %v1324_v49  ;;  %2589 = vrcp.f32 %v1363_v29  ;;  %vm1331_vm0 = vweird.f32 %v2586_v35  ;;  %v1375_v40 = vand.u32 2147483648, %v1363_v29 }
 0x13b   :  { %v1345_v10 = vmul.f32 %v2588_v42, %v1343_v50  ;;  %2591 = vtanh.f32 %v1319_v30  ;;  %vm1350_vm1 = vweird.f32 %v2588_v42  ;;  %vm1332_vm4 = vmor %vm1330_vm2, %vm1331_vm0  ;;  %vm1369_vm9 = vweird.f32 %v1363_v29 }
 0x13c   :  { %v1327_v58 = vsub.f32 1.0, %v1326_v55  ;;  %vm1351_vm6 = vmor %vm1349_vm3, %vm1350_vm1 }
 0x13d   :  { %v1346_v38 = vsub.f32 1.0, %v1345_v10 }
 0x13e   :  { %v1328_v45 = vmul.f32 %v2586_v35, %v1327_v58 }
 0x13f   :  { %v1347_v31 = vmul.f32 %v2588_v42, %v1346_v38 }
 0x140   :  { %v1329_v56 = vadd.f32 %v2586_v35, %v1328_v45  ;;  %v2590_v37 = vpop.eup %2589  ;;  %v1376_v45 = vor.u32 1.1754944e-38, %v1375_v40 }
 0x141   :  { %v1348_v59 = vadd.f32 %v2588_v42, %v1347_v31  ;;  %v1365_v43 = vmul.f32 %v2590_v37, %v1363_v29  ;;  %v2592_v41 = vpop.eup %2591  ;;  %vm1370_vm8 = vweird.f32 %v2590_v37 }
 0x142   :  { %v1333_v62 = vsel %vm1332_vm4, %v2586_v35, %v1329_v56  ;;  %v1373_v35 = vand.u32 2147483647, %v1363_v29  ;;  %vm1371_vm10 = vmor %vm1369_vm9, %vm1370_vm8 }
 0x143   :  { %v1338_v44 = vsel %vm1335_vm5, %v1337_v34, %v1333_v62  ;;  %v1352_v52 = vsel %vm1351_vm6, %v2588_v42, %v1348_v59  ;;  %v1366_v10 = vsub.f32 1.0, %v1365_v43 }
 0x144   :  { %v1357_v30 = vsel %vm1354_vm7, %v1356_v39, %v1352_v52  ;;  %v1380_v55 = vmul.f32 %v2592_v41, %v1338_v44  ;;  %vm1374_vm11 = vcmp.eq.f32.partialorder %v1373_v35, 8.507059e+37 }
 0x145   :  { %v1379_v58 = vmul.f32 0.0, %v1357_v30  ;;  %v1367_v38 = vmul.f32 %v2590_v37, %v1366_v10 }
 0x147   :  { %v4109_v49 = vadd.f32 %v1380_v55, %v1379_v58  ;;  %v1368_v50 = vadd.f32 %v2590_v37, %v1367_v38  ;;  %v4403_v55 = vld [vmem:[#allocation39_spill] sm:$0xff] }
 0x149   :  { %2593 = vtanh.f32 %v4109_v49  ;;  %v1372_v33 = vsel %vm1371_vm10, %v2590_v37, %v1368_v50 }
 0x14a   :  { %v1377_v32 = vsel %vm1374_vm11, %v1376_v45, %v1372_v33 }
 0x14f   :  { %v2594_v42 = vpop.eup %2593 }
 0x150   :  { %v1383_v31 = vmul.f32 %v2594_v42, %v1377_v32 }
 0x152   :  { %1405 = vmatmul.f32.vlgmr.msrb.gmra.mxu0 %v1383_v31  ;;  %1425 = vmatmul.f32.vlgmr.msrb.gmra.mxu1 %v1383_v31 }
 0x153   :  { %1445 = vmatmul.f32.vlgmr.msrb.gmra.mxu2 %v1383_v31  ;;  %1465 = vmatmul.f32.vlgmr.msrb.gmra.mxu3 %v1383_v31 }
 0x154   :  { %1693 = vmatpush.msrb.mxu0 %v3538_v60  ;;  %1713 = vmatpush.msrb.mxu1 %v3543_v61  ;;  %v4373_v60 = vld [vmem:[#allocation4_spill] sm:$0xff]  ;;  %v4374_v61 = vld [vmem:[#allocation5_spill] sm:$0xff] }
 0x155   :  { %1733 = vmatpush.msrb.mxu2 %v4372_v47  ;;  %1753 = vmatpush.msrb.mxu3 %v3553_v63  ;;  %v4375_v63 = vld [vmem:[#allocation6_spill] sm:$0xff] }
 0x156   :  { %1694 = vmatpush.msrb.mxu0 %v3558_v0  ;;  %1714 = vmatpush.msrb.mxu1 %v3564_v1  ;;  %v4376_v0 = vld [vmem:[#allocation7_spill] sm:$0xff]  ;;  %v4377_v1 = vld [vmem:[#allocation8_spill] sm:$0xff] }
 0x157   :  { %1734 = vmatpush.msrb.mxu2 %v3569_v2  ;;  %1754 = vmatpush.msrb.mxu3 %v3576_v3  ;;  %v4378_v2 = vld [vmem:[#allocation9_spill] sm:$0xff]  ;;  %v4379_v3 = vld [vmem:[#allocation10_spill] sm:$0xff] }
 0x158   :  { %1695 = vmatpush.msrb.mxu0 %v3585_v4  ;;  %1715 = vmatpush.msrb.mxu1 %v3592_v5  ;;  %v4380_v4 = vld [vmem:[#allocation11_spill] sm:$0xff]  ;;  %v4381_v5 = vld [vmem:[#allocation12_spill] sm:$0xff] }
 0x159   :  { %1735 = vmatpush.msrb.mxu2 %v3597_v6  ;;  %1755 = vmatpush.msrb.mxu3 %v3604_v48  ;;  %v4382_v6 = vld [vmem:[#allocation13_spill] sm:$0xff]  ;;  %v4383_v48 = vld [vmem:[#allocation14_spill] sm:$0xff] }
 0x15a   :  { %1696 = vmatpush.msrb.mxu0 %v3609_v7  ;;  %1716 = vmatpush.msrb.mxu1 %v3616_v53  ;;  %v4384_v7 = vld [vmem:[#allocation15_spill] sm:$0xff]  ;;  %v4385_v53 = vld [vmem:[#allocation16_spill] sm:$0xff] }
 0x15b   :  { %1736 = vmatpush.msrb.mxu2 %v3621_v54  ;;  %1756 = vmatpush.msrb.mxu3 %v3628_v57  ;;  %v4386_v54 = vld [vmem:[#allocation17_spill] sm:$0xff]  ;;  %v4387_v57 = vld [vmem:[#allocation18_spill] sm:$0xff] }
 0x15c   :  { %1697 = vmatpush.msrb.mxu0 %v3633_v8  ;;  %1717 = vmatpush.msrb.mxu1 %v3640_v9  ;;  %v4388_v8 = vld [vmem:[#allocation19_spill] sm:$0xff]  ;;  %v4389_v9 = vld [vmem:[#allocation20_spill] sm:$0xff] }
 0x15d   :  { %1737 = vmatpush.msrb.mxu2 %v4373_v60  ;;  %1757 = vmatpush.msrb.mxu3 %v3652_v11  ;;  %v4390_v11 = vld [vmem:[#allocation22_spill] sm:$0xff] }
 0x15e   :  { %1698 = vmatpush.msrb.mxu0 %v3657_v12  ;;  %1718 = vmatpush.msrb.mxu1 %v3664_v13  ;;  %v4391_v12 = vld [vmem:[#allocation23_spill] sm:$0xff]  ;;  %v4392_v13 = vld [vmem:[#allocation24_spill] sm:$0xff] }
 0x15f   :  { %1738 = vmatpush.msrb.mxu2 %v3669_v14  ;;  %1758 = vmatpush.msrb.mxu3 %v3676_v15  ;;  %v4393_v14 = vld [vmem:[#allocation25_spill] sm:$0xff]  ;;  %v4394_v15 = vld [vmem:[#allocation26_spill] sm:$0xff] }
 0x160   :  { %1699 = vmatpush.msrb.mxu0 %v3681_v16  ;;  %1719 = vmatpush.msrb.mxu1 %v3688_v17  ;;  %v4395_v16 = vld [vmem:[#allocation27_spill] sm:$0xff]  ;;  %v4396_v17 = vld [vmem:[#allocation28_spill] sm:$0xff] }
 0x161   :  { %1739 = vmatpush.msrb.mxu2 %v3693_v18  ;;  %1759 = vmatpush.msrb.mxu3 %v3700_v19  ;;  %v4397_v18 = vld [vmem:[#allocation29_spill] sm:$0xff]  ;;  %v4398_v19 = vld [vmem:[#allocation30_spill] sm:$0xff] }
 0x162   :  { %1700 = vmatpush.msrb.mxu0 %v3705_v20  ;;  %1720 = vmatpush.msrb.mxu1 %v3712_v21  ;;  %v4399_v20 = vld [vmem:[#allocation31_spill] sm:$0xff]  ;;  %v4400_v21 = vld [vmem:[#allocation32_spill] sm:$0xff] }
 0x163   :  { %1740 = vmatpush.msrb.mxu2 %v3717_v22  ;;  %1760 = vmatpush.msrb.mxu3 %v3724_v23 }
 0x164   :  { %1701 = vmatpush.msrb.mxu0 %v3729_v24  ;;  %1721 = vmatpush.msrb.mxu1 %v3736_v25  ;;  %v4401_v24 = vld [vmem:[#allocation34_spill] sm:$0xff] }
 0x165   :  { %1741 = vmatpush.msrb.mxu2 %v3741_v26  ;;  %1761 = vmatpush.msrb.mxu3 %v3748_v27  ;;  %v4402_v26 = vld [vmem:[#allocation37_spill] sm:$0xff] }
 0x166   :  { %1702 = vmatpush.msrb.mxu0 %v3757_v28  ;;  %1722 = vmatpush.msrb.mxu1 %v4374_v61 }
 0x167   :  { %1742 = vmatpush.msrb.mxu2 %v4375_v63  ;;  %1762 = vmatpush.msrb.mxu3 %v4376_v0 }
 0x168   :  { %1703 = vmatpush.msrb.mxu0 %v4377_v1  ;;  %1723 = vmatpush.msrb.mxu1 %v4378_v2 }
 0x169   :  { %1743 = vmatpush.msrb.mxu2 %v4379_v3  ;;  %1763 = vmatpush.msrb.mxu3 %v4380_v4 }
 0x16a   :  { %1704 = vmatpush.msrb.mxu0 %v4381_v5  ;;  %1724 = vmatpush.msrb.mxu1 %v4382_v6 }
 0x16b   :  { %1744 = vmatpush.msrb.mxu2 %v4383_v48  ;;  %1764 = vmatpush.msrb.mxu3 %v4384_v7 }
 0x16c   :  { %1705 = vmatpush.msrb.mxu0 %v4385_v53  ;;  %1725 = vmatpush.msrb.mxu1 %v4386_v54 }
 0x16d   :  { %1745 = vmatpush.msrb.mxu2 %v4387_v57  ;;  %1765 = vmatpush.msrb.mxu3 %v4388_v8 }
 0x16e   :  { %1706 = vmatpush.msrb.mxu0 %v4389_v9  ;;  %1726 = vmatpush.msrb.mxu1 %v4390_v11 }
 0x16f   :  { %1746 = vmatpush.msrb.mxu2 %v4391_v12  ;;  %1766 = vmatpush.msrb.mxu3 %v4392_v13 }
 0x170   :  { %1707 = vmatpush.msrb.mxu0 %v4393_v14  ;;  %1727 = vmatpush.msrb.mxu1 %v4394_v15 }
 0x171   :  { %1747 = vmatpush.msrb.mxu2 %v4395_v16  ;;  %1767 = vmatpush.msrb.mxu3 %v4396_v17 }
 0x172   :  { %1708 = vmatpush.msrb.mxu0 %v4397_v18  ;;  %1728 = vmatpush.msrb.mxu1 %v4398_v19  ;;  %v4404_v18 = vld [vmem:[#allocation35_spill] sm:$0xff] }
 0x173   :  { %1748 = vmatpush.msrb.mxu2 %v4399_v20  ;;  %1768 = vmatpush.msrb.mxu3 %v4400_v21  ;;  %v4405_v20 = vld [vmem:[#allocation38_spill] sm:$0xff] }
 0x1cf   :  { %v1406_v22 = vpop.f32.mrf.mxu0  ;;  %v1426_v23 = vpop.f32.mrf.mxu1 }
 0x1d0   :  { %v1469_v25 = vadd.f32 %v1406_v22, %v4401_v24  ;;  %v1470_v27 = vadd.f32 %v1426_v23, %v4402_v26 }
 0x1d2   :  { %v2432_v28 = vmul.f32 -1.442695, %v1469_v25  ;;  %v2433_v29 = vmul.f32 -1.442695, %v1470_v27 }
 0x1d4   :  { %2595 = vpow2.f32 %v2432_v28 }
 0x1d5   :  { %2597 = vpow2.f32 %v2433_v29 }
 0x1d6   :  { %v1466_v56 = vpop.f32.mrf.mxu3  ;;  %v1446_v41 = vpop.f32.mrf.mxu2 }
 0x1d7   :  { %v1472_v37 = vadd.f32 %v1466_v56, %v4100_v36  ;;  %v1471_v10 = vadd.f32 %v1446_v41, %v4403_v55 }
 0x1d9   :  { %v2434_v34 = vmul.f32 -1.442695, %v1472_v37 }
 0x1da   :  { %v2596_v59 = vpop.eup %2595 }
 0x1db   :  { %v2598_v39 = vpop.eup %2597  ;;  %v1476_v62 = vadd.f32 1.0, %v2596_v59  ;;  %2599 = vpow2.f32 %v2434_v34 }
 0x1dc   :  { %v1495_v43 = vadd.f32 1.0, %v2598_v39 }
 0x1dd   :  { %2601 = vrcp.f32 %v1476_v62  ;;  %v1488_v35 = vand.u32 2147483648, %v1476_v62  ;;  %v1486_v42 = vand.u32 2147483647, %v1476_v62  ;;  %vm1482_vm14 = vweird.f32 %v1476_v62 }
 0x1de   :  { %2603 = vrcp.f32 %v1495_v43  ;;  %v1507_v33 = vand.u32 2147483648, %v1495_v43  ;;  %v1505_v31 = vand.u32 2147483647, %v1495_v43  ;;  %vm1501_vm15 = vweird.f32 %v1495_v43 }
 0x1df   :  { %v1489_v61 = vor.u32 1.1754944e-38, %v1488_v35  ;;  %vm1487_vm2 = vcmp.eq.f32.partialorder %v1486_v42, 8.507059e+37 }
 0x1e0   :  { %v1508_v1 = vor.u32 1.1754944e-38, %v1507_v33  ;;  %vm1506_vm3 = vcmp.eq.f32.partialorder %v1505_v31, 8.507059e+37 }
 0x1e1   :  { %v2600_v44 = vpop.eup %2599 }
 0x1e2   :  { %v1515_v52 = vadd.f32 1.0, %v2600_v44 }
 0x1e3   :  { %v2602_v30 = vpop.eup %2601 }
 0x1e4   :  { %v2604_v58 = vpop.eup %2603  ;;  %v1478_v38 = vmul.f32 %v2602_v30, %v1476_v62  ;;  %2605 = vrcp.f32 %v1515_v52  ;;  %vm1483_vm12 = vweird.f32 %v2602_v30  ;;  %v1527_v9 = vand.u32 2147483648, %v1515_v52  ;;  %v4406_v62 = vld [vmem:[#allocation40_spill] sm:$0xff] }
 0x1e5   :  { %v1497_v50 = vmul.f32 %v2604_v58, %v1495_v43  ;;  %2607 = vtanh.f32 %v1471_v10  ;;  %vm1502_vm13 = vweird.f32 %v2604_v58  ;;  %vm1484_vm0 = vmor %vm1482_vm14, %vm1483_vm12  ;;  %vm1521_vm5 = vweird.f32 %v1515_v52 }
 0x1e6   :  { %v1479_v40 = vsub.f32 1.0, %v1478_v38  ;;  %vm1503_vm1 = vmor %vm1501_vm15, %vm1502_vm13  ;;  %v1525_v11 = vand.u32 2147483647, %v1515_v52  ;;  %v1528_v13 = vor.u32 1.1754944e-38, %v1527_v9 }
 0x1e7   :  { %v1498_v36 = vsub.f32 1.0, %v1497_v50 }
 0x1e8   :  { %v1480_v45 = vmul.f32 %v2602_v30, %v1479_v40  ;;  %vm1526_vm7 = vcmp.eq.f32.partialorder %v1525_v11, 8.507059e+37  ;;  %v1854_v11 = vld [vmem:[%s4256_s4 + $0x70] sm:$0xff] }
 0x1e9   :  { %v1499_v32 = vmul.f32 %v2604_v58, %v1498_v36 }
 0x1ea   :  { %v2606_v47 = vpop.eup %2605  ;;  %v1481_v60 = vadd.f32 %v2602_v30, %v1480_v45 }
 0x1eb   :  { %v1500_v63 = vadd.f32 %v2604_v58, %v1499_v32  ;;  %v1517_v0 = vmul.f32 %v2606_v47, %v1515_v52  ;;  %v2608_v3 = vpop.eup %2607  ;;  %vm1522_vm4 = vweird.f32 %v2606_v47 }
 0x1ec   :  { %v1485_v2 = vsel %vm1484_vm0, %v2602_v30, %v1481_v60  ;;  %vm1523_vm6 = vmor %vm1521_vm5, %vm1522_vm4 }
 0x1ed   :  { %v1490_v4 = vsel %vm1487_vm2, %v1489_v61, %v1485_v2  ;;  %v1504_v5 = vsel %vm1503_vm1, %v2604_v58, %v1500_v63  ;;  %v1518_v6 = vsub.f32 1.0, %v1517_v0 }
 0x1ee   :  { %v1509_v48 = vsel %vm1506_vm3, %v1508_v1, %v1504_v5  ;;  %v1532_v7 = vmul.f32 %v2608_v3, %v1490_v4 }
 0x1ef   :  { %v1531_v53 = vmul.f32 %v1509_v48, %v4109_v49  ;;  %v1519_v54 = vmul.f32 %v2606_v47, %v1518_v6 }
 0x1f1   :  { %v4181_v57 = vadd.f32 %v1532_v7, %v1531_v53  ;;  %v1520_v8 = vadd.f32 %v2606_v47, %v1519_v54 }
 0x1f3   :  { %2609 = vtanh.f32 %v4181_v57  ;;  %v1524_v12 = vsel %vm1523_vm6, %v2606_v47, %v1520_v8 }
 0x1f4   :  { %v1529_v15 = vsel %vm1526_vm7, %v1528_v13, %v1524_v12  ;;  %v1853_v12 = vld [vmem:[%s4256_s4 + $0x68] sm:$0xff]  ;;  %v1852_v13 = vld [vmem:[%s4256_s4 + $0x60] sm:$0xff] }
 0x1f9   :  { %v2610_v14 = vpop.eup %2609 }
 0x1fa   :  { %v1535_v16 = vmul.f32 %v2610_v14, %v1529_v15  ;;  %v1851_v14 = vld [vmem:[%s4256_s4 + $0x58] sm:$0xff]  ;;  %v1850_v15 = vld [vmem:[%s4256_s4 + $0x50] sm:$0xff] }
 0x1fc   :  { %1557 = vmatmul.f32.vlgmr.msra.gmra.mxu0 %v1535_v16  ;;  %1577 = vmatmul.f32.vlgmr.msra.gmra.mxu1 %v1535_v16 }
 0x1fd   :  { %1597 = vmatmul.f32.vlgmr.msra.gmra.mxu2 %v1535_v16  ;;  %1617 = vmatmul.f32.vlgmr.msra.gmra.mxu3 %v1535_v16  ;;  %v1849_v16 = vld [vmem:[%s4256_s4 + $0x48] sm:$0xff] }
 0x279   :  { %v1558_v49 = vpop.f32.mrf.mxu0  ;;  %v1578_v17 = vpop.f32.mrf.mxu1 }
 0x27a   :  { %v1621_v19 = vadd.f32 %v1558_v49, %v4404_v18  ;;  %v1622_v21 = vadd.f32 %v1578_v17, %v4405_v20  ;;  %v1848_v49 = vld [vmem:[%s4256_s4 + $0x40] sm:$0xff]  ;;  %v1847_v17 = vld [vmem:[%s4256_s4 + $0x38] sm:$0xff]  ;;  %v1846_v18 = vld [vmem:[%s4256_s4 + $0x30] sm:$0xff] }
 0x27c   :  { %v2435_v22 = vmul.f32 -1.442695, %v1621_v19  ;;  %v2436_v23 = vmul.f32 -1.442695, %v1622_v21  ;;  %v4407_v21 = vld [vmem:[#allocation36_spill] sm:$0xff] }
 0x27e   :  { %2611 = vpow2.f32 %v2435_v22 }
 0x27f   :  { %2613 = vpow2.f32 %v2436_v23  ;;  %v4408_v23 = vld [vmem:[#allocation21_spill] sm:$0xff] }
 0x280   :  { %v1618_v24 = vpop.f32.mrf.mxu3  ;;  %v1598_v37 = vpop.f32.mrf.mxu2 }
 0x281   :  { %v1624_v25 = vadd.f32 %v1618_v24, %v4102_v51  ;;  %v1623_v43 = vadd.f32 %v1598_v37, %v4406_v62 }
 0x283   :  { %v2437_v26 = vmul.f32 -1.442695, %v1624_v25  ;;  %v1845_v25 = vld [vmem:[%s4256_s4 + $0x28] sm:$0xff] }
 0x284   :  { %v2612_v27 = vpop.eup %2611 }
 0x285   :  { %v2614_v28 = vpop.eup %2613  ;;  %v1628_v29 = vadd.f32 1.0, %v2612_v27  ;;  %2615 = vpow2.f32 %v2437_v26 }
 0x286   :  { %v1647_v56 = vadd.f32 1.0, %v2614_v28  ;;  %v1844_v28 = vld [vmem:[%s4256_s4 + $0x20] sm:$0xff] }
 0x287   :  { %2617 = vrcp.f32 %v1628_v29  ;;  %v1640_v55 = vand.u32 2147483648, %v1628_v29  ;;  %v1638_v38 = vand.u32 2147483647, %v1628_v29  ;;  %vm1634_vm10 = vweird.f32 %v1628_v29 }
 0x288   :  { %2619 = vrcp.f32 %v1647_v56  ;;  %v1659_v10 = vand.u32 2147483648, %v1647_v56  ;;  %v1657_v40 = vand.u32 2147483647, %v1647_v56  ;;  %vm1653_vm11 = vweird.f32 %v1647_v56 }
 0x289   :  { %v1641_v33 = vor.u32 1.1754944e-38, %v1640_v55  ;;  %vm1639_vm14 = vcmp.eq.f32.partialorder %v1638_v38, 8.507059e+37 }
 0x28a   :  { %v1660_v32 = vor.u32 1.1754944e-38, %v1659_v10  ;;  %vm1658_vm15 = vcmp.eq.f32.partialorder %v1657_v40, 8.507059e+37 }
 0x28b   :  { %v2616_v34 = vpop.eup %2615 }
 0x28c   :  { %v1667_v59 = vadd.f32 1.0, %v2616_v34  ;;  %v1841_v34 = vld [vmem:[%s4256_s4 + $0x8] sm:$0xff] }
 0x28d   :  { %v2618_v39 = vpop.eup %2617 }
 0x28e   :  { %v2620_v41 = vpop.eup %2619  ;;  %v1630_v44 = vmul.f32 %v2618_v39, %v1628_v29  ;;  %2621 = vrcp.f32 %v1667_v59  ;;  %vm1635_vm8 = vweird.f32 %v2618_v39  ;;  %v1679_v6 = vand.u32 2147483648, %v1667_v59  ;;  %v1843_v29 = vld [vmem:[%s4256_s4 + $0x18] sm:$0xff] }
 0x28f   :  { %v1649_v52 = vmul.f32 %v2620_v41, %v1647_v56  ;;  %2623 = vtanh.f32 %v1623_v43  ;;  %vm1654_vm9 = vweird.f32 %v2620_v41  ;;  %vm1636_vm12 = vmor %vm1634_vm10, %vm1635_vm8  ;;  %vm1673_vm1 = vweird.f32 %v1667_v59  ;;  %v1842_v56 = vld [vmem:[%s4256_s4 + $0x10] sm:$0xff] }
 0x290   :  { %v1631_v30 = vsub.f32 1.0, %v1630_v44  ;;  %vm1655_vm13 = vmor %vm1653_vm11, %vm1654_vm9  ;;  %v1677_v48 = vand.u32 2147483647, %v1667_v59  ;;  %v1680_v53 = vor.u32 1.1754944e-38, %v1679_v6 }
 0x291   :  { %v1650_v51 = vsub.f32 1.0, %v1649_v52 }
 0x292   :  { %v1632_v58 = vmul.f32 %v2618_v39, %v1631_v30  ;;  %vm1678_vm3 = vcmp.eq.f32.partialorder %v1677_v48, 8.507059e+37 }
 0x293   :  { %v1651_v50 = vmul.f32 %v2620_v41, %v1650_v51 }
 0x294   :  { %v2622_v36 = vpop.eup %2621  ;;  %v1633_v35 = vadd.f32 %v2618_v39, %v1632_v58 }
 0x295   :  { %v1652_v45 = vadd.f32 %v2620_v41, %v1651_v50  ;;  %v1669_v42 = vmul.f32 %v2622_v36, %v1667_v59  ;;  %v2624_v47 = vpop.eup %2623  ;;  %vm1674_vm0 = vweird.f32 %v2622_v36 }
 0x296   :  { %v1637_v31 = vsel %vm1636_vm12, %v2618_v39, %v1633_v35  ;;  %vm1675_vm2 = vmor %vm1673_vm1, %vm1674_vm0  ;;  %v1840_v39 = vld [vmem:[%s4256_s4] sm:$0xff] }
 0x297   :  { %v1642_v60 = vsel %vm1639_vm14, %v1641_v33, %v1637_v31  ;;  %v1656_v61 = vsel %vm1655_vm13, %v2620_v41, %v1652_v45  ;;  %v1670_v63 = vsub.f32 1.0, %v1669_v42 }
 0x298   :  { %v1661_v0 = vsel %vm1658_vm15, %v1660_v32, %v1656_v61  ;;  %v1684_v1 = vmul.f32 %v2624_v47, %v1642_v60 }
 0x299   :  { %v1683_v2 = vmul.f32 %v1661_v0, %v4181_v57  ;;  %v1671_v3 = vmul.f32 %v2622_v36, %v1670_v63  ;;  %v1855_v57 = vld [vmem:[%s4256_s4 + $0x78] sm:$0xff] }
 0x29a   :  { %1860 = vmatpush.msra.mxu0 %v1855_v57 }
 0x29b   :  { %v4189_v4 = vadd.f32 %v1684_v1, %v1683_v2  ;;  %v1672_v5 = vadd.f32 %v2622_v36, %v1671_v3 }
 0x29c   :  { %1861 = vmatpush.msra.mxu0 %v1854_v11 }
 0x29d   :  { %2625 = vtanh.f32 %v4189_v4  ;;  %v1676_v7 = vsel %vm1675_vm2, %v2622_v36, %v1672_v5 }
 0x29e   :  { %v1681_v8 = vsel %vm1678_vm3, %v1680_v53, %v1676_v7  ;;  %1862 = vmatpush.msra.mxu0 %v1853_v12 }
 0x2a0   :  { %1863 = vmatpush.msra.mxu0 %v1852_v13 }
 0x2a2   :  { %1864 = vmatpush.msra.mxu0 %v1851_v14 }
 0x2a3   :  { %v2626_v54 = vpop.eup %2625 }
 0x2a4   :  { %v1687_v9 = vmul.f32 %v2626_v54, %v1681_v8  ;;  %1865 = vmatpush.msra.mxu0 %v1850_v15 }
 0x2a6   :  { %1709 = vmatmul.f32.vlgmr.msrb.gmra.mxu0 %v1687_v9  ;;  %1729 = vmatmul.f32.vlgmr.msrb.gmra.mxu1 %v1687_v9 }
 0x2a7   :  { %1749 = vmatmul.f32.vlgmr.msrb.gmra.mxu2 %v1687_v9  ;;  %1769 = vmatmul.f32.vlgmr.msrb.gmra.mxu3 %v1687_v9 }
 0x2a8   :  { %1866 = vmatpush.msra.mxu0 %v1849_v16 }
 0x2aa   :  { %1867 = vmatpush.msra.mxu0 %v1848_v49 }
 0x2ac   :  { %1868 = vmatpush.msra.mxu0 %v1847_v17 }
 0x2ae   :  { %1869 = vmatpush.msra.mxu0 %v1846_v18 }
 0x2b0   :  { %1870 = vmatpush.msra.mxu0 %v1845_v25 }
 0x2b2   :  { %1871 = vmatpush.msra.mxu0 %v1844_v28 }
 0x2b4   :  { %1872 = vmatpush.msra.mxu0 %v1843_v29 }
 0x2b6   :  { %1873 = vmatpush.msra.mxu0 %v1842_v56 }
 0x2b8   :  { %1874 = vmatpush.msra.mxu0 %v1841_v34 }
 0x2ba   :  { %1875 = vmatpush.msra.mxu0 %v1840_v39 }
 0x323   :  { %v1710_v19 = vpop.f32.mrf.mxu0  ;;  %v1730_v20 = vpop.f32.mrf.mxu1 }
 0x324   :  { %v1773_v22 = vadd.f32 %v1710_v19, %v4407_v21  ;;  %v1774_v24 = vadd.f32 %v1730_v20, %v4408_v23 }
 0x326   :  { %v2438_v26 = vmul.f32 -1.442695, %v1773_v22  ;;  %v2439_v27 = vmul.f32 -1.442695, %v1774_v24 }
 0x328   :  { %2627 = vpow2.f32 %v2438_v26 }
 0x329   :  { %2629 = vpow2.f32 %v2439_v27 }
 0x32a   :  { %v1770_v37 = vpop.f32.mrf.mxu3  ;;  %v1750_v30 = vpop.f32.mrf.mxu2 }
 0x32b   :  { %v1776_v59 = vadd.f32 %v1770_v37, %v4105_v46  ;;  %v4409_v46 = vld [vmem:[#allocation41_spill] sm:$0xff] }
 0x32c   :  { %v1775_v58 = vadd.f32 %v1750_v30, %v4409_v46 }
 0x32d   :  { %v2440_v62 = vmul.f32 -1.442695, %v1776_v59 }
 0x32e   :  { %v2628_v43 = vpop.eup %2627 }
 0x32f   :  { %v2630_v41 = vpop.eup %2629  ;;  %v1780_v44 = vadd.f32 1.0, %v2628_v43  ;;  %2631 = vpow2.f32 %v2440_v62 }
 0x330   :  { %v1799_v52 = vadd.f32 1.0, %v2630_v41 }
 0x331   :  { %2633 = vrcp.f32 %v1780_v44  ;;  %v1792_v33 = vand.u32 2147483648, %v1780_v44  ;;  %v1790_v32 = vand.u32 2147483647, %v1780_v44  ;;  %vm1786_vm6 = vweird.f32 %v1780_v44 }
 0x332   :  { %2635 = vrcp.f32 %v1799_v52  ;;  %v1811_v45 = vand.u32 2147483648, %v1799_v52  ;;  %v1809_v47 = vand.u32 2147483647, %v1799_v52  ;;  %vm1805_vm7 = vweird.f32 %v1799_v52 }
 0x333   :  { %v1793_v63 = vor.u32 1.1754944e-38, %v1792_v33  ;;  %vm1791_vm10 = vcmp.eq.f32.partialorder %v1790_v32, 8.507059e+37 }
 0x334   :  { %v1812_v2 = vor.u32 1.1754944e-38, %v1811_v45  ;;  %vm1810_vm11 = vcmp.eq.f32.partialorder %v1809_v47, 8.507059e+37 }
 0x335   :  { %v2632_v51 = vpop.eup %2631 }
 0x336   :  { %v1819_v55 = vadd.f32 1.0, %v2632_v51 }
 0x337   :  { %v2634_v10 = vpop.eup %2633 }
 0x338   :  { %v2636_v38 = vpop.eup %2635  ;;  %v1782_v50 = vmul.f32 %v2634_v10, %v1780_v44  ;;  %2637 = vrcp.f32 %v1819_v55  ;;  %vm1787_vm4 = vweird.f32 %v2634_v10  ;;  %v1831_v12 = vand.u32 2147483648, %v1819_v55 }
 0x339   :  { %v1801_v40 = vmul.f32 %v2636_v38, %v1799_v52  ;;  %2639 = vtanh.f32 %v1775_v58  ;;  %vm1806_vm5 = vweird.f32 %v2636_v38  ;;  %vm1788_vm8 = vmor %vm1786_vm6, %vm1787_vm4  ;;  %vm1825_vm13 = vweird.f32 %v1819_v55 }
 0x33a   :  { %v1783_v36 = vsub.f32 1.0, %v1782_v50  ;;  %vm1807_vm9 = vmor %vm1805_vm7, %vm1806_vm5  ;;  %v1829_v13 = vand.u32 2147483647, %v1819_v55  ;;  %v1832_v15 = vor.u32 1.1754944e-38, %v1831_v12 }
 0x33b   :  { %v1802_v35 = vsub.f32 1.0, %v1801_v40 }
 0x33c   :  { %v1784_v42 = vmul.f32 %v2634_v10, %v1783_v36  ;;  %vm1830_vm15 = vcmp.eq.f32.partialorder %v1829_v13, 8.507059e+37 }
 0x33d   :  { %v1803_v31 = vmul.f32 %v2636_v38, %v1802_v35 }
 0x33e   :  { %v2638_v60 = vpop.eup %2637  ;;  %v1785_v61 = vadd.f32 %v2634_v10, %v1784_v42 }
 0x33f   :  { %v1804_v0 = vadd.f32 %v2636_v38, %v1803_v31  ;;  %v1821_v1 = vmul.f32 %v2638_v60, %v1819_v55  ;;  %v2640_v5 = vpop.eup %2639  ;;  %vm1826_vm12 = vweird.f32 %v2638_v60 }
 0x340   :  { %v1789_v3 = vsel %vm1788_vm8, %v2634_v10, %v1785_v61  ;;  %vm1827_vm14 = vmor %vm1825_vm13, %vm1826_vm12 }
 0x341   :  { %v1794_v6 = vsel %vm1791_vm10, %v1793_v63, %v1789_v3  ;;  %v1808_v48 = vsel %vm1807_vm9, %v2636_v38, %v1804_v0  ;;  %v1822_v7 = vsub.f32 1.0, %v1821_v1 }
 0x342   :  { %v1813_v53 = vsel %vm1810_vm11, %v1812_v2, %v1808_v48  ;;  %v1836_v54 = vmul.f32 %v2640_v5, %v1794_v6 }
 0x343   :  { %v1835_v8 = vmul.f32 %v1813_v53, %v4189_v4  ;;  %v1823_v9 = vmul.f32 %v2638_v60, %v1822_v7  ;;  %v2578_v4 = vld [vmem:[%s4255_s5] ss:$0 sm:$0xff] }
 0x345   :  { %v1837_v57 = vadd.f32 %v1836_v54, %v1835_v8  ;;  %v1824_v11 = vadd.f32 %v2638_v60, %v1823_v9 }
 0x347   :  { %2641 = vtanh.f32 %v1837_v57  ;;  %v1828_v14 = vsel %vm1827_vm14, %v2638_v60, %v1824_v11 }
 0x348   :  { %v1833_v49 = vsel %vm1830_vm15, %v1832_v15, %v1828_v14 }
 0x34d   :  { %v2642_v16 = vpop.eup %2641 }
 0x34e   :  { %v1839_v17 = vmul.f32 %v2642_v16, %v1833_v49 }
 0x350   :  { %1876 = vmatmul.f32.vlgmr.msra.gmra.mxu0 %v1839_v17 }
 0x3cd   :  { %v1877_v18 = vpop.f32.mrf.mxu0 }
 0x3ce   :  { %v1878_v19 = vadd.f32 %v2578_v4, %v1877_v18 }
 0x3d0   :  { %1880 = vst [vmem:[%s4257_s6] sm:$0xff] %v1878_v19 }

</bundles_post_ra>
